<compile_context>
chip_gen: v5e
topology: v5e:2x2
jax: 0.10.0
libtpu: 0.0.40
codegen_flags: <defaults>
</compile_context>

<pallas_src>
import functools

import numpy as np
import jax
import jax.numpy as jnp
from jax.experimental import pallas as pl
from jax.experimental.pallas import tpu as pltpu  # noqa: F401  (kept for TPU-specific tuning hooks)

D_MODEL = 32
N_HEAD = 4
DIM_FF = 64
NUM_LAYERS = 2
EPS = 1e-5

PARAM_ORDER = (
    "sa_wq", "sa_wk", "sa_wv", "sa_wo", "sa_b",
    "ca_wq", "ca_wk", "ca_wv", "ca_wo", "ca_b",
    "ff_w1", "ff_b1", "ff_w2", "ff_b2",
    "ln_g", "ln_b", "fin_g", "fin_b",
)


# ------------------------------ fused kernel --------------------------------

def _decoder_kernel(
    tgt_ref, mem_ref, qpos_ref, pos_ref, smask_ref, cmask_ref,
    sa_wq_ref, sa_wk_ref, sa_wv_ref, sa_wo_ref, sa_b_ref,
    ca_wq_ref, ca_wk_ref, ca_wv_ref, ca_wo_ref, ca_b_ref,
    ff_w1_ref, ff_b1_ref, ff_w2_ref, ff_b2_ref,
    ln_g_ref, ln_b_ref, fin_g_ref, fin_b_ref,
    out_ref,
    *, num_layers, n_head,
):
    d = tgt_ref.shape[-1]
    dh = d // n_head
    scale = 1.0 / float(dh) ** 0.5

    x = tgt_ref[...].astype(jnp.float32)        # (B*L, D) batch-major token rows
    qpos = qpos_ref[...].astype(jnp.float32)    # (B*L, D)
    mem = mem_ref[...].astype(jnp.float32)      # (B*S, D)
    pos = pos_ref[...].astype(jnp.float32)      # (B*S, D)
    self_mask = smask_ref[...]                  # (B*L, B*L) additive block-diag mask
    cross_mask = cmask_ref[...]                 # (B*L, B*S)

    # Per-head column masks (1, D), built once from a 2-D iota.
    col = jax.lax.broadcasted_iota(jnp.int32, (1, d), 1)
    head_masks = [
        jnp.where((col >= h * dh) & (col < (h + 1) * dh), 1.0, 0.0)
        for h in range(n_head)
    ]

    def layer_norm(v, g, b):
        mu = jnp.mean(v, axis=-1, keepdims=True)
        vc = v - mu
        var = jnp.mean(vc * vc, axis=-1, keepdims=True)
        return vc * jax.lax.rsqrt(var + EPS) * g + b

    def mha(q_in, k_in, v_in, wq, bq, wk, bk, wv, bv, wo, bo, amask):
        q = jnp.dot(q_in, wq, preferred_element_type=jnp.float32) + bq
        k = jnp.dot(k_in, wk, preferred_element_type=jnp.float32) + bk
        v = jnp.dot(v_in, wv, preferred_element_type=jnp.float32) + bv
        o = jnp.zeros_like(q)
        for hm in head_masks:
            # Head-h scores: non-head columns of q are zeroed, so the full-D
            # contraction equals the per-head (Dh) contraction.  amask keeps
            # attention block-diagonal across the batch.
            s = jax.lax.dot_general(
                q * hm, k, (((1,), (1,)), ((), ())),
                preferred_element_type=jnp.float32,
            ) * scale + amask
            m = jnp.max(s, axis=-1, keepdims=True)
            p = jnp.exp(s - m)
            inv = pl.reciprocal(jnp.sum(p, axis=-1, keepdims=True), approx=True)
            p = p * inv
            # Head-h output lands only in its own D columns (masked v), so the
            # sum over heads reproduces the concat-of-heads layout.
            o = o + jnp.dot(p, v * hm, preferred_element_type=jnp.float32)
        return jnp.dot(o, wo, preferred_element_type=jnp.float32) + bo

    mem_pos = mem + pos
    for layer in range(num_layers):          # static unroll (NUM_LAYERS = 2)
        # ----- self attention: q = k = x + query_pos, v = x -----
        qk_in = x + qpos
        sa = mha(qk_in, qk_in, x,
                 sa_wq_ref[layer], sa_b_ref[layer, 0],
                 sa_wk_ref[layer], sa_b_ref[layer, 1],
                 sa_wv_ref[layer], sa_b_ref[layer, 2],
                 sa_wo_ref[layer], sa_b_ref[layer, 3],
                 self_mask)
        x = layer_norm(x + sa, ln_g_ref[layer, 0], ln_b_ref[layer, 0])

        # ----- cross attention: q = x + query_pos, k = memory + pos, v = memory
        ca = mha(x + qpos, mem_pos, mem,
                 ca_wq_ref[layer], ca_b_ref[layer, 0],
                 ca_wk_ref[layer], ca_b_ref[layer, 1],
                 ca_wv_ref[layer], ca_b_ref[layer, 2],
                 ca_wo_ref[layer], ca_b_ref[layer, 3],
                 cross_mask)
        x = layer_norm(x + ca, ln_g_ref[layer, 1], ln_b_ref[layer, 1])

        # ----- feed forward -----
        h = jnp.dot(x, ff_w1_ref[layer], preferred_element_type=jnp.float32) + ff_b1_ref[layer]
        h = jnp.maximum(h, 0.0)
        f = jnp.dot(h, ff_w2_ref[layer], preferred_element_type=jnp.float32) + ff_b2_ref[layer]
        x = layer_norm(x + f, ln_g_ref[layer, 2], ln_b_ref[layer, 2])

    # final decoder LayerNorm
    x = layer_norm(x, fin_g_ref[...], fin_b_ref[...])
    out_ref[...] = x.astype(out_ref.dtype)


# ------------------------------- model glue ---------------------------------

def _batch_block_mask(b, lq, lk):
    """Additive mask (b*lq, b*lk): 0 within a batch, -1e30 across batches."""
    q_ids = np.repeat(np.arange(b), lq)
    k_ids = np.repeat(np.arange(b), lk)
    m = np.where(q_ids[:, None] == k_ids[None, :], 0.0, -1e30).astype(np.float32)
    return jnp.asarray(m)


def transformer_decoder_forward(params, tgt, memory, pos, query_pos):
    L, B, D = tgt.shape
    S = memory.shape[0]

    # (seq, batch, d) -> batch-major token matrix (B*seq, d): each batch is a
    # contiguous row block inside the kernel (clean sublane-aligned blocks).
    def to_rows(t):
        return jnp.transpose(t, (1, 0, 2)).reshape(-1, D)

    tgt_r, qpos_r = to_rows(tgt), to_rows(query_pos)
    mem_r, pos_r = to_rows(memory), to_rows(pos)

    self_mask = _batch_block_mask(B, L, L)
    cross_mask = _batch_block_mask(B, L, S)

    kernel = functools.partial(_decoder_kernel, num_layers=NUM_LAYERS, n_head=N_HEAD)
    out = pl.pallas_call(
        kernel,
        out_shape=jax.ShapeDtypeStruct((B * L, D), tgt.dtype),
    )(tgt_r, mem_r, qpos_r, pos_r, self_mask, cross_mask,
      *[params[k] for k in PARAM_ORDER])

    out = jnp.transpose(out.reshape(B, L, D), (1, 0, 2))   # back to (L, B, D)
    return out[None]        # == output.unsqueeze(0)  (return_intermediate=False)


# ------------------------------ param init ----------------------------------

def init_params(key):
    ks = iter(jax.random.split(key, 32))

    def w(*shape):
        return 0.02 * jax.random.normal(next(ks), shape, jnp.float32)

    def b(*shape):
        return 0.01 * jax.random.normal(next(ks), shape, jnp.float32)

    NL, D, F = NUM_LAYERS, D_MODEL, DIM_FF
    return {
        # self-attention (per-layer stacked): weights (NL, D, D), biases (NL, 4, 1, D)
        "sa_wq": w(NL, D, D), "sa_wk": w(NL, D, D),
        "sa_wv": w(NL, D, D), "sa_wo": w(NL, D, D),
        "sa_b": b(NL, 4, 1, D),                       # rows: q, k, v, out
        # cross-attention
        "ca_wq": w(NL, D, D), "ca_wk": w(NL, D, D),
        "ca_wv": w(NL, D, D), "ca_wo": w(NL, D, D),
        "ca_b": b(NL, 4, 1, D),
        # feed-forward
        "ff_w1": w(NL, D, F), "ff_b1": b(NL, 1, F),
        "ff_w2": w(NL, F, D), "ff_b2": b(NL, 1, D),
        # layer norms 1/2/3 per layer
        "ln_g": jnp.ones((NL, 3, 1, D), jnp.float32),
        "ln_b": jnp.zeros((NL, 3, 1, D), jnp.float32),
        # final decoder norm
        "fin_g": jnp.ones((1, D), jnp.float32),
        "fin_b": jnp.zeros((1, D), jnp.float32),
    }


# ---------------------------------- main -------------------------------------

if __name__ == "__main__":
    key = jax.random.PRNGKey(0)
    k_p, k_t, k_m, k_pos, k_qp = jax.random.split(key, 5)

    B, L, S = 2, 8, 16          # batch, #queries (tgt len), memory len
    params = init_params(k_p)

    tgt = jax.random.normal(k_t, (L, B, D_MODEL), jnp.float32)
    memory = jax.random.normal(k_m, (S, B, D_MODEL), jnp.float32)
    pos = jax.random.normal(k_pos, (S, B, D_MODEL), jnp.float32)
    query_pos = jax.random.normal(k_qp, (L, B, D_MODEL), jnp.float32)

    fwd = jax.jit(transformer_decoder_forward)
    out = fwd(params, tgt, memory, pos, query_pos)
    jax.block_until_ready(out)

    assert out.shape == (1, L, B, D_MODEL), out.shape
    assert bool(jnp.all(jnp.isfinite(out)))
    print("KERNEL_OK")
</pallas_src>

<mosaic_0001>
module attributes {stable_mosaic.version = 11 : i64} {
  func.func @_decoder_kernel(%arg0: memref<16x32xf32, #tpu.memory_space<vmem>>, %arg1: memref<32x32xf32, #tpu.memory_space<vmem>>, %arg2: memref<16x32xf32, #tpu.memory_space<vmem>>, %arg3: memref<32x32xf32, #tpu.memory_space<vmem>>, %arg4: memref<16x16xf32, #tpu.memory_space<vmem>>, %arg5: memref<16x32xf32, #tpu.memory_space<vmem>>, %arg6: memref<2x32x32xf32, #tpu.memory_space<vmem>>, %arg7: memref<2x32x32xf32, #tpu.memory_space<vmem>>, %arg8: memref<2x32x32xf32, #tpu.memory_space<vmem>>, %arg9: memref<2x32x32xf32, #tpu.memory_space<vmem>>, %arg10: memref<2x4x1x32xf32, #tpu.memory_space<vmem>>, %arg11: memref<2x32x32xf32, #tpu.memory_space<vmem>>, %arg12: memref<2x32x32xf32, #tpu.memory_space<vmem>>, %arg13: memref<2x32x32xf32, #tpu.memory_space<vmem>>, %arg14: memref<2x32x32xf32, #tpu.memory_space<vmem>>, %arg15: memref<2x4x1x32xf32, #tpu.memory_space<vmem>>, %arg16: memref<2x32x64xf32, #tpu.memory_space<vmem>>, %arg17: memref<2x1x64xf32, #tpu.memory_space<vmem>>, %arg18: memref<2x64x32xf32, #tpu.memory_space<vmem>>, %arg19: memref<2x1x32xf32, #tpu.memory_space<vmem>>, %arg20: memref<2x3x1x32xf32, #tpu.memory_space<vmem>>, %arg21: memref<2x3x1x32xf32, #tpu.memory_space<vmem>>, %arg22: memref<1x32xf32, #tpu.memory_space<vmem>>, %arg23: memref<1x32xf32, #tpu.memory_space<vmem>>, %arg24: memref<16x32xf32, #tpu.memory_space<vmem>>) attributes {dimension_semantics = [], scalar_prefetch = 0 : i64, scratch_operands = 0 : i64, tpu.core_type = #tpu.core_type<tc>} {
    %c0 = arith.constant 0 : index
    %c0_0 = arith.constant 0 : index
    %0 = vector.load %arg0[%c0, %c0_0] : memref<16x32xf32, #tpu.memory_space<vmem>>, vector<16x32xf32>
    %c0_1 = arith.constant 0 : index
    %c0_2 = arith.constant 0 : index
    %1 = vector.load %arg2[%c0_1, %c0_2] : memref<16x32xf32, #tpu.memory_space<vmem>>, vector<16x32xf32>
    %c0_3 = arith.constant 0 : index
    %c0_4 = arith.constant 0 : index
    %2 = vector.load %arg1[%c0_3, %c0_4] : memref<32x32xf32, #tpu.memory_space<vmem>>, vector<32x32xf32>
    %c0_5 = arith.constant 0 : index
    %c0_6 = arith.constant 0 : index
    %3 = vector.load %arg3[%c0_5, %c0_6] : memref<32x32xf32, #tpu.memory_space<vmem>>, vector<32x32xf32>
    %c0_7 = arith.constant 0 : index
    %c0_8 = arith.constant 0 : index
    %4 = vector.load %arg4[%c0_7, %c0_8] : memref<16x16xf32, #tpu.memory_space<vmem>>, vector<16x16xf32>
    %c0_9 = arith.constant 0 : index
    %c0_10 = arith.constant 0 : index
    %5 = vector.load %arg5[%c0_9, %c0_10] : memref<16x32xf32, #tpu.memory_space<vmem>>, vector<16x32xf32>
    %6 = tpu.iota {dimensions = array<i32: 1>} : vector<1x32xi32>
    %c0_i32 = arith.constant 0 : i32
    %7 = vector.broadcast %c0_i32 : i32 to vector<1x32xi32>
    %8 = arith.cmpi sge, %6, %7 : vector<1x32xi32>
    %c8_i32 = arith.constant 8 : i32
    %9 = vector.broadcast %c8_i32 : i32 to vector<1x32xi32>
    %10 = arith.cmpi slt, %6, %9 : vector<1x32xi32>
    %11 = arith.andi %8, %10 : vector<1x32xi1>
    %cst = arith.constant 1.000000e+00 : f32
    %cst_11 = arith.constant 0.000000e+00 : f32
    %12 = vector.broadcast %cst : f32 to vector<1x32xf32>
    %13 = vector.broadcast %cst_11 : f32 to vector<1x32xf32>
    %14 = arith.select %11, %12, %13 : vector<1x32xi1>, vector<1x32xf32>
    %c8_i32_12 = arith.constant 8 : i32
    %15 = vector.broadcast %c8_i32_12 : i32 to vector<1x32xi32>
    %16 = arith.cmpi sge, %6, %15 : vector<1x32xi32>
    %c16_i32 = arith.constant 16 : i32
    %17 = vector.broadcast %c16_i32 : i32 to vector<1x32xi32>
    %18 = arith.cmpi slt, %6, %17 : vector<1x32xi32>
    %19 = arith.andi %16, %18 : vector<1x32xi1>
    %cst_13 = arith.constant 1.000000e+00 : f32
    %cst_14 = arith.constant 0.000000e+00 : f32
    %20 = vector.broadcast %cst_13 : f32 to vector<1x32xf32>
    %21 = vector.broadcast %cst_14 : f32 to vector<1x32xf32>
    %22 = arith.select %19, %20, %21 : vector<1x32xi1>, vector<1x32xf32>
    %c16_i32_15 = arith.constant 16 : i32
    %23 = vector.broadcast %c16_i32_15 : i32 to vector<1x32xi32>
    %24 = arith.cmpi sge, %6, %23 : vector<1x32xi32>
    %c24_i32 = arith.constant 24 : i32
    %25 = vector.broadcast %c24_i32 : i32 to vector<1x32xi32>
    %26 = arith.cmpi slt, %6, %25 : vector<1x32xi32>
    %27 = arith.andi %24, %26 : vector<1x32xi1>
    %cst_16 = arith.constant 1.000000e+00 : f32
    %cst_17 = arith.constant 0.000000e+00 : f32
    %28 = vector.broadcast %cst_16 : f32 to vector<1x32xf32>
    %29 = vector.broadcast %cst_17 : f32 to vector<1x32xf32>
    %30 = arith.select %27, %28, %29 : vector<1x32xi1>, vector<1x32xf32>
    %c24_i32_18 = arith.constant 24 : i32
    %31 = vector.broadcast %c24_i32_18 : i32 to vector<1x32xi32>
    %32 = arith.cmpi sge, %6, %31 : vector<1x32xi32>
    %c32_i32 = arith.constant 32 : i32
    %33 = vector.broadcast %c32_i32 : i32 to vector<1x32xi32>
    %34 = arith.cmpi slt, %6, %33 : vector<1x32xi32>
    %35 = arith.andi %32, %34 : vector<1x32xi1>
    %cst_19 = arith.constant 1.000000e+00 : f32
    %cst_20 = arith.constant 0.000000e+00 : f32
    %36 = vector.broadcast %cst_19 : f32 to vector<1x32xf32>
    %37 = vector.broadcast %cst_20 : f32 to vector<1x32xf32>
    %38 = arith.select %35, %36, %37 : vector<1x32xi1>, vector<1x32xf32>
    %39 = arith.addf %2, %3 : vector<32x32xf32>
    %40 = arith.addf %0, %1 : vector<16x32xf32>
    %c0_21 = arith.constant 0 : index
    %c0_22 = arith.constant 0 : index
    %c0_23 = arith.constant 0 : index
    %41 = vector.load %arg6[%c0_21, %c0_22, %c0_23] : memref<2x32x32xf32, #tpu.memory_space<vmem>>, vector<1x32x32xf32>
    %42 = vector.shape_cast %41 : vector<1x32x32xf32> to vector<32x32xf32>
    %c0_24 = arith.constant 0 : index
    %c0_25 = arith.constant 0 : index
    %c0_26 = arith.constant 0 : index
    %c0_27 = arith.constant 0 : index
    %43 = vector.load %arg10[%c0_24, %c0_25, %c0_26, %c0_27] : memref<2x4x1x32xf32, #tpu.memory_space<vmem>>, vector<1x1x1x32xf32>
    %44 = vector.shape_cast %43 : vector<1x1x1x32xf32> to vector<1x32xf32>
    %c0_28 = arith.constant 0 : index
    %c0_29 = arith.constant 0 : index
    %c0_30 = arith.constant 0 : index
    %45 = vector.load %arg7[%c0_28, %c0_29, %c0_30] : memref<2x32x32xf32, #tpu.memory_space<vmem>>, vector<1x32x32xf32>
    %46 = vector.shape_cast %45 : vector<1x32x32xf32> to vector<32x32xf32>
    %c0_31 = arith.constant 0 : index
    %c1 = arith.constant 1 : index
    %c0_32 = arith.constant 0 : index
    %c0_33 = arith.constant 0 : index
    %47 = vector.load %arg10[%c0_31, %c1, %c0_32, %c0_33] : memref<2x4x1x32xf32, #tpu.memory_space<vmem>>, vector<1x1x1x32xf32>
    %48 = vector.shape_cast %47 : vector<1x1x1x32xf32> to vector<1x32xf32>
    %c0_34 = arith.constant 0 : index
    %c0_35 = arith.constant 0 : index
    %c0_36 = arith.constant 0 : index
    %49 = vector.load %arg8[%c0_34, %c0_35, %c0_36] : memref<2x32x32xf32, #tpu.memory_space<vmem>>, vector<1x32x32xf32>
    %50 = vector.shape_cast %49 : vector<1x32x32xf32> to vector<32x32xf32>
    %c0_37 = arith.constant 0 : index
    %c2 = arith.constant 2 : index
    %c0_38 = arith.constant 0 : index
    %c0_39 = arith.constant 0 : index
    %51 = vector.load %arg10[%c0_37, %c2, %c0_38, %c0_39] : memref<2x4x1x32xf32, #tpu.memory_space<vmem>>, vector<1x1x1x32xf32>
    %52 = vector.shape_cast %51 : vector<1x1x1x32xf32> to vector<1x32xf32>
    %c0_40 = arith.constant 0 : index
    %c0_41 = arith.constant 0 : index
    %c0_42 = arith.constant 0 : index
    %53 = vector.load %arg9[%c0_40, %c0_41, %c0_42] : memref<2x32x32xf32, #tpu.memory_space<vmem>>, vector<1x32x32xf32>
    %54 = vector.shape_cast %53 : vector<1x32x32xf32> to vector<32x32xf32>
    %c0_43 = arith.constant 0 : index
    %c3 = arith.constant 3 : index
    %c0_44 = arith.constant 0 : index
    %c0_45 = arith.constant 0 : index
    %55 = vector.load %arg10[%c0_43, %c3, %c0_44, %c0_45] : memref<2x4x1x32xf32, #tpu.memory_space<vmem>>, vector<1x1x1x32xf32>
    %56 = vector.shape_cast %55 : vector<1x1x1x32xf32> to vector<1x32xf32>
    %cst_46 = arith.constant dense<0.000000e+00> : vector<16x32xf32>
    %57 = tpu.matmul %40, %42, %cst_46 {dimension_numbers = #tpu.dot_dimension_numbers<[1], [0], [0], [1], [0, 0, 1, 1], [], []>} : vector<16x32xf32>, vector<32x32xf32>, vector<16x32xf32> -> vector<16x32xf32>
    %58 = vector.broadcast %44 : vector<1x32xf32> to vector<16x32xf32>
    %59 = arith.addf %57, %58 : vector<16x32xf32>
    %cst_47 = arith.constant dense<0.000000e+00> : vector<16x32xf32>
    %60 = tpu.matmul %40, %46, %cst_47 {dimension_numbers = #tpu.dot_dimension_numbers<[1], [0], [0], [1], [0, 0, 1, 1], [], []>} : vector<16x32xf32>, vector<32x32xf32>, vector<16x32xf32> -> vector<16x32xf32>
    %61 = vector.broadcast %48 : vector<1x32xf32> to vector<16x32xf32>
    %62 = arith.addf %60, %61 : vector<16x32xf32>
    %cst_48 = arith.constant dense<0.000000e+00> : vector<16x32xf32>
    %63 = tpu.matmul %0, %50, %cst_48 {dimension_numbers = #tpu.dot_dimension_numbers<[1], [0], [0], [1], [0, 0, 1, 1], [], []>} : vector<16x32xf32>, vector<32x32xf32>, vector<16x32xf32> -> vector<16x32xf32>
    %64 = vector.broadcast %52 : vector<1x32xf32> to vector<16x32xf32>
    %65 = arith.addf %63, %64 : vector<16x32xf32>
    %cst_49 = arith.constant 0.000000e+00 : f32
    %66 = vector.broadcast %cst_49 : f32 to vector<16x32xf32>
    %67 = vector.broadcast %14 : vector<1x32xf32> to vector<16x32xf32>
    %68 = arith.mulf %59, %67 : vector<16x32xf32>
    %cst_50 = arith.constant dense<0.000000e+00> : vector<16x16xf32>
    %69 = tpu.matmul %68, %62, %cst_50 {dimension_numbers = #tpu.dot_dimension_numbers<[1], [1], [0], [0], [0, 0, 1, 0], [], []>} : vector<16x32xf32>, vector<16x32xf32>, vector<16x16xf32> -> vector<16x16xf32>
    %cst_51 = arith.constant 0.353553385 : f32
    %70 = vector.broadcast %cst_51 : f32 to vector<16x16xf32>
    %71 = arith.mulf %69, %70 : vector<16x16xf32>
    %72 = arith.addf %71, %4 : vector<16x16xf32>
    %cst_52 = arith.constant dense<0xFF800000> : vector<16xf32>
    %73 = vector.multi_reduction <maximumf>, %72, %cst_52 [1] : vector<16x16xf32> to vector<16xf32>
    %74 = vector.shape_cast %73 : vector<16xf32> to vector<16x1xf32>
    %75 = vector.broadcast %74 : vector<16x1xf32> to vector<16x16xf32>
    %76 = arith.subf %72, %75 : vector<16x16xf32>
    %77 = math.exp %76 : vector<16x16xf32>
    %cst_53 = arith.constant dense<0.000000e+00> : vector<16xf32>
    %78 = vector.multi_reduction <add>, %77, %cst_53 [1] : vector<16x16xf32> to vector<16xf32>
    %79 = vector.shape_cast %78 : vector<16xf32> to vector<16x1xf32>
    %80 = tpu.reciprocal %79 {approx = true} : vector<16x1xf32> -> vector<16x1xf32>
    %81 = vector.broadcast %80 : vector<16x1xf32> to vector<16x16xf32>
    %82 = arith.mulf %77, %81 : vector<16x16xf32>
    %83 = vector.broadcast %14 : vector<1x32xf32> to vector<16x32xf32>
    %84 = arith.mulf %65, %83 : vector<16x32xf32>
    %cst_54 = arith.constant dense<0.000000e+00> : vector<16x32xf32>
    %85 = tpu.matmul %82, %84, %cst_54 {dimension_numbers = #tpu.dot_dimension_numbers<[1], [0], [0], [1], [0, 0, 1, 1], [], []>} : vector<16x16xf32>, vector<16x32xf32>, vector<16x32xf32> -> vector<16x32xf32>
    %86 = arith.addf %66, %85 : vector<16x32xf32>
    %87 = vector.broadcast %22 : vector<1x32xf32> to vector<16x32xf32>
    %88 = arith.mulf %59, %87 : vector<16x32xf32>
    %cst_55 = arith.constant dense<0.000000e+00> : vector<16x16xf32>
    %89 = tpu.matmul %88, %62, %cst_55 {dimension_numbers = #tpu.dot_dimension_numbers<[1], [1], [0], [0], [0, 0, 1, 0], [], []>} : vector<16x32xf32>, vector<16x32xf32>, vector<16x16xf32> -> vector<16x16xf32>
    %cst_56 = arith.constant 0.353553385 : f32
    %90 = vector.broadcast %cst_56 : f32 to vector<16x16xf32>
    %91 = arith.mulf %89, %90 : vector<16x16xf32>
    %92 = arith.addf %91, %4 : vector<16x16xf32>
    %cst_57 = arith.constant dense<0xFF800000> : vector<16xf32>
    %93 = vector.multi_reduction <maximumf>, %92, %cst_57 [1] : vector<16x16xf32> to vector<16xf32>
    %94 = vector.shape_cast %93 : vector<16xf32> to vector<16x1xf32>
    %95 = vector.broadcast %94 : vector<16x1xf32> to vector<16x16xf32>
    %96 = arith.subf %92, %95 : vector<16x16xf32>
    %97 = math.exp %96 : vector<16x16xf32>
    %cst_58 = arith.constant dense<0.000000e+00> : vector<16xf32>
    %98 = vector.multi_reduction <add>, %97, %cst_58 [1] : vector<16x16xf32> to vector<16xf32>
    %99 = vector.shape_cast %98 : vector<16xf32> to vector<16x1xf32>
    %100 = tpu.reciprocal %99 {approx = true} : vector<16x1xf32> -> vector<16x1xf32>
    %101 = vector.broadcast %100 : vector<16x1xf32> to vector<16x16xf32>
    %102 = arith.mulf %97, %101 : vector<16x16xf32>
    %103 = vector.broadcast %22 : vector<1x32xf32> to vector<16x32xf32>
    %104 = arith.mulf %65, %103 : vector<16x32xf32>
    %cst_59 = arith.constant dense<0.000000e+00> : vector<16x32xf32>
    %105 = tpu.matmul %102, %104, %cst_59 {dimension_numbers = #tpu.dot_dimension_numbers<[1], [0], [0], [1], [0, 0, 1, 1], [], []>} : vector<16x16xf32>, vector<16x32xf32>, vector<16x32xf32> -> vector<16x32xf32>
    %106 = arith.addf %86, %105 : vector<16x32xf32>
    %107 = vector.broadcast %30 : vector<1x32xf32> to vector<16x32xf32>
    %108 = arith.mulf %59, %107 : vector<16x32xf32>
    %cst_60 = arith.constant dense<0.000000e+00> : vector<16x16xf32>
    %109 = tpu.matmul %108, %62, %cst_60 {dimension_numbers = #tpu.dot_dimension_numbers<[1], [1], [0], [0], [0, 0, 1, 0], [], []>} : vector<16x32xf32>, vector<16x32xf32>, vector<16x16xf32> -> vector<16x16xf32>
    %cst_61 = arith.constant 0.353553385 : f32
    %110 = vector.broadcast %cst_61 : f32 to vector<16x16xf32>
    %111 = arith.mulf %109, %110 : vector<16x16xf32>
    %112 = arith.addf %111, %4 : vector<16x16xf32>
    %cst_62 = arith.constant dense<0xFF800000> : vector<16xf32>
    %113 = vector.multi_reduction <maximumf>, %112, %cst_62 [1] : vector<16x16xf32> to vector<16xf32>
    %114 = vector.shape_cast %113 : vector<16xf32> to vector<16x1xf32>
    %115 = vector.broadcast %114 : vector<16x1xf32> to vector<16x16xf32>
    %116 = arith.subf %112, %115 : vector<16x16xf32>
    %117 = math.exp %116 : vector<16x16xf32>
    %cst_63 = arith.constant dense<0.000000e+00> : vector<16xf32>
    %118 = vector.multi_reduction <add>, %117, %cst_63 [1] : vector<16x16xf32> to vector<16xf32>
    %119 = vector.shape_cast %118 : vector<16xf32> to vector<16x1xf32>
    %120 = tpu.reciprocal %119 {approx = true} : vector<16x1xf32> -> vector<16x1xf32>
    %121 = vector.broadcast %120 : vector<16x1xf32> to vector<16x16xf32>
    %122 = arith.mulf %117, %121 : vector<16x16xf32>
    %123 = vector.broadcast %30 : vector<1x32xf32> to vector<16x32xf32>
    %124 = arith.mulf %65, %123 : vector<16x32xf32>
    %cst_64 = arith.constant dense<0.000000e+00> : vector<16x32xf32>
    %125 = tpu.matmul %122, %124, %cst_64 {dimension_numbers = #tpu.dot_dimension_numbers<[1], [0], [0], [1], [0, 0, 1, 1], [], []>} : vector<16x16xf32>, vector<16x32xf32>, vector<16x32xf32> -> vector<16x32xf32>
    %126 = arith.addf %106, %125 : vector<16x32xf32>
    %127 = vector.broadcast %38 : vector<1x32xf32> to vector<16x32xf32>
    %128 = arith.mulf %59, %127 : vector<16x32xf32>
    %cst_65 = arith.constant dense<0.000000e+00> : vector<16x16xf32>
    %129 = tpu.matmul %128, %62, %cst_65 {dimension_numbers = #tpu.dot_dimension_numbers<[1], [1], [0], [0], [0, 0, 1, 0], [], []>} : vector<16x32xf32>, vector<16x32xf32>, vector<16x16xf32> -> vector<16x16xf32>
    %cst_66 = arith.constant 0.353553385 : f32
    %130 = vector.broadcast %cst_66 : f32 to vector<16x16xf32>
    %131 = arith.mulf %129, %130 : vector<16x16xf32>
    %132 = arith.addf %131, %4 : vector<16x16xf32>
    %cst_67 = arith.constant dense<0xFF800000> : vector<16xf32>
    %133 = vector.multi_reduction <maximumf>, %132, %cst_67 [1] : vector<16x16xf32> to vector<16xf32>
    %134 = vector.shape_cast %133 : vector<16xf32> to vector<16x1xf32>
    %135 = vector.broadcast %134 : vector<16x1xf32> to vector<16x16xf32>
    %136 = arith.subf %132, %135 : vector<16x16xf32>
    %137 = math.exp %136 : vector<16x16xf32>
    %cst_68 = arith.constant dense<0.000000e+00> : vector<16xf32>
    %138 = vector.multi_reduction <add>, %137, %cst_68 [1] : vector<16x16xf32> to vector<16xf32>
    %139 = vector.shape_cast %138 : vector<16xf32> to vector<16x1xf32>
    %140 = tpu.reciprocal %139 {approx = true} : vector<16x1xf32> -> vector<16x1xf32>
    %141 = vector.broadcast %140 : vector<16x1xf32> to vector<16x16xf32>
    %142 = arith.mulf %137, %141 : vector<16x16xf32>
    %143 = vector.broadcast %38 : vector<1x32xf32> to vector<16x32xf32>
    %144 = arith.mulf %65, %143 : vector<16x32xf32>
    %cst_69 = arith.constant dense<0.000000e+00> : vector<16x32xf32>
    %145 = tpu.matmul %142, %144, %cst_69 {dimension_numbers = #tpu.dot_dimension_numbers<[1], [0], [0], [1], [0, 0, 1, 1], [], []>} : vector<16x16xf32>, vector<16x32xf32>, vector<16x32xf32> -> vector<16x32xf32>
    %146 = arith.addf %126, %145 : vector<16x32xf32>
    %cst_70 = arith.constant dense<0.000000e+00> : vector<16x32xf32>
    %147 = tpu.matmul %146, %54, %cst_70 {dimension_numbers = #tpu.dot_dimension_numbers<[1], [0], [0], [1], [0, 0, 1, 1], [], []>} : vector<16x32xf32>, vector<32x32xf32>, vector<16x32xf32> -> vector<16x32xf32>
    %148 = vector.broadcast %56 : vector<1x32xf32> to vector<16x32xf32>
    %149 = arith.addf %147, %148 : vector<16x32xf32>
    %150 = arith.addf %0, %149 : vector<16x32xf32>
    %c0_71 = arith.constant 0 : index
    %c0_72 = arith.constant 0 : index
    %c0_73 = arith.constant 0 : index
    %c0_74 = arith.constant 0 : index
    %151 = vector.load %arg20[%c0_71, %c0_72, %c0_73, %c0_74] : memref<2x3x1x32xf32, #tpu.memory_space<vmem>>, vector<1x1x1x32xf32>
    %152 = vector.shape_cast %151 : vector<1x1x1x32xf32> to vector<1x32xf32>
    %c0_75 = arith.constant 0 : index
    %c0_76 = arith.constant 0 : index
    %c0_77 = arith.constant 0 : index
    %c0_78 = arith.constant 0 : index
    %153 = vector.load %arg21[%c0_75, %c0_76, %c0_77, %c0_78] : memref<2x3x1x32xf32, #tpu.memory_space<vmem>>, vector<1x1x1x32xf32>
    %154 = vector.shape_cast %153 : vector<1x1x1x32xf32> to vector<1x32xf32>
    %cst_79 = arith.constant dense<0.000000e+00> : vector<16xf32>
    %155 = vector.multi_reduction <add>, %150, %cst_79 [1] : vector<16x32xf32> to vector<16xf32>
    %156 = vector.shape_cast %155 : vector<16xf32> to vector<16x1xf32>
    %cst_80 = arith.constant 3.200000e+01 : f32
    %157 = vector.broadcast %cst_80 : f32 to vector<16x1xf32>
    %158 = arith.divf %156, %157 : vector<16x1xf32>
    %159 = vector.broadcast %158 : vector<16x1xf32> to vector<16x32xf32>
    %160 = arith.subf %150, %159 : vector<16x32xf32>
    %161 = arith.mulf %160, %160 : vector<16x32xf32>
    %cst_81 = arith.constant dense<0.000000e+00> : vector<16xf32>
    %162 = vector.multi_reduction <add>, %161, %cst_81 [1] : vector<16x32xf32> to vector<16xf32>
    %163 = vector.shape_cast %162 : vector<16xf32> to vector<16x1xf32>
    %cst_82 = arith.constant 3.200000e+01 : f32
    %164 = vector.broadcast %cst_82 : f32 to vector<16x1xf32>
    %165 = arith.divf %163, %164 : vector<16x1xf32>
    %cst_83 = arith.constant 9.99999974E-6 : f32
    %166 = vector.broadcast %cst_83 : f32 to vector<16x1xf32>
    %167 = arith.addf %165, %166 : vector<16x1xf32>
    %168 = math.rsqrt %167 : vector<16x1xf32>
    %169 = vector.broadcast %168 : vector<16x1xf32> to vector<16x32xf32>
    %170 = arith.mulf %160, %169 : vector<16x32xf32>
    %171 = vector.broadcast %152 : vector<1x32xf32> to vector<16x32xf32>
    %172 = arith.mulf %170, %171 : vector<16x32xf32>
    %173 = vector.broadcast %154 : vector<1x32xf32> to vector<16x32xf32>
    %174 = arith.addf %172, %173 : vector<16x32xf32>
    %175 = arith.addf %174, %1 : vector<16x32xf32>
    %c0_84 = arith.constant 0 : index
    %c0_85 = arith.constant 0 : index
    %c0_86 = arith.constant 0 : index
    %176 = vector.load %arg11[%c0_84, %c0_85, %c0_86] : memref<2x32x32xf32, #tpu.memory_space<vmem>>, vector<1x32x32xf32>
    %177 = vector.shape_cast %176 : vector<1x32x32xf32> to vector<32x32xf32>
    %c0_87 = arith.constant 0 : index
    %c0_88 = arith.constant 0 : index
    %c0_89 = arith.constant 0 : index
    %c0_90 = arith.constant 0 : index
    %178 = vector.load %arg15[%c0_87, %c0_88, %c0_89, %c0_90] : memref<2x4x1x32xf32, #tpu.memory_space<vmem>>, vector<1x1x1x32xf32>
    %179 = vector.shape_cast %178 : vector<1x1x1x32xf32> to vector<1x32xf32>
    %c0_91 = arith.constant 0 : index
    %c0_92 = arith.constant 0 : index
    %c0_93 = arith.constant 0 : index
    %180 = vector.load %arg12[%c0_91, %c0_92, %c0_93] : memref<2x32x32xf32, #tpu.memory_space<vmem>>, vector<1x32x32xf32>
    %181 = vector.shape_cast %180 : vector<1x32x32xf32> to vector<32x32xf32>
    %c0_94 = arith.constant 0 : index
    %c1_95 = arith.constant 1 : index
    %c0_96 = arith.constant 0 : index
    %c0_97 = arith.constant 0 : index
    %182 = vector.load %arg15[%c0_94, %c1_95, %c0_96, %c0_97] : memref<2x4x1x32xf32, #tpu.memory_space<vmem>>, vector<1x1x1x32xf32>
    %183 = vector.shape_cast %182 : vector<1x1x1x32xf32> to vector<1x32xf32>
    %c0_98 = arith.constant 0 : index
    %c0_99 = arith.constant 0 : index
    %c0_100 = arith.constant 0 : index
    %184 = vector.load %arg13[%c0_98, %c0_99, %c0_100] : memref<2x32x32xf32, #tpu.memory_space<vmem>>, vector<1x32x32xf32>
    %185 = vector.shape_cast %184 : vector<1x32x32xf32> to vector<32x32xf32>
    %c0_101 = arith.constant 0 : index
    %c2_102 = arith.constant 2 : index
    %c0_103 = arith.constant 0 : index
    %c0_104 = arith.constant 0 : index
    %186 = vector.load %arg15[%c0_101, %c2_102, %c0_103, %c0_104] : memref<2x4x1x32xf32, #tpu.memory_space<vmem>>, vector<1x1x1x32xf32>
    %187 = vector.shape_cast %186 : vector<1x1x1x32xf32> to vector<1x32xf32>
    %c0_105 = arith.constant 0 : index
    %c0_106 = arith.constant 0 : index
    %c0_107 = arith.constant 0 : index
    %188 = vector.load %arg14[%c0_105, %c0_106, %c0_107] : memref<2x32x32xf32, #tpu.memory_space<vmem>>, vector<1x32x32xf32>
    %189 = vector.shape_cast %188 : vector<1x32x32xf32> to vector<32x32xf32>
    %c0_108 = arith.constant 0 : index
    %c3_109 = arith.constant 3 : index
    %c0_110 = arith.constant 0 : index
    %c0_111 = arith.constant 0 : index
    %190 = vector.load %arg15[%c0_108, %c3_109, %c0_110, %c0_111] : memref<2x4x1x32xf32, #tpu.memory_space<vmem>>, vector<1x1x1x32xf32>
    %191 = vector.shape_cast %190 : vector<1x1x1x32xf32> to vector<1x32xf32>
    %cst_112 = arith.constant dense<0.000000e+00> : vector<16x32xf32>
    %192 = tpu.matmul %175, %177, %cst_112 {dimension_numbers = #tpu.dot_dimension_numbers<[1], [0], [0], [1], [0, 0, 1, 1], [], []>} : vector<16x32xf32>, vector<32x32xf32>, vector<16x32xf32> -> vector<16x32xf32>
    %193 = vector.broadcast %179 : vector<1x32xf32> to vector<16x32xf32>
    %194 = arith.addf %192, %193 : vector<16x32xf32>
    %cst_113 = arith.constant dense<0.000000e+00> : vector<32x32xf32>
    %195 = tpu.matmul %39, %181, %cst_113 {dimension_numbers = #tpu.dot_dimension_numbers<[1], [0], [0], [1], [0, 0, 1, 1], [], []>} : vector<32x32xf32>, vector<32x32xf32>, vector<32x32xf32> -> vector<32x32xf32>
    %196 = vector.broadcast %183 : vector<1x32xf32> to vector<32x32xf32>
    %197 = arith.addf %195, %196 : vector<32x32xf32>
    %cst_114 = arith.constant dense<0.000000e+00> : vector<32x32xf32>
    %198 = tpu.matmul %2, %185, %cst_114 {dimension_numbers = #tpu.dot_dimension_numbers<[1], [0], [0], [1], [0, 0, 1, 1], [], []>} : vector<32x32xf32>, vector<32x32xf32>, vector<32x32xf32> -> vector<32x32xf32>
    %199 = vector.broadcast %187 : vector<1x32xf32> to vector<32x32xf32>
    %200 = arith.addf %198, %199 : vector<32x32xf32>
    %cst_115 = arith.constant 0.000000e+00 : f32
    %201 = vector.broadcast %cst_115 : f32 to vector<16x32xf32>
    %202 = vector.broadcast %14 : vector<1x32xf32> to vector<16x32xf32>
    %203 = arith.mulf %194, %202 : vector<16x32xf32>
    %cst_116 = arith.constant dense<0.000000e+00> : vector<16x32xf32>
    %204 = tpu.matmul %203, %197, %cst_116 {dimension_numbers = #tpu.dot_dimension_numbers<[1], [1], [0], [0], [0, 0, 1, 0], [], []>} : vector<16x32xf32>, vector<32x32xf32>, vector<16x32xf32> -> vector<16x32xf32>
    %cst_117 = arith.constant 0.353553385 : f32
    %205 = vector.broadcast %cst_117 : f32 to vector<16x32xf32>
    %206 = arith.mulf %204, %205 : vector<16x32xf32>
    %207 = arith.addf %206, %5 : vector<16x32xf32>
    %cst_118 = arith.constant dense<0xFF800000> : vector<16xf32>
    %208 = vector.multi_reduction <maximumf>, %207, %cst_118 [1] : vector<16x32xf32> to vector<16xf32>
    %209 = vector.shape_cast %208 : vector<16xf32> to vector<16x1xf32>
    %210 = vector.broadcast %209 : vector<16x1xf32> to vector<16x32xf32>
    %211 = arith.subf %207, %210 : vector<16x32xf32>
    %212 = math.exp %211 : vector<16x32xf32>
    %cst_119 = arith.constant dense<0.000000e+00> : vector<16xf32>
    %213 = vector.multi_reduction <add>, %212, %cst_119 [1] : vector<16x32xf32> to vector<16xf32>
    %214 = vector.shape_cast %213 : vector<16xf32> to vector<16x1xf32>
    %215 = tpu.reciprocal %214 {approx = true} : vector<16x1xf32> -> vector<16x1xf32>
    %216 = vector.broadcast %215 : vector<16x1xf32> to vector<16x32xf32>
    %217 = arith.mulf %212, %216 : vector<16x32xf32>
    %218 = vector.broadcast %14 : vector<1x32xf32> to vector<32x32xf32>
    %219 = arith.mulf %200, %218 : vector<32x32xf32>
    %cst_120 = arith.constant dense<0.000000e+00> : vector<16x32xf32>
    %220 = tpu.matmul %217, %219, %cst_120 {dimension_numbers = #tpu.dot_dimension_numbers<[1], [0], [0], [1], [0, 0, 1, 1], [], []>} : vector<16x32xf32>, vector<32x32xf32>, vector<16x32xf32> -> vector<16x32xf32>
    %221 = arith.addf %201, %220 : vector<16x32xf32>
    %222 = vector.broadcast %22 : vector<1x32xf32> to vector<16x32xf32>
    %223 = arith.mulf %194, %222 : vector<16x32xf32>
    %cst_121 = arith.constant dense<0.000000e+00> : vector<16x32xf32>
    %224 = tpu.matmul %223, %197, %cst_121 {dimension_numbers = #tpu.dot_dimension_numbers<[1], [1], [0], [0], [0, 0, 1, 0], [], []>} : vector<16x32xf32>, vector<32x32xf32>, vector<16x32xf32> -> vector<16x32xf32>
    %cst_122 = arith.constant 0.353553385 : f32
    %225 = vector.broadcast %cst_122 : f32 to vector<16x32xf32>
    %226 = arith.mulf %224, %225 : vector<16x32xf32>
    %227 = arith.addf %226, %5 : vector<16x32xf32>
    %cst_123 = arith.constant dense<0xFF800000> : vector<16xf32>
    %228 = vector.multi_reduction <maximumf>, %227, %cst_123 [1] : vector<16x32xf32> to vector<16xf32>
    %229 = vector.shape_cast %228 : vector<16xf32> to vector<16x1xf32>
    %230 = vector.broadcast %229 : vector<16x1xf32> to vector<16x32xf32>
    %231 = arith.subf %227, %230 : vector<16x32xf32>
    %232 = math.exp %231 : vector<16x32xf32>
    %cst_124 = arith.constant dense<0.000000e+00> : vector<16xf32>
    %233 = vector.multi_reduction <add>, %232, %cst_124 [1] : vector<16x32xf32> to vector<16xf32>
    %234 = vector.shape_cast %233 : vector<16xf32> to vector<16x1xf32>
    %235 = tpu.reciprocal %234 {approx = true} : vector<16x1xf32> -> vector<16x1xf32>
    %236 = vector.broadcast %235 : vector<16x1xf32> to vector<16x32xf32>
    %237 = arith.mulf %232, %236 : vector<16x32xf32>
    %238 = vector.broadcast %22 : vector<1x32xf32> to vector<32x32xf32>
    %239 = arith.mulf %200, %238 : vector<32x32xf32>
    %cst_125 = arith.constant dense<0.000000e+00> : vector<16x32xf32>
    %240 = tpu.matmul %237, %239, %cst_125 {dimension_numbers = #tpu.dot_dimension_numbers<[1], [0], [0], [1], [0, 0, 1, 1], [], []>} : vector<16x32xf32>, vector<32x32xf32>, vector<16x32xf32> -> vector<16x32xf32>
    %241 = arith.addf %221, %240 : vector<16x32xf32>
    %242 = vector.broadcast %30 : vector<1x32xf32> to vector<16x32xf32>
    %243 = arith.mulf %194, %242 : vector<16x32xf32>
    %cst_126 = arith.constant dense<0.000000e+00> : vector<16x32xf32>
    %244 = tpu.matmul %243, %197, %cst_126 {dimension_numbers = #tpu.dot_dimension_numbers<[1], [1], [0], [0], [0, 0, 1, 0], [], []>} : vector<16x32xf32>, vector<32x32xf32>, vector<16x32xf32> -> vector<16x32xf32>
    %cst_127 = arith.constant 0.353553385 : f32
    %245 = vector.broadcast %cst_127 : f32 to vector<16x32xf32>
    %246 = arith.mulf %244, %245 : vector<16x32xf32>
    %247 = arith.addf %246, %5 : vector<16x32xf32>
    %cst_128 = arith.constant dense<0xFF800000> : vector<16xf32>
    %248 = vector.multi_reduction <maximumf>, %247, %cst_128 [1] : vector<16x32xf32> to vector<16xf32>
    %249 = vector.shape_cast %248 : vector<16xf32> to vector<16x1xf32>
    %250 = vector.broadcast %249 : vector<16x1xf32> to vector<16x32xf32>
    %251 = arith.subf %247, %250 : vector<16x32xf32>
    %252 = math.exp %251 : vector<16x32xf32>
    %cst_129 = arith.constant dense<0.000000e+00> : vector<16xf32>
    %253 = vector.multi_reduction <add>, %252, %cst_129 [1] : vector<16x32xf32> to vector<16xf32>
    %254 = vector.shape_cast %253 : vector<16xf32> to vector<16x1xf32>
    %255 = tpu.reciprocal %254 {approx = true} : vector<16x1xf32> -> vector<16x1xf32>
    %256 = vector.broadcast %255 : vector<16x1xf32> to vector<16x32xf32>
    %257 = arith.mulf %252, %256 : vector<16x32xf32>
    %258 = vector.broadcast %30 : vector<1x32xf32> to vector<32x32xf32>
    %259 = arith.mulf %200, %258 : vector<32x32xf32>
    %cst_130 = arith.constant dense<0.000000e+00> : vector<16x32xf32>
    %260 = tpu.matmul %257, %259, %cst_130 {dimension_numbers = #tpu.dot_dimension_numbers<[1], [0], [0], [1], [0, 0, 1, 1], [], []>} : vector<16x32xf32>, vector<32x32xf32>, vector<16x32xf32> -> vector<16x32xf32>
    %261 = arith.addf %241, %260 : vector<16x32xf32>
    %262 = vector.broadcast %38 : vector<1x32xf32> to vector<16x32xf32>
    %263 = arith.mulf %194, %262 : vector<16x32xf32>
    %cst_131 = arith.constant dense<0.000000e+00> : vector<16x32xf32>
    %264 = tpu.matmul %263, %197, %cst_131 {dimension_numbers = #tpu.dot_dimension_numbers<[1], [1], [0], [0], [0, 0, 1, 0], [], []>} : vector<16x32xf32>, vector<32x32xf32>, vector<16x32xf32> -> vector<16x32xf32>
    %cst_132 = arith.constant 0.353553385 : f32
    %265 = vector.broadcast %cst_132 : f32 to vector<16x32xf32>
    %266 = arith.mulf %264, %265 : vector<16x32xf32>
    %267 = arith.addf %266, %5 : vector<16x32xf32>
    %cst_133 = arith.constant dense<0xFF800000> : vector<16xf32>
    %268 = vector.multi_reduction <maximumf>, %267, %cst_133 [1] : vector<16x32xf32> to vector<16xf32>
    %269 = vector.shape_cast %268 : vector<16xf32> to vector<16x1xf32>
    %270 = vector.broadcast %269 : vector<16x1xf32> to vector<16x32xf32>
    %271 = arith.subf %267, %270 : vector<16x32xf32>
    %272 = math.exp %271 : vector<16x32xf32>
    %cst_134 = arith.constant dense<0.000000e+00> : vector<16xf32>
    %273 = vector.multi_reduction <add>, %272, %cst_134 [1] : vector<16x32xf32> to vector<16xf32>
    %274 = vector.shape_cast %273 : vector<16xf32> to vector<16x1xf32>
    %275 = tpu.reciprocal %274 {approx = true} : vector<16x1xf32> -> vector<16x1xf32>
    %276 = vector.broadcast %275 : vector<16x1xf32> to vector<16x32xf32>
    %277 = arith.mulf %272, %276 : vector<16x32xf32>
    %278 = vector.broadcast %38 : vector<1x32xf32> to vector<32x32xf32>
    %279 = arith.mulf %200, %278 : vector<32x32xf32>
    %cst_135 = arith.constant dense<0.000000e+00> : vector<16x32xf32>
    %280 = tpu.matmul %277, %279, %cst_135 {dimension_numbers = #tpu.dot_dimension_numbers<[1], [0], [0], [1], [0, 0, 1, 1], [], []>} : vector<16x32xf32>, vector<32x32xf32>, vector<16x32xf32> -> vector<16x32xf32>
    %281 = arith.addf %261, %280 : vector<16x32xf32>
    %cst_136 = arith.constant dense<0.000000e+00> : vector<16x32xf32>
    %282 = tpu.matmul %281, %189, %cst_136 {dimension_numbers = #tpu.dot_dimension_numbers<[1], [0], [0], [1], [0, 0, 1, 1], [], []>} : vector<16x32xf32>, vector<32x32xf32>, vector<16x32xf32> -> vector<16x32xf32>
    %283 = vector.broadcast %191 : vector<1x32xf32> to vector<16x32xf32>
    %284 = arith.addf %282, %283 : vector<16x32xf32>
    %285 = arith.addf %174, %284 : vector<16x32xf32>
    %c0_137 = arith.constant 0 : index
    %c1_138 = arith.constant 1 : index
    %c0_139 = arith.constant 0 : index
    %c0_140 = arith.constant 0 : index
    %286 = vector.load %arg20[%c0_137, %c1_138, %c0_139, %c0_140] : memref<2x3x1x32xf32, #tpu.memory_space<vmem>>, vector<1x1x1x32xf32>
    %287 = vector.shape_cast %286 : vector<1x1x1x32xf32> to vector<1x32xf32>
    %c0_141 = arith.constant 0 : index
    %c1_142 = arith.constant 1 : index
    %c0_143 = arith.constant 0 : index
    %c0_144 = arith.constant 0 : index
    %288 = vector.load %arg21[%c0_141, %c1_142, %c0_143, %c0_144] : memref<2x3x1x32xf32, #tpu.memory_space<vmem>>, vector<1x1x1x32xf32>
    %289 = vector.shape_cast %288 : vector<1x1x1x32xf32> to vector<1x32xf32>
    %cst_145 = arith.constant dense<0.000000e+00> : vector<16xf32>
    %290 = vector.multi_reduction <add>, %285, %cst_145 [1] : vector<16x32xf32> to vector<16xf32>
    %291 = vector.shape_cast %290 : vector<16xf32> to vector<16x1xf32>
    %cst_146 = arith.constant 3.200000e+01 : f32
    %292 = vector.broadcast %cst_146 : f32 to vector<16x1xf32>
    %293 = arith.divf %291, %292 : vector<16x1xf32>
    %294 = vector.broadcast %293 : vector<16x1xf32> to vector<16x32xf32>
    %295 = arith.subf %285, %294 : vector<16x32xf32>
    %296 = arith.mulf %295, %295 : vector<16x32xf32>
    %cst_147 = arith.constant dense<0.000000e+00> : vector<16xf32>
    %297 = vector.multi_reduction <add>, %296, %cst_147 [1] : vector<16x32xf32> to vector<16xf32>
    %298 = vector.shape_cast %297 : vector<16xf32> to vector<16x1xf32>
    %cst_148 = arith.constant 3.200000e+01 : f32
    %299 = vector.broadcast %cst_148 : f32 to vector<16x1xf32>
    %300 = arith.divf %298, %299 : vector<16x1xf32>
    %cst_149 = arith.constant 9.99999974E-6 : f32
    %301 = vector.broadcast %cst_149 : f32 to vector<16x1xf32>
    %302 = arith.addf %300, %301 : vector<16x1xf32>
    %303 = math.rsqrt %302 : vector<16x1xf32>
    %304 = vector.broadcast %303 : vector<16x1xf32> to vector<16x32xf32>
    %305 = arith.mulf %295, %304 : vector<16x32xf32>
    %306 = vector.broadcast %287 : vector<1x32xf32> to vector<16x32xf32>
    %307 = arith.mulf %305, %306 : vector<16x32xf32>
    %308 = vector.broadcast %289 : vector<1x32xf32> to vector<16x32xf32>
    %309 = arith.addf %307, %308 : vector<16x32xf32>
    %c0_150 = arith.constant 0 : index
    %c0_151 = arith.constant 0 : index
    %c0_152 = arith.constant 0 : index
    %310 = vector.load %arg16[%c0_150, %c0_151, %c0_152] : memref<2x32x64xf32, #tpu.memory_space<vmem>>, vector<1x32x64xf32>
    %311 = vector.shape_cast %310 : vector<1x32x64xf32> to vector<32x64xf32>
    %cst_153 = arith.constant dense<0.000000e+00> : vector<16x64xf32>
    %312 = tpu.matmul %309, %311, %cst_153 {dimension_numbers = #tpu.dot_dimension_numbers<[1], [0], [0], [1], [0, 0, 1, 1], [], []>} : vector<16x32xf32>, vector<32x64xf32>, vector<16x64xf32> -> vector<16x64xf32>
    %c0_154 = arith.constant 0 : index
    %c0_155 = arith.constant 0 : index
    %c0_156 = arith.constant 0 : index
    %313 = vector.load %arg17[%c0_154, %c0_155, %c0_156] : memref<2x1x64xf32, #tpu.memory_space<vmem>>, vector<1x1x64xf32>
    %314 = vector.shape_cast %313 : vector<1x1x64xf32> to vector<1x64xf32>
    %315 = vector.broadcast %314 : vector<1x64xf32> to vector<16x64xf32>
    %316 = arith.addf %312, %315 : vector<16x64xf32>
    %cst_157 = arith.constant 0.000000e+00 : f32
    %317 = vector.broadcast %cst_157 : f32 to vector<16x64xf32>
    %318 = arith.maximumf %316, %317 : vector<16x64xf32>
    %c0_158 = arith.constant 0 : index
    %c0_159 = arith.constant 0 : index
    %c0_160 = arith.constant 0 : index
    %319 = vector.load %arg18[%c0_158, %c0_159, %c0_160] : memref<2x64x32xf32, #tpu.memory_space<vmem>>, vector<1x64x32xf32>
    %320 = vector.shape_cast %319 : vector<1x64x32xf32> to vector<64x32xf32>
    %cst_161 = arith.constant dense<0.000000e+00> : vector<16x32xf32>
    %321 = tpu.matmul %318, %320, %cst_161 {dimension_numbers = #tpu.dot_dimension_numbers<[1], [0], [0], [1], [0, 0, 1, 1], [], []>} : vector<16x64xf32>, vector<64x32xf32>, vector<16x32xf32> -> vector<16x32xf32>
    %c0_162 = arith.constant 0 : index
    %c0_163 = arith.constant 0 : index
    %c0_164 = arith.constant 0 : index
    %322 = vector.load %arg19[%c0_162, %c0_163, %c0_164] : memref<2x1x32xf32, #tpu.memory_space<vmem>>, vector<1x1x32xf32>
    %323 = vector.shape_cast %322 : vector<1x1x32xf32> to vector<1x32xf32>
    %324 = vector.broadcast %323 : vector<1x32xf32> to vector<16x32xf32>
    %325 = arith.addf %321, %324 : vector<16x32xf32>
    %326 = arith.addf %309, %325 : vector<16x32xf32>
    %c0_165 = arith.constant 0 : index
    %c2_166 = arith.constant 2 : index
    %c0_167 = arith.constant 0 : index
    %c0_168 = arith.constant 0 : index
    %327 = vector.load %arg20[%c0_165, %c2_166, %c0_167, %c0_168] : memref<2x3x1x32xf32, #tpu.memory_space<vmem>>, vector<1x1x1x32xf32>
    %328 = vector.shape_cast %327 : vector<1x1x1x32xf32> to vector<1x32xf32>
    %c0_169 = arith.constant 0 : index
    %c2_170 = arith.constant 2 : index
    %c0_171 = arith.constant 0 : index
    %c0_172 = arith.constant 0 : index
    %329 = vector.load %arg21[%c0_169, %c2_170, %c0_171, %c0_172] : memref<2x3x1x32xf32, #tpu.memory_space<vmem>>, vector<1x1x1x32xf32>
    %330 = vector.shape_cast %329 : vector<1x1x1x32xf32> to vector<1x32xf32>
    %cst_173 = arith.constant dense<0.000000e+00> : vector<16xf32>
    %331 = vector.multi_reduction <add>, %326, %cst_173 [1] : vector<16x32xf32> to vector<16xf32>
    %332 = vector.shape_cast %331 : vector<16xf32> to vector<16x1xf32>
    %cst_174 = arith.constant 3.200000e+01 : f32
    %333 = vector.broadcast %cst_174 : f32 to vector<16x1xf32>
    %334 = arith.divf %332, %333 : vector<16x1xf32>
    %335 = vector.broadcast %334 : vector<16x1xf32> to vector<16x32xf32>
    %336 = arith.subf %326, %335 : vector<16x32xf32>
    %337 = arith.mulf %336, %336 : vector<16x32xf32>
    %cst_175 = arith.constant dense<0.000000e+00> : vector<16xf32>
    %338 = vector.multi_reduction <add>, %337, %cst_175 [1] : vector<16x32xf32> to vector<16xf32>
    %339 = vector.shape_cast %338 : vector<16xf32> to vector<16x1xf32>
    %cst_176 = arith.constant 3.200000e+01 : f32
    %340 = vector.broadcast %cst_176 : f32 to vector<16x1xf32>
    %341 = arith.divf %339, %340 : vector<16x1xf32>
    %cst_177 = arith.constant 9.99999974E-6 : f32
    %342 = vector.broadcast %cst_177 : f32 to vector<16x1xf32>
    %343 = arith.addf %341, %342 : vector<16x1xf32>
    %344 = math.rsqrt %343 : vector<16x1xf32>
    %345 = vector.broadcast %344 : vector<16x1xf32> to vector<16x32xf32>
    %346 = arith.mulf %336, %345 : vector<16x32xf32>
    %347 = vector.broadcast %328 : vector<1x32xf32> to vector<16x32xf32>
    %348 = arith.mulf %346, %347 : vector<16x32xf32>
    %349 = vector.broadcast %330 : vector<1x32xf32> to vector<16x32xf32>
    %350 = arith.addf %348, %349 : vector<16x32xf32>
    %351 = arith.addf %350, %1 : vector<16x32xf32>
    %c1_178 = arith.constant 1 : index
    %c0_179 = arith.constant 0 : index
    %c0_180 = arith.constant 0 : index
    %352 = vector.load %arg6[%c1_178, %c0_179, %c0_180] : memref<2x32x32xf32, #tpu.memory_space<vmem>>, vector<1x32x32xf32>
    %353 = vector.shape_cast %352 : vector<1x32x32xf32> to vector<32x32xf32>
    %c1_181 = arith.constant 1 : index
    %c0_182 = arith.constant 0 : index
    %c0_183 = arith.constant 0 : index
    %c0_184 = arith.constant 0 : index
    %354 = vector.load %arg10[%c1_181, %c0_182, %c0_183, %c0_184] : memref<2x4x1x32xf32, #tpu.memory_space<vmem>>, vector<1x1x1x32xf32>
    %355 = vector.shape_cast %354 : vector<1x1x1x32xf32> to vector<1x32xf32>
    %c1_185 = arith.constant 1 : index
    %c0_186 = arith.constant 0 : index
    %c0_187 = arith.constant 0 : index
    %356 = vector.load %arg7[%c1_185, %c0_186, %c0_187] : memref<2x32x32xf32, #tpu.memory_space<vmem>>, vector<1x32x32xf32>
    %357 = vector.shape_cast %356 : vector<1x32x32xf32> to vector<32x32xf32>
    %c1_188 = arith.constant 1 : index
    %c1_189 = arith.constant 1 : index
    %c0_190 = arith.constant 0 : index
    %c0_191 = arith.constant 0 : index
    %358 = vector.load %arg10[%c1_188, %c1_189, %c0_190, %c0_191] : memref<2x4x1x32xf32, #tpu.memory_space<vmem>>, vector<1x1x1x32xf32>
    %359 = vector.shape_cast %358 : vector<1x1x1x32xf32> to vector<1x32xf32>
    %c1_192 = arith.constant 1 : index
    %c0_193 = arith.constant 0 : index
    %c0_194 = arith.constant 0 : index
    %360 = vector.load %arg8[%c1_192, %c0_193, %c0_194] : memref<2x32x32xf32, #tpu.memory_space<vmem>>, vector<1x32x32xf32>
    %361 = vector.shape_cast %360 : vector<1x32x32xf32> to vector<32x32xf32>
    %c1_195 = arith.constant 1 : index
    %c2_196 = arith.constant 2 : index
    %c0_197 = arith.constant 0 : index
    %c0_198 = arith.constant 0 : index
    %362 = vector.load %arg10[%c1_195, %c2_196, %c0_197, %c0_198] : memref<2x4x1x32xf32, #tpu.memory_space<vmem>>, vector<1x1x1x32xf32>
    %363 = vector.shape_cast %362 : vector<1x1x1x32xf32> to vector<1x32xf32>
    %c1_199 = arith.constant 1 : index
    %c0_200 = arith.constant 0 : index
    %c0_201 = arith.constant 0 : index
    %364 = vector.load %arg9[%c1_199, %c0_200, %c0_201] : memref<2x32x32xf32, #tpu.memory_space<vmem>>, vector<1x32x32xf32>
    %365 = vector.shape_cast %364 : vector<1x32x32xf32> to vector<32x32xf32>
    %c1_202 = arith.constant 1 : index
    %c3_203 = arith.constant 3 : index
    %c0_204 = arith.constant 0 : index
    %c0_205 = arith.constant 0 : index
    %366 = vector.load %arg10[%c1_202, %c3_203, %c0_204, %c0_205] : memref<2x4x1x32xf32, #tpu.memory_space<vmem>>, vector<1x1x1x32xf32>
    %367 = vector.shape_cast %366 : vector<1x1x1x32xf32> to vector<1x32xf32>
    %cst_206 = arith.constant dense<0.000000e+00> : vector<16x32xf32>
    %368 = tpu.matmul %351, %353, %cst_206 {dimension_numbers = #tpu.dot_dimension_numbers<[1], [0], [0], [1], [0, 0, 1, 1], [], []>} : vector<16x32xf32>, vector<32x32xf32>, vector<16x32xf32> -> vector<16x32xf32>
    %369 = vector.broadcast %355 : vector<1x32xf32> to vector<16x32xf32>
    %370 = arith.addf %368, %369 : vector<16x32xf32>
    %cst_207 = arith.constant dense<0.000000e+00> : vector<16x32xf32>
    %371 = tpu.matmul %351, %357, %cst_207 {dimension_numbers = #tpu.dot_dimension_numbers<[1], [0], [0], [1], [0, 0, 1, 1], [], []>} : vector<16x32xf32>, vector<32x32xf32>, vector<16x32xf32> -> vector<16x32xf32>
    %372 = vector.broadcast %359 : vector<1x32xf32> to vector<16x32xf32>
    %373 = arith.addf %371, %372 : vector<16x32xf32>
    %cst_208 = arith.constant dense<0.000000e+00> : vector<16x32xf32>
    %374 = tpu.matmul %350, %361, %cst_208 {dimension_numbers = #tpu.dot_dimension_numbers<[1], [0], [0], [1], [0, 0, 1, 1], [], []>} : vector<16x32xf32>, vector<32x32xf32>, vector<16x32xf32> -> vector<16x32xf32>
    %375 = vector.broadcast %363 : vector<1x32xf32> to vector<16x32xf32>
    %376 = arith.addf %374, %375 : vector<16x32xf32>
    %cst_209 = arith.constant 0.000000e+00 : f32
    %377 = vector.broadcast %cst_209 : f32 to vector<16x32xf32>
    %378 = vector.broadcast %14 : vector<1x32xf32> to vector<16x32xf32>
    %379 = arith.mulf %370, %378 : vector<16x32xf32>
    %cst_210 = arith.constant dense<0.000000e+00> : vector<16x16xf32>
    %380 = tpu.matmul %379, %373, %cst_210 {dimension_numbers = #tpu.dot_dimension_numbers<[1], [1], [0], [0], [0, 0, 1, 0], [], []>} : vector<16x32xf32>, vector<16x32xf32>, vector<16x16xf32> -> vector<16x16xf32>
    %cst_211 = arith.constant 0.353553385 : f32
    %381 = vector.broadcast %cst_211 : f32 to vector<16x16xf32>
    %382 = arith.mulf %380, %381 : vector<16x16xf32>
    %383 = arith.addf %382, %4 : vector<16x16xf32>
    %cst_212 = arith.constant dense<0xFF800000> : vector<16xf32>
    %384 = vector.multi_reduction <maximumf>, %383, %cst_212 [1] : vector<16x16xf32> to vector<16xf32>
    %385 = vector.shape_cast %384 : vector<16xf32> to vector<16x1xf32>
    %386 = vector.broadcast %385 : vector<16x1xf32> to vector<16x16xf32>
    %387 = arith.subf %383, %386 : vector<16x16xf32>
    %388 = math.exp %387 : vector<16x16xf32>
    %cst_213 = arith.constant dense<0.000000e+00> : vector<16xf32>
    %389 = vector.multi_reduction <add>, %388, %cst_213 [1] : vector<16x16xf32> to vector<16xf32>
    %390 = vector.shape_cast %389 : vector<16xf32> to vector<16x1xf32>
    %391 = tpu.reciprocal %390 {approx = true} : vector<16x1xf32> -> vector<16x1xf32>
    %392 = vector.broadcast %391 : vector<16x1xf32> to vector<16x16xf32>
    %393 = arith.mulf %388, %392 : vector<16x16xf32>
    %394 = vector.broadcast %14 : vector<1x32xf32> to vector<16x32xf32>
    %395 = arith.mulf %376, %394 : vector<16x32xf32>
    %cst_214 = arith.constant dense<0.000000e+00> : vector<16x32xf32>
    %396 = tpu.matmul %393, %395, %cst_214 {dimension_numbers = #tpu.dot_dimension_numbers<[1], [0], [0], [1], [0, 0, 1, 1], [], []>} : vector<16x16xf32>, vector<16x32xf32>, vector<16x32xf32> -> vector<16x32xf32>
    %397 = arith.addf %377, %396 : vector<16x32xf32>
    %398 = vector.broadcast %22 : vector<1x32xf32> to vector<16x32xf32>
    %399 = arith.mulf %370, %398 : vector<16x32xf32>
    %cst_215 = arith.constant dense<0.000000e+00> : vector<16x16xf32>
    %400 = tpu.matmul %399, %373, %cst_215 {dimension_numbers = #tpu.dot_dimension_numbers<[1], [1], [0], [0], [0, 0, 1, 0], [], []>} : vector<16x32xf32>, vector<16x32xf32>, vector<16x16xf32> -> vector<16x16xf32>
    %cst_216 = arith.constant 0.353553385 : f32
    %401 = vector.broadcast %cst_216 : f32 to vector<16x16xf32>
    %402 = arith.mulf %400, %401 : vector<16x16xf32>
    %403 = arith.addf %402, %4 : vector<16x16xf32>
    %cst_217 = arith.constant dense<0xFF800000> : vector<16xf32>
    %404 = vector.multi_reduction <maximumf>, %403, %cst_217 [1] : vector<16x16xf32> to vector<16xf32>
    %405 = vector.shape_cast %404 : vector<16xf32> to vector<16x1xf32>
    %406 = vector.broadcast %405 : vector<16x1xf32> to vector<16x16xf32>
    %407 = arith.subf %403, %406 : vector<16x16xf32>
    %408 = math.exp %407 : vector<16x16xf32>
    %cst_218 = arith.constant dense<0.000000e+00> : vector<16xf32>
    %409 = vector.multi_reduction <add>, %408, %cst_218 [1] : vector<16x16xf32> to vector<16xf32>
    %410 = vector.shape_cast %409 : vector<16xf32> to vector<16x1xf32>
    %411 = tpu.reciprocal %410 {approx = true} : vector<16x1xf32> -> vector<16x1xf32>
    %412 = vector.broadcast %411 : vector<16x1xf32> to vector<16x16xf32>
    %413 = arith.mulf %408, %412 : vector<16x16xf32>
    %414 = vector.broadcast %22 : vector<1x32xf32> to vector<16x32xf32>
    %415 = arith.mulf %376, %414 : vector<16x32xf32>
    %cst_219 = arith.constant dense<0.000000e+00> : vector<16x32xf32>
    %416 = tpu.matmul %413, %415, %cst_219 {dimension_numbers = #tpu.dot_dimension_numbers<[1], [0], [0], [1], [0, 0, 1, 1], [], []>} : vector<16x16xf32>, vector<16x32xf32>, vector<16x32xf32> -> vector<16x32xf32>
    %417 = arith.addf %397, %416 : vector<16x32xf32>
    %418 = vector.broadcast %30 : vector<1x32xf32> to vector<16x32xf32>
    %419 = arith.mulf %370, %418 : vector<16x32xf32>
    %cst_220 = arith.constant dense<0.000000e+00> : vector<16x16xf32>
    %420 = tpu.matmul %419, %373, %cst_220 {dimension_numbers = #tpu.dot_dimension_numbers<[1], [1], [0], [0], [0, 0, 1, 0], [], []>} : vector<16x32xf32>, vector<16x32xf32>, vector<16x16xf32> -> vector<16x16xf32>
    %cst_221 = arith.constant 0.353553385 : f32
    %421 = vector.broadcast %cst_221 : f32 to vector<16x16xf32>
    %422 = arith.mulf %420, %421 : vector<16x16xf32>
    %423 = arith.addf %422, %4 : vector<16x16xf32>
    %cst_222 = arith.constant dense<0xFF800000> : vector<16xf32>
    %424 = vector.multi_reduction <maximumf>, %423, %cst_222 [1] : vector<16x16xf32> to vector<16xf32>
    %425 = vector.shape_cast %424 : vector<16xf32> to vector<16x1xf32>
    %426 = vector.broadcast %425 : vector<16x1xf32> to vector<16x16xf32>
    %427 = arith.subf %423, %426 : vector<16x16xf32>
    %428 = math.exp %427 : vector<16x16xf32>
    %cst_223 = arith.constant dense<0.000000e+00> : vector<16xf32>
    %429 = vector.multi_reduction <add>, %428, %cst_223 [1] : vector<16x16xf32> to vector<16xf32>
    %430 = vector.shape_cast %429 : vector<16xf32> to vector<16x1xf32>
    %431 = tpu.reciprocal %430 {approx = true} : vector<16x1xf32> -> vector<16x1xf32>
    %432 = vector.broadcast %431 : vector<16x1xf32> to vector<16x16xf32>
    %433 = arith.mulf %428, %432 : vector<16x16xf32>
    %434 = vector.broadcast %30 : vector<1x32xf32> to vector<16x32xf32>
    %435 = arith.mulf %376, %434 : vector<16x32xf32>
    %cst_224 = arith.constant dense<0.000000e+00> : vector<16x32xf32>
    %436 = tpu.matmul %433, %435, %cst_224 {dimension_numbers = #tpu.dot_dimension_numbers<[1], [0], [0], [1], [0, 0, 1, 1], [], []>} : vector<16x16xf32>, vector<16x32xf32>, vector<16x32xf32> -> vector<16x32xf32>
    %437 = arith.addf %417, %436 : vector<16x32xf32>
    %438 = vector.broadcast %38 : vector<1x32xf32> to vector<16x32xf32>
    %439 = arith.mulf %370, %438 : vector<16x32xf32>
    %cst_225 = arith.constant dense<0.000000e+00> : vector<16x16xf32>
    %440 = tpu.matmul %439, %373, %cst_225 {dimension_numbers = #tpu.dot_dimension_numbers<[1], [1], [0], [0], [0, 0, 1, 0], [], []>} : vector<16x32xf32>, vector<16x32xf32>, vector<16x16xf32> -> vector<16x16xf32>
    %cst_226 = arith.constant 0.353553385 : f32
    %441 = vector.broadcast %cst_226 : f32 to vector<16x16xf32>
    %442 = arith.mulf %440, %441 : vector<16x16xf32>
    %443 = arith.addf %442, %4 : vector<16x16xf32>
    %cst_227 = arith.constant dense<0xFF800000> : vector<16xf32>
    %444 = vector.multi_reduction <maximumf>, %443, %cst_227 [1] : vector<16x16xf32> to vector<16xf32>
    %445 = vector.shape_cast %444 : vector<16xf32> to vector<16x1xf32>
    %446 = vector.broadcast %445 : vector<16x1xf32> to vector<16x16xf32>
    %447 = arith.subf %443, %446 : vector<16x16xf32>
    %448 = math.exp %447 : vector<16x16xf32>
    %cst_228 = arith.constant dense<0.000000e+00> : vector<16xf32>
    %449 = vector.multi_reduction <add>, %448, %cst_228 [1] : vector<16x16xf32> to vector<16xf32>
    %450 = vector.shape_cast %449 : vector<16xf32> to vector<16x1xf32>
    %451 = tpu.reciprocal %450 {approx = true} : vector<16x1xf32> -> vector<16x1xf32>
    %452 = vector.broadcast %451 : vector<16x1xf32> to vector<16x16xf32>
    %453 = arith.mulf %448, %452 : vector<16x16xf32>
    %454 = vector.broadcast %38 : vector<1x32xf32> to vector<16x32xf32>
    %455 = arith.mulf %376, %454 : vector<16x32xf32>
    %cst_229 = arith.constant dense<0.000000e+00> : vector<16x32xf32>
    %456 = tpu.matmul %453, %455, %cst_229 {dimension_numbers = #tpu.dot_dimension_numbers<[1], [0], [0], [1], [0, 0, 1, 1], [], []>} : vector<16x16xf32>, vector<16x32xf32>, vector<16x32xf32> -> vector<16x32xf32>
    %457 = arith.addf %437, %456 : vector<16x32xf32>
    %cst_230 = arith.constant dense<0.000000e+00> : vector<16x32xf32>
    %458 = tpu.matmul %457, %365, %cst_230 {dimension_numbers = #tpu.dot_dimension_numbers<[1], [0], [0], [1], [0, 0, 1, 1], [], []>} : vector<16x32xf32>, vector<32x32xf32>, vector<16x32xf32> -> vector<16x32xf32>
    %459 = vector.broadcast %367 : vector<1x32xf32> to vector<16x32xf32>
    %460 = arith.addf %458, %459 : vector<16x32xf32>
    %461 = arith.addf %350, %460 : vector<16x32xf32>
    %c1_231 = arith.constant 1 : index
    %c0_232 = arith.constant 0 : index
    %c0_233 = arith.constant 0 : index
    %c0_234 = arith.constant 0 : index
    %462 = vector.load %arg20[%c1_231, %c0_232, %c0_233, %c0_234] : memref<2x3x1x32xf32, #tpu.memory_space<vmem>>, vector<1x1x1x32xf32>
    %463 = vector.shape_cast %462 : vector<1x1x1x32xf32> to vector<1x32xf32>
    %c1_235 = arith.constant 1 : index
    %c0_236 = arith.constant 0 : index
    %c0_237 = arith.constant 0 : index
    %c0_238 = arith.constant 0 : index
    %464 = vector.load %arg21[%c1_235, %c0_236, %c0_237, %c0_238] : memref<2x3x1x32xf32, #tpu.memory_space<vmem>>, vector<1x1x1x32xf32>
    %465 = vector.shape_cast %464 : vector<1x1x1x32xf32> to vector<1x32xf32>
    %cst_239 = arith.constant dense<0.000000e+00> : vector<16xf32>
    %466 = vector.multi_reduction <add>, %461, %cst_239 [1] : vector<16x32xf32> to vector<16xf32>
    %467 = vector.shape_cast %466 : vector<16xf32> to vector<16x1xf32>
    %cst_240 = arith.constant 3.200000e+01 : f32
    %468 = vector.broadcast %cst_240 : f32 to vector<16x1xf32>
    %469 = arith.divf %467, %468 : vector<16x1xf32>
    %470 = vector.broadcast %469 : vector<16x1xf32> to vector<16x32xf32>
    %471 = arith.subf %461, %470 : vector<16x32xf32>
    %472 = arith.mulf %471, %471 : vector<16x32xf32>
    %cst_241 = arith.constant dense<0.000000e+00> : vector<16xf32>
    %473 = vector.multi_reduction <add>, %472, %cst_241 [1] : vector<16x32xf32> to vector<16xf32>
    %474 = vector.shape_cast %473 : vector<16xf32> to vector<16x1xf32>
    %cst_242 = arith.constant 3.200000e+01 : f32
    %475 = vector.broadcast %cst_242 : f32 to vector<16x1xf32>
    %476 = arith.divf %474, %475 : vector<16x1xf32>
    %cst_243 = arith.constant 9.99999974E-6 : f32
    %477 = vector.broadcast %cst_243 : f32 to vector<16x1xf32>
    %478 = arith.addf %476, %477 : vector<16x1xf32>
    %479 = math.rsqrt %478 : vector<16x1xf32>
    %480 = vector.broadcast %479 : vector<16x1xf32> to vector<16x32xf32>
    %481 = arith.mulf %471, %480 : vector<16x32xf32>
    %482 = vector.broadcast %463 : vector<1x32xf32> to vector<16x32xf32>
    %483 = arith.mulf %481, %482 : vector<16x32xf32>
    %484 = vector.broadcast %465 : vector<1x32xf32> to vector<16x32xf32>
    %485 = arith.addf %483, %484 : vector<16x32xf32>
    %486 = arith.addf %485, %1 : vector<16x32xf32>
    %c1_244 = arith.constant 1 : index
    %c0_245 = arith.constant 0 : index
    %c0_246 = arith.constant 0 : index
    %487 = vector.load %arg11[%c1_244, %c0_245, %c0_246] : memref<2x32x32xf32, #tpu.memory_space<vmem>>, vector<1x32x32xf32>
    %488 = vector.shape_cast %487 : vector<1x32x32xf32> to vector<32x32xf32>
    %c1_247 = arith.constant 1 : index
    %c0_248 = arith.constant 0 : index
    %c0_249 = arith.constant 0 : index
    %c0_250 = arith.constant 0 : index
    %489 = vector.load %arg15[%c1_247, %c0_248, %c0_249, %c0_250] : memref<2x4x1x32xf32, #tpu.memory_space<vmem>>, vector<1x1x1x32xf32>
    %490 = vector.shape_cast %489 : vector<1x1x1x32xf32> to vector<1x32xf32>
    %c1_251 = arith.constant 1 : index
    %c0_252 = arith.constant 0 : index
    %c0_253 = arith.constant 0 : index
    %491 = vector.load %arg12[%c1_251, %c0_252, %c0_253] : memref<2x32x32xf32, #tpu.memory_space<vmem>>, vector<1x32x32xf32>
    %492 = vector.shape_cast %491 : vector<1x32x32xf32> to vector<32x32xf32>
    %c1_254 = arith.constant 1 : index
    %c1_255 = arith.constant 1 : index
    %c0_256 = arith.constant 0 : index
    %c0_257 = arith.constant 0 : index
    %493 = vector.load %arg15[%c1_254, %c1_255, %c0_256, %c0_257] : memref<2x4x1x32xf32, #tpu.memory_space<vmem>>, vector<1x1x1x32xf32>
    %494 = vector.shape_cast %493 : vector<1x1x1x32xf32> to vector<1x32xf32>
    %c1_258 = arith.constant 1 : index
    %c0_259 = arith.constant 0 : index
    %c0_260 = arith.constant 0 : index
    %495 = vector.load %arg13[%c1_258, %c0_259, %c0_260] : memref<2x32x32xf32, #tpu.memory_space<vmem>>, vector<1x32x32xf32>
    %496 = vector.shape_cast %495 : vector<1x32x32xf32> to vector<32x32xf32>
    %c1_261 = arith.constant 1 : index
    %c2_262 = arith.constant 2 : index
    %c0_263 = arith.constant 0 : index
    %c0_264 = arith.constant 0 : index
    %497 = vector.load %arg15[%c1_261, %c2_262, %c0_263, %c0_264] : memref<2x4x1x32xf32, #tpu.memory_space<vmem>>, vector<1x1x1x32xf32>
    %498 = vector.shape_cast %497 : vector<1x1x1x32xf32> to vector<1x32xf32>
    %c1_265 = arith.constant 1 : index
    %c0_266 = arith.constant 0 : index
    %c0_267 = arith.constant 0 : index
    %499 = vector.load %arg14[%c1_265, %c0_266, %c0_267] : memref<2x32x32xf32, #tpu.memory_space<vmem>>, vector<1x32x32xf32>
    %500 = vector.shape_cast %499 : vector<1x32x32xf32> to vector<32x32xf32>
    %c1_268 = arith.constant 1 : index
    %c3_269 = arith.constant 3 : index
    %c0_270 = arith.constant 0 : index
    %c0_271 = arith.constant 0 : index
    %501 = vector.load %arg15[%c1_268, %c3_269, %c0_270, %c0_271] : memref<2x4x1x32xf32, #tpu.memory_space<vmem>>, vector<1x1x1x32xf32>
    %502 = vector.shape_cast %501 : vector<1x1x1x32xf32> to vector<1x32xf32>
    %cst_272 = arith.constant dense<0.000000e+00> : vector<16x32xf32>
    %503 = tpu.matmul %486, %488, %cst_272 {dimension_numbers = #tpu.dot_dimension_numbers<[1], [0], [0], [1], [0, 0, 1, 1], [], []>} : vector<16x32xf32>, vector<32x32xf32>, vector<16x32xf32> -> vector<16x32xf32>
    %504 = vector.broadcast %490 : vector<1x32xf32> to vector<16x32xf32>
    %505 = arith.addf %503, %504 : vector<16x32xf32>
    %cst_273 = arith.constant dense<0.000000e+00> : vector<32x32xf32>
    %506 = tpu.matmul %39, %492, %cst_273 {dimension_numbers = #tpu.dot_dimension_numbers<[1], [0], [0], [1], [0, 0, 1, 1], [], []>} : vector<32x32xf32>, vector<32x32xf32>, vector<32x32xf32> -> vector<32x32xf32>
    %507 = vector.broadcast %494 : vector<1x32xf32> to vector<32x32xf32>
    %508 = arith.addf %506, %507 : vector<32x32xf32>
    %cst_274 = arith.constant dense<0.000000e+00> : vector<32x32xf32>
    %509 = tpu.matmul %2, %496, %cst_274 {dimension_numbers = #tpu.dot_dimension_numbers<[1], [0], [0], [1], [0, 0, 1, 1], [], []>} : vector<32x32xf32>, vector<32x32xf32>, vector<32x32xf32> -> vector<32x32xf32>
    %510 = vector.broadcast %498 : vector<1x32xf32> to vector<32x32xf32>
    %511 = arith.addf %509, %510 : vector<32x32xf32>
    %cst_275 = arith.constant 0.000000e+00 : f32
    %512 = vector.broadcast %cst_275 : f32 to vector<16x32xf32>
    %513 = vector.broadcast %14 : vector<1x32xf32> to vector<16x32xf32>
    %514 = arith.mulf %505, %513 : vector<16x32xf32>
    %cst_276 = arith.constant dense<0.000000e+00> : vector<16x32xf32>
    %515 = tpu.matmul %514, %508, %cst_276 {dimension_numbers = #tpu.dot_dimension_numbers<[1], [1], [0], [0], [0, 0, 1, 0], [], []>} : vector<16x32xf32>, vector<32x32xf32>, vector<16x32xf32> -> vector<16x32xf32>
    %cst_277 = arith.constant 0.353553385 : f32
    %516 = vector.broadcast %cst_277 : f32 to vector<16x32xf32>
    %517 = arith.mulf %515, %516 : vector<16x32xf32>
    %518 = arith.addf %517, %5 : vector<16x32xf32>
    %cst_278 = arith.constant dense<0xFF800000> : vector<16xf32>
    %519 = vector.multi_reduction <maximumf>, %518, %cst_278 [1] : vector<16x32xf32> to vector<16xf32>
    %520 = vector.shape_cast %519 : vector<16xf32> to vector<16x1xf32>
    %521 = vector.broadcast %520 : vector<16x1xf32> to vector<16x32xf32>
    %522 = arith.subf %518, %521 : vector<16x32xf32>
    %523 = math.exp %522 : vector<16x32xf32>
    %cst_279 = arith.constant dense<0.000000e+00> : vector<16xf32>
    %524 = vector.multi_reduction <add>, %523, %cst_279 [1] : vector<16x32xf32> to vector<16xf32>
    %525 = vector.shape_cast %524 : vector<16xf32> to vector<16x1xf32>
    %526 = tpu.reciprocal %525 {approx = true} : vector<16x1xf32> -> vector<16x1xf32>
    %527 = vector.broadcast %526 : vector<16x1xf32> to vector<16x32xf32>
    %528 = arith.mulf %523, %527 : vector<16x32xf32>
    %529 = vector.broadcast %14 : vector<1x32xf32> to vector<32x32xf32>
    %530 = arith.mulf %511, %529 : vector<32x32xf32>
    %cst_280 = arith.constant dense<0.000000e+00> : vector<16x32xf32>
    %531 = tpu.matmul %528, %530, %cst_280 {dimension_numbers = #tpu.dot_dimension_numbers<[1], [0], [0], [1], [0, 0, 1, 1], [], []>} : vector<16x32xf32>, vector<32x32xf32>, vector<16x32xf32> -> vector<16x32xf32>
    %532 = arith.addf %512, %531 : vector<16x32xf32>
    %533 = vector.broadcast %22 : vector<1x32xf32> to vector<16x32xf32>
    %534 = arith.mulf %505, %533 : vector<16x32xf32>
    %cst_281 = arith.constant dense<0.000000e+00> : vector<16x32xf32>
    %535 = tpu.matmul %534, %508, %cst_281 {dimension_numbers = #tpu.dot_dimension_numbers<[1], [1], [0], [0], [0, 0, 1, 0], [], []>} : vector<16x32xf32>, vector<32x32xf32>, vector<16x32xf32> -> vector<16x32xf32>
    %cst_282 = arith.constant 0.353553385 : f32
    %536 = vector.broadcast %cst_282 : f32 to vector<16x32xf32>
    %537 = arith.mulf %535, %536 : vector<16x32xf32>
    %538 = arith.addf %537, %5 : vector<16x32xf32>
    %cst_283 = arith.constant dense<0xFF800000> : vector<16xf32>
    %539 = vector.multi_reduction <maximumf>, %538, %cst_283 [1] : vector<16x32xf32> to vector<16xf32>
    %540 = vector.shape_cast %539 : vector<16xf32> to vector<16x1xf32>
    %541 = vector.broadcast %540 : vector<16x1xf32> to vector<16x32xf32>
    %542 = arith.subf %538, %541 : vector<16x32xf32>
    %543 = math.exp %542 : vector<16x32xf32>
    %cst_284 = arith.constant dense<0.000000e+00> : vector<16xf32>
    %544 = vector.multi_reduction <add>, %543, %cst_284 [1] : vector<16x32xf32> to vector<16xf32>
    %545 = vector.shape_cast %544 : vector<16xf32> to vector<16x1xf32>
    %546 = tpu.reciprocal %545 {approx = true} : vector<16x1xf32> -> vector<16x1xf32>
    %547 = vector.broadcast %546 : vector<16x1xf32> to vector<16x32xf32>
    %548 = arith.mulf %543, %547 : vector<16x32xf32>
    %549 = vector.broadcast %22 : vector<1x32xf32> to vector<32x32xf32>
    %550 = arith.mulf %511, %549 : vector<32x32xf32>
    %cst_285 = arith.constant dense<0.000000e+00> : vector<16x32xf32>
    %551 = tpu.matmul %548, %550, %cst_285 {dimension_numbers = #tpu.dot_dimension_numbers<[1], [0], [0], [1], [0, 0, 1, 1], [], []>} : vector<16x32xf32>, vector<32x32xf32>, vector<16x32xf32> -> vector<16x32xf32>
    %552 = arith.addf %532, %551 : vector<16x32xf32>
    %553 = vector.broadcast %30 : vector<1x32xf32> to vector<16x32xf32>
    %554 = arith.mulf %505, %553 : vector<16x32xf32>
    %cst_286 = arith.constant dense<0.000000e+00> : vector<16x32xf32>
    %555 = tpu.matmul %554, %508, %cst_286 {dimension_numbers = #tpu.dot_dimension_numbers<[1], [1], [0], [0], [0, 0, 1, 0], [], []>} : vector<16x32xf32>, vector<32x32xf32>, vector<16x32xf32> -> vector<16x32xf32>
    %cst_287 = arith.constant 0.353553385 : f32
    %556 = vector.broadcast %cst_287 : f32 to vector<16x32xf32>
    %557 = arith.mulf %555, %556 : vector<16x32xf32>
    %558 = arith.addf %557, %5 : vector<16x32xf32>
    %cst_288 = arith.constant dense<0xFF800000> : vector<16xf32>
    %559 = vector.multi_reduction <maximumf>, %558, %cst_288 [1] : vector<16x32xf32> to vector<16xf32>
    %560 = vector.shape_cast %559 : vector<16xf32> to vector<16x1xf32>
    %561 = vector.broadcast %560 : vector<16x1xf32> to vector<16x32xf32>
    %562 = arith.subf %558, %561 : vector<16x32xf32>
    %563 = math.exp %562 : vector<16x32xf32>
    %cst_289 = arith.constant dense<0.000000e+00> : vector<16xf32>
    %564 = vector.multi_reduction <add>, %563, %cst_289 [1] : vector<16x32xf32> to vector<16xf32>
    %565 = vector.shape_cast %564 : vector<16xf32> to vector<16x1xf32>
    %566 = tpu.reciprocal %565 {approx = true} : vector<16x1xf32> -> vector<16x1xf32>
    %567 = vector.broadcast %566 : vector<16x1xf32> to vector<16x32xf32>
    %568 = arith.mulf %563, %567 : vector<16x32xf32>
    %569 = vector.broadcast %30 : vector<1x32xf32> to vector<32x32xf32>
    %570 = arith.mulf %511, %569 : vector<32x32xf32>
    %cst_290 = arith.constant dense<0.000000e+00> : vector<16x32xf32>
    %571 = tpu.matmul %568, %570, %cst_290 {dimension_numbers = #tpu.dot_dimension_numbers<[1], [0], [0], [1], [0, 0, 1, 1], [], []>} : vector<16x32xf32>, vector<32x32xf32>, vector<16x32xf32> -> vector<16x32xf32>
    %572 = arith.addf %552, %571 : vector<16x32xf32>
    %573 = vector.broadcast %38 : vector<1x32xf32> to vector<16x32xf32>
    %574 = arith.mulf %505, %573 : vector<16x32xf32>
    %cst_291 = arith.constant dense<0.000000e+00> : vector<16x32xf32>
    %575 = tpu.matmul %574, %508, %cst_291 {dimension_numbers = #tpu.dot_dimension_numbers<[1], [1], [0], [0], [0, 0, 1, 0], [], []>} : vector<16x32xf32>, vector<32x32xf32>, vector<16x32xf32> -> vector<16x32xf32>
    %cst_292 = arith.constant 0.353553385 : f32
    %576 = vector.broadcast %cst_292 : f32 to vector<16x32xf32>
    %577 = arith.mulf %575, %576 : vector<16x32xf32>
    %578 = arith.addf %577, %5 : vector<16x32xf32>
    %cst_293 = arith.constant dense<0xFF800000> : vector<16xf32>
    %579 = vector.multi_reduction <maximumf>, %578, %cst_293 [1] : vector<16x32xf32> to vector<16xf32>
    %580 = vector.shape_cast %579 : vector<16xf32> to vector<16x1xf32>
    %581 = vector.broadcast %580 : vector<16x1xf32> to vector<16x32xf32>
    %582 = arith.subf %578, %581 : vector<16x32xf32>
    %583 = math.exp %582 : vector<16x32xf32>
    %cst_294 = arith.constant dense<0.000000e+00> : vector<16xf32>
    %584 = vector.multi_reduction <add>, %583, %cst_294 [1] : vector<16x32xf32> to vector<16xf32>
    %585 = vector.shape_cast %584 : vector<16xf32> to vector<16x1xf32>
    %586 = tpu.reciprocal %585 {approx = true} : vector<16x1xf32> -> vector<16x1xf32>
    %587 = vector.broadcast %586 : vector<16x1xf32> to vector<16x32xf32>
    %588 = arith.mulf %583, %587 : vector<16x32xf32>
    %589 = vector.broadcast %38 : vector<1x32xf32> to vector<32x32xf32>
    %590 = arith.mulf %511, %589 : vector<32x32xf32>
    %cst_295 = arith.constant dense<0.000000e+00> : vector<16x32xf32>
    %591 = tpu.matmul %588, %590, %cst_295 {dimension_numbers = #tpu.dot_dimension_numbers<[1], [0], [0], [1], [0, 0, 1, 1], [], []>} : vector<16x32xf32>, vector<32x32xf32>, vector<16x32xf32> -> vector<16x32xf32>
    %592 = arith.addf %572, %591 : vector<16x32xf32>
    %cst_296 = arith.constant dense<0.000000e+00> : vector<16x32xf32>
    %593 = tpu.matmul %592, %500, %cst_296 {dimension_numbers = #tpu.dot_dimension_numbers<[1], [0], [0], [1], [0, 0, 1, 1], [], []>} : vector<16x32xf32>, vector<32x32xf32>, vector<16x32xf32> -> vector<16x32xf32>
    %594 = vector.broadcast %502 : vector<1x32xf32> to vector<16x32xf32>
    %595 = arith.addf %593, %594 : vector<16x32xf32>
    %596 = arith.addf %485, %595 : vector<16x32xf32>
    %c1_297 = arith.constant 1 : index
    %c1_298 = arith.constant 1 : index
    %c0_299 = arith.constant 0 : index
    %c0_300 = arith.constant 0 : index
    %597 = vector.load %arg20[%c1_297, %c1_298, %c0_299, %c0_300] : memref<2x3x1x32xf32, #tpu.memory_space<vmem>>, vector<1x1x1x32xf32>
    %598 = vector.shape_cast %597 : vector<1x1x1x32xf32> to vector<1x32xf32>
    %c1_301 = arith.constant 1 : index
    %c1_302 = arith.constant 1 : index
    %c0_303 = arith.constant 0 : index
    %c0_304 = arith.constant 0 : index
    %599 = vector.load %arg21[%c1_301, %c1_302, %c0_303, %c0_304] : memref<2x3x1x32xf32, #tpu.memory_space<vmem>>, vector<1x1x1x32xf32>
    %600 = vector.shape_cast %599 : vector<1x1x1x32xf32> to vector<1x32xf32>
    %cst_305 = arith.constant dense<0.000000e+00> : vector<16xf32>
    %601 = vector.multi_reduction <add>, %596, %cst_305 [1] : vector<16x32xf32> to vector<16xf32>
    %602 = vector.shape_cast %601 : vector<16xf32> to vector<16x1xf32>
    %cst_306 = arith.constant 3.200000e+01 : f32
    %603 = vector.broadcast %cst_306 : f32 to vector<16x1xf32>
    %604 = arith.divf %602, %603 : vector<16x1xf32>
    %605 = vector.broadcast %604 : vector<16x1xf32> to vector<16x32xf32>
    %606 = arith.subf %596, %605 : vector<16x32xf32>
    %607 = arith.mulf %606, %606 : vector<16x32xf32>
    %cst_307 = arith.constant dense<0.000000e+00> : vector<16xf32>
    %608 = vector.multi_reduction <add>, %607, %cst_307 [1] : vector<16x32xf32> to vector<16xf32>
    %609 = vector.shape_cast %608 : vector<16xf32> to vector<16x1xf32>
    %cst_308 = arith.constant 3.200000e+01 : f32
    %610 = vector.broadcast %cst_308 : f32 to vector<16x1xf32>
    %611 = arith.divf %609, %610 : vector<16x1xf32>
    %cst_309 = arith.constant 9.99999974E-6 : f32
    %612 = vector.broadcast %cst_309 : f32 to vector<16x1xf32>
    %613 = arith.addf %611, %612 : vector<16x1xf32>
    %614 = math.rsqrt %613 : vector<16x1xf32>
    %615 = vector.broadcast %614 : vector<16x1xf32> to vector<16x32xf32>
    %616 = arith.mulf %606, %615 : vector<16x32xf32>
    %617 = vector.broadcast %598 : vector<1x32xf32> to vector<16x32xf32>
    %618 = arith.mulf %616, %617 : vector<16x32xf32>
    %619 = vector.broadcast %600 : vector<1x32xf32> to vector<16x32xf32>
    %620 = arith.addf %618, %619 : vector<16x32xf32>
    %c1_310 = arith.constant 1 : index
    %c0_311 = arith.constant 0 : index
    %c0_312 = arith.constant 0 : index
    %621 = vector.load %arg16[%c1_310, %c0_311, %c0_312] : memref<2x32x64xf32, #tpu.memory_space<vmem>>, vector<1x32x64xf32>
    %622 = vector.shape_cast %621 : vector<1x32x64xf32> to vector<32x64xf32>
    %cst_313 = arith.constant dense<0.000000e+00> : vector<16x64xf32>
    %623 = tpu.matmul %620, %622, %cst_313 {dimension_numbers = #tpu.dot_dimension_numbers<[1], [0], [0], [1], [0, 0, 1, 1], [], []>} : vector<16x32xf32>, vector<32x64xf32>, vector<16x64xf32> -> vector<16x64xf32>
    %c1_314 = arith.constant 1 : index
    %c0_315 = arith.constant 0 : index
    %c0_316 = arith.constant 0 : index
    %624 = vector.load %arg17[%c1_314, %c0_315, %c0_316] : memref<2x1x64xf32, #tpu.memory_space<vmem>>, vector<1x1x64xf32>
    %625 = vector.shape_cast %624 : vector<1x1x64xf32> to vector<1x64xf32>
    %626 = vector.broadcast %625 : vector<1x64xf32> to vector<16x64xf32>
    %627 = arith.addf %623, %626 : vector<16x64xf32>
    %cst_317 = arith.constant 0.000000e+00 : f32
    %628 = vector.broadcast %cst_317 : f32 to vector<16x64xf32>
    %629 = arith.maximumf %627, %628 : vector<16x64xf32>
    %c1_318 = arith.constant 1 : index
    %c0_319 = arith.constant 0 : index
    %c0_320 = arith.constant 0 : index
    %630 = vector.load %arg18[%c1_318, %c0_319, %c0_320] : memref<2x64x32xf32, #tpu.memory_space<vmem>>, vector<1x64x32xf32>
    %631 = vector.shape_cast %630 : vector<1x64x32xf32> to vector<64x32xf32>
    %cst_321 = arith.constant dense<0.000000e+00> : vector<16x32xf32>
    %632 = tpu.matmul %629, %631, %cst_321 {dimension_numbers = #tpu.dot_dimension_numbers<[1], [0], [0], [1], [0, 0, 1, 1], [], []>} : vector<16x64xf32>, vector<64x32xf32>, vector<16x32xf32> -> vector<16x32xf32>
    %c1_322 = arith.constant 1 : index
    %c0_323 = arith.constant 0 : index
    %c0_324 = arith.constant 0 : index
    %633 = vector.load %arg19[%c1_322, %c0_323, %c0_324] : memref<2x1x32xf32, #tpu.memory_space<vmem>>, vector<1x1x32xf32>
    %634 = vector.shape_cast %633 : vector<1x1x32xf32> to vector<1x32xf32>
    %635 = vector.broadcast %634 : vector<1x32xf32> to vector<16x32xf32>
    %636 = arith.addf %632, %635 : vector<16x32xf32>
    %637 = arith.addf %620, %636 : vector<16x32xf32>
    %c1_325 = arith.constant 1 : index
    %c2_326 = arith.constant 2 : index
    %c0_327 = arith.constant 0 : index
    %c0_328 = arith.constant 0 : index
    %638 = vector.load %arg20[%c1_325, %c2_326, %c0_327, %c0_328] : memref<2x3x1x32xf32, #tpu.memory_space<vmem>>, vector<1x1x1x32xf32>
    %639 = vector.shape_cast %638 : vector<1x1x1x32xf32> to vector<1x32xf32>
    %c1_329 = arith.constant 1 : index
    %c2_330 = arith.constant 2 : index
    %c0_331 = arith.constant 0 : index
    %c0_332 = arith.constant 0 : index
    %640 = vector.load %arg21[%c1_329, %c2_330, %c0_331, %c0_332] : memref<2x3x1x32xf32, #tpu.memory_space<vmem>>, vector<1x1x1x32xf32>
    %641 = vector.shape_cast %640 : vector<1x1x1x32xf32> to vector<1x32xf32>
    %cst_333 = arith.constant dense<0.000000e+00> : vector<16xf32>
    %642 = vector.multi_reduction <add>, %637, %cst_333 [1] : vector<16x32xf32> to vector<16xf32>
    %643 = vector.shape_cast %642 : vector<16xf32> to vector<16x1xf32>
    %cst_334 = arith.constant 3.200000e+01 : f32
    %644 = vector.broadcast %cst_334 : f32 to vector<16x1xf32>
    %645 = arith.divf %643, %644 : vector<16x1xf32>
    %646 = vector.broadcast %645 : vector<16x1xf32> to vector<16x32xf32>
    %647 = arith.subf %637, %646 : vector<16x32xf32>
    %648 = arith.mulf %647, %647 : vector<16x32xf32>
    %cst_335 = arith.constant dense<0.000000e+00> : vector<16xf32>
    %649 = vector.multi_reduction <add>, %648, %cst_335 [1] : vector<16x32xf32> to vector<16xf32>
    %650 = vector.shape_cast %649 : vector<16xf32> to vector<16x1xf32>
    %cst_336 = arith.constant 3.200000e+01 : f32
    %651 = vector.broadcast %cst_336 : f32 to vector<16x1xf32>
    %652 = arith.divf %650, %651 : vector<16x1xf32>
    %cst_337 = arith.constant 9.99999974E-6 : f32
    %653 = vector.broadcast %cst_337 : f32 to vector<16x1xf32>
    %654 = arith.addf %652, %653 : vector<16x1xf32>
    %655 = math.rsqrt %654 : vector<16x1xf32>
    %656 = vector.broadcast %655 : vector<16x1xf32> to vector<16x32xf32>
    %657 = arith.mulf %647, %656 : vector<16x32xf32>
    %658 = vector.broadcast %639 : vector<1x32xf32> to vector<16x32xf32>
    %659 = arith.mulf %657, %658 : vector<16x32xf32>
    %660 = vector.broadcast %641 : vector<1x32xf32> to vector<16x32xf32>
    %661 = arith.addf %659, %660 : vector<16x32xf32>
    %c0_338 = arith.constant 0 : index
    %c0_339 = arith.constant 0 : index
    %662 = vector.load %arg22[%c0_338, %c0_339] : memref<1x32xf32, #tpu.memory_space<vmem>>, vector<1x32xf32>
    %c0_340 = arith.constant 0 : index
    %c0_341 = arith.constant 0 : index
    %663 = vector.load %arg23[%c0_340, %c0_341] : memref<1x32xf32, #tpu.memory_space<vmem>>, vector<1x32xf32>
    %cst_342 = arith.constant dense<0.000000e+00> : vector<16xf32>
    %664 = vector.multi_reduction <add>, %661, %cst_342 [1] : vector<16x32xf32> to vector<16xf32>
    %665 = vector.shape_cast %664 : vector<16xf32> to vector<16x1xf32>
    %cst_343 = arith.constant 3.200000e+01 : f32
    %666 = vector.broadcast %cst_343 : f32 to vector<16x1xf32>
    %667 = arith.divf %665, %666 : vector<16x1xf32>
    %668 = vector.broadcast %667 : vector<16x1xf32> to vector<16x32xf32>
    %669 = arith.subf %661, %668 : vector<16x32xf32>
    %670 = arith.mulf %669, %669 : vector<16x32xf32>
    %cst_344 = arith.constant dense<0.000000e+00> : vector<16xf32>
    %671 = vector.multi_reduction <add>, %670, %cst_344 [1] : vector<16x32xf32> to vector<16xf32>
    %672 = vector.shape_cast %671 : vector<16xf32> to vector<16x1xf32>
    %cst_345 = arith.constant 3.200000e+01 : f32
    %673 = vector.broadcast %cst_345 : f32 to vector<16x1xf32>
    %674 = arith.divf %672, %673 : vector<16x1xf32>
    %cst_346 = arith.constant 9.99999974E-6 : f32
    %675 = vector.broadcast %cst_346 : f32 to vector<16x1xf32>
    %676 = arith.addf %674, %675 : vector<16x1xf32>
    %677 = math.rsqrt %676 : vector<16x1xf32>
    %678 = vector.broadcast %677 : vector<16x1xf32> to vector<16x32xf32>
    %679 = arith.mulf %669, %678 : vector<16x32xf32>
    %680 = vector.broadcast %662 : vector<1x32xf32> to vector<16x32xf32>
    %681 = arith.mulf %679, %680 : vector<16x32xf32>
    %682 = vector.broadcast %663 : vector<1x32xf32> to vector<16x32xf32>
    %683 = arith.addf %681, %682 : vector<16x32xf32>
    %c0_347 = arith.constant 0 : index
    %c0_348 = arith.constant 0 : index
    %684 = vector.load %arg24[%c0_347, %c0_348] : memref<16x32xf32, #tpu.memory_space<vmem>>, vector<16x32xf32>
    tpu.vector_store %arg24[%c0_347, %c0_348], %683 {strides = array<i32>} : memref<16x32xf32, #tpu.memory_space<vmem>>, vector<16x32xf32>,
    return
  }
}

</mosaic_0001>

<bundles_post_ra>
// kernel: transformer_decoder_forward.1
= control target key start
LH: loop header
LB: loop body
LE: loop exit
PB: predicated region body
PF: predicated region fallthrough
CT: control target
= control target key end

     0   :  { %s4750_s0 = inlined_call_operand.vmem [shape: f32[16,32], index: 0, kind: input, shape index: {}]   ;;  %s4751_s1 = inlined_call_operand.vmem [shape: f32[32,32], index: 1, kind: input, shape index: {}]   ;;  %s4752_s2 = inlined_call_operand.vmem [shape: f32[16,32], index: 2, kind: input, shape index: {}]   ;;  %s4753_s3 = inlined_call_operand.vmem [shape: f32[32,32], index: 3, kind: input, shape index: {}]   ;;  %s4754_s4 = inlined_call_operand.vmem [shape: f32[16,16], index: 4, kind: input, shape index: {}]   ;;  %s4755_s5 = inlined_call_operand.vmem [shape: f32[16,32], index: 5, kind: input, shape index: {}]   ;;  %s4756_s6 = inlined_call_operand.vmem [shape: f32[2,32,32], index: 6, kind: input, shape index: {}]   ;;  %s4757_s7 = inlined_call_operand.vmem [shape: f32[2,32,32], index: 7, kind: input, shape index: {}]   ;;  %s4758_s8 = inlined_call_operand.vmem [shape: f32[2,32,32], index: 8, kind: input, shape index: {}]   ;;  %s4759_s9 = inlined_call_operand.hbm [shape: f32[2,32,32], index: 9, kind: input, shape index: {}]   ;;  %s4760_s10 = inlined_call_operand.vmem [shape: f32[2,4,1,32], index: 10, kind: input, shape index: {}]   ;;  %s4761_s11 = inlined_call_operand.hbm [shape: f32[2,32,32], index: 11, kind: input, shape index: {}]   ;;  %s4762_s12 = inlined_call_operand.hbm [shape: f32[2,32,32], index: 12, kind: input, shape index: {}]   ;;  %s4763_s13 = inlined_call_operand.hbm [shape: f32[2,32,32], index: 13, kind: input, shape index: {}]   ;;  %s4764_s14 = inlined_call_operand.hbm [shape: f32[2,32,32], index: 14, kind: input, shape index: {}]   ;;  %s4765_s15 = inlined_call_operand.vmem [shape: f32[2,4,1,32], index: 15, kind: input, shape index: {}]   ;;  %s4766_s16 = inlined_call_operand.hbm [shape: f32[2,32,64], index: 16, kind: input, shape index: {}]   ;;  %s4767_s17 = inlined_call_operand.hbm [shape: f32[2,1,64], index: 17, kind: input, shape index: {}]   ;;  %s4768_s18 = inlined_call_operand.vmem [shape: f32[2,64,32], index: 18, kind: input, shape index: {}]   ;;  %s4769_s19 = inlined_call_operand.hbm [shape: f32[2,1,32], index: 19, kind: input, shape index: {}]   ;;  %s4770_s20 = inlined_call_operand.vmem [shape: f32[2,3,1,32], index: 20, kind: input, shape index: {}]   ;;  %s4771_s21 = inlined_call_operand.hbm [shape: f32[2,3,1,32], index: 21, kind: input, shape index: {}]   ;;  %s4772_s22 = inlined_call_operand.vmem [shape: f32[1,32], index: 22, kind: input, shape index: {}]   ;;  %s4773_s23 = inlined_call_operand.hbm [shape: f32[1,32], index: 23, kind: input, shape index: {}]   ;;  %s4774_s24 = inlined_call_operand.vmem [shape: f32[16,32], index: 24, kind: output, shape index: {}]  }
   0x1   :  { %4784 = sst [smem:[#allocation24_spill]] %s4750_s0 }
   0x2   :  { %4785 = sst [smem:[#allocation25_spill]] %s4751_s1 }
   0x3   :  { %4786 = sst [smem:[#allocation26_spill]] %s4752_s2 }
   0x4   :  { %4787 = sst [smem:[#allocation27_spill]] %s4753_s3 }
   0x5   :  { %4788 = sst [smem:[#allocation28_spill]] %s4754_s4 }
   0x6   :  { %4789 = sst [smem:[#allocation29_spill]] %s4755_s5 }
   0x7   :  { %4790 = sst [smem:[#allocation30_spill]] %s4756_s6 }
   0x8   :  { %4791 = sst [smem:[#allocation31_spill]] %s4757_s7 }
   0x9   :  { %4792 = sst [smem:[#allocation32_spill]] %s4758_s8 }
   0xa   :  { %29 = vsyncpa [#allocation3], 0 }
   0xb   :  { %30 = vsyncpa [#allocation5], 0 }
   0xc   :  { %31 = vsyncpa [#allocation8], 0 }
   0xd   :  { %32 = vsyncpa [#allocation11], 0 }
   0xe   :  { %33 = vsyncpa [#allocation14], 0 }
   0xf   :  { %34 = vsyncpa [#allocation17], 0  ;;  %s72_s27 = sshll.u32 %s4761_s11, 4  ;;  %s3648_s28 = smov [#allocation4]   ;;  %s73_s27 = int_to_ptr.hbm [resolvable:$true] %s72_s27 }
  0x10   :  { %s74_s6 = sshll.u32 %s3648_s28, 4  ;;  %s98_s0 = sshll.u32 %s4763_s13, 4  ;;  %s75_s6 = int_to_ptr.vmem [resolvable:$true] %s74_s6  ;;  %s99_s0 = int_to_ptr.hbm [resolvable:$true] %s98_s0 }
  0x11   :  { %s3649_s7 = smov 128   ;;  %s3650_s30 = smov 8  }
  0x12   :  { %80 = dma.hbm_to_vmem [thread:$0]  %s73_s27, 1024, %s75_s6, [#allocation5], %s3649_s7, %s3649_s7, %s3650_s30  }
  0x13   :  { %s3651_s3 = smov [#allocation7]   ;;  %s126_s11 = sshll.u32 %s4766_s16, 4  ;;  %s127_s11 = int_to_ptr.hbm [resolvable:$true] %s126_s11 }
  0x14   :  { %s100_s25 = sshll.u32 %s3651_s3, 4  ;;  %s3652_s13 = smov [#allocation10]   ;;  %s101_s25 = int_to_ptr.vmem [resolvable:$true] %s100_s25 }
  0x15   :  { %106 = dma.hbm_to_vmem [thread:$0]  %s99_s0, 1024, %s101_s25, [#allocation8], %s3649_s7, %s3649_s7, %s3650_s30  }
  0x16   :  { %s128_s1 = sshll.u32 %s3652_s13, 4  ;;  %s154_s27 = sshll.u32 %s4769_s19, 4  ;;  %s129_s1 = int_to_ptr.vmem [resolvable:$true] %s128_s1  ;;  %s155_s27 = int_to_ptr.hbm [resolvable:$true] %s154_s27 }
  0x17   :  { %134 = dma.hbm_to_vmem [thread:$0]  %s127_s11, 1024, %s129_s1, [#allocation11], %s3649_s7, %s3649_s7, %s3650_s30  }
  0x18   :  { %s3653_s28 = smov [#allocation13]   ;;  %s57_s29 = sshll.u32 %s4759_s9, 4  ;;  %s58_s29 = int_to_ptr.hbm [resolvable:$true] %s57_s29 }
  0x19   :  { %s156_s16 = sshll.u32 %s3653_s28, 4  ;;  %s3654_s0 = smov 16   ;;  %s157_s16 = int_to_ptr.vmem [resolvable:$true] %s156_s16 }
  0x1a   :  { %s3655_s3 = smov 1   ;;  %s85_s8 = sshll.u32 %s4762_s12, 4  ;;  %s86_s8 = int_to_ptr.hbm [resolvable:$true] %s85_s8 }
  0x1b   :  { %162 = dma.hbm_to_vmem [thread:$0]  %s155_s27, 32, %s157_s16, [#allocation14], %s3654_s0, %s3654_s0, %s3655_s3  }
  0x1c   :  { %s3656_s4 = smov [#allocation2]   ;;  %s3657_s9 = smov [#allocation6]  }
  0x1d   :  { %s59_s11 = sshll.u32 %s3656_s4, 4  ;;  %s87_s13 = sshll.u32 %s3657_s9, 4  ;;  %s60_s11 = int_to_ptr.vmem [resolvable:$true] %s59_s11  ;;  %s88_s13 = int_to_ptr.vmem [resolvable:$true] %s87_s13 }
  0x1e   :  { %65 = dma.hbm_to_vmem [thread:$0]  %s58_s29, 1024, %s60_s11, [#allocation3], %s3649_s7, %s3649_s7, %s3650_s30  }
  0x1f   :  { %s111_s26 = sshll.u32 %s4764_s14, 4  ;;  %s139_s28 = sshll.u32 %s4767_s17, 4  ;;  %s112_s26 = int_to_ptr.hbm [resolvable:$true] %s111_s26  ;;  %s140_s28 = int_to_ptr.hbm [resolvable:$true] %s139_s28 }
  0x20   :  { %93 = dma.hbm_to_vmem [thread:$0]  %s86_s8, 1024, %s88_s13, [#allocation5], %s3649_s7, %s3649_s7, %s3650_s30  }
  0x21   :  { %s3658_s16 = smov [#allocation9]   ;;  %s3659_s2 = smov [#allocation12]  }
  0x22   :  { %s113_s6 = sshll.u32 %s3658_s16, 4  ;;  %s141_s14 = sshll.u32 %s3659_s2, 4  ;;  %s114_s6 = int_to_ptr.vmem [resolvable:$true] %s113_s6  ;;  %s142_s14 = int_to_ptr.vmem [resolvable:$true] %s141_s14 }
  0x23   :  { %119 = dma.hbm_to_vmem [thread:$0]  %s112_s26, 1024, %s114_s6, [#allocation8], %s3649_s7, %s3649_s7, %s3650_s30  }
  0x24   :  { %s169_s25 = sshll.u32 %s4771_s21, 4  ;;  %s185_s4 = sshll.u32 %s4773_s23, 4  ;;  %s170_s25 = int_to_ptr.hbm [resolvable:$true] %s169_s25  ;;  %s186_s4 = int_to_ptr.hbm [resolvable:$true] %s185_s4 }
  0x25   :  { %147 = dma.hbm_to_vmem [thread:$0]  %s140_s28, 32, %s142_s14, [#allocation11], %s3654_s0, %s3654_s0, %s3655_s3  }
  0x26   :  { %s3660_s11 = smov [#allocation15]   ;;  %s3661_s7 = smov [#allocation16]  }
  0x27   :  { %s171_s9 = sshll.u32 %s3660_s11, 4  ;;  %s187_s21 = sshll.u32 %s3661_s7, 4  ;;  %s172_s9 = int_to_ptr.vmem [resolvable:$true] %s171_s9  ;;  %s188_s21 = int_to_ptr.vmem [resolvable:$true] %s187_s21 }
  0x28   :  { %177 = dma.hbm_to_vmem [thread:$0]  %s170_s25, 96, %s172_s9, [#allocation14], %s3654_s0, %s3654_s0, %s3655_s3  }
  0x29   :  { %190 = dma.hbm_to_vmem [thread:$0]  %s186_s4, 16, %s188_s21, [#allocation17]  }
  0x2a   :  { %3636 = dma.done.wait [#allocation3], 1024  }
  0x2b   :  { %3637 = vsyncadd [#allocation3], 4294966272 }
  0x2c   :  { %3638 = dma.done.wait [#allocation5], 2048  }
  0x2d   :  { %3639 = vsyncadd [#allocation5], 4294965248 }
  0x2e   :  { %3640 = dma.done.wait [#allocation8], 2048  }
  0x2f   :  { %3641 = vsyncadd [#allocation8], 4294965248 }
  0x30   :  { %3642 = dma.done.wait [#allocation11], 1056  }
  0x31   :  { %3643 = vsyncadd [#allocation11], 4294966240 }
  0x32   :  { %3644 = dma.done.wait [#allocation14], 128  }
  0x33   :  { %3645 = vsyncadd [#allocation14], 4294967168 }
  0x34   :  { %3646 = dma.done.wait [#allocation17], 16  }
  0x35   :  { %3647 = vsyncadd [#allocation17], 4294967280  ;;  %s4793_s13 = sld [smem:[#allocation31_spill]]  ;;  %vm297_vm0 = vcmask 261120   ;;  %v247_v18 = vlaneseq  ;;  %v3662_v20 = vmov 0.0   ;;  %vm426_vm11 = vcmask 130048  }
  0x36   :  { %s4794_s1 = sld [smem:[#allocation32_spill]]  ;;  %v3196_v25 = vld [vmem:[%s4760_s10] ss:$0 sm:$0xff]  ;;  %v3194_v26 = vld [vmem:[%s4760_s10 + $0x1] ss:$0 sm:$0xff] }
  0x37   :  { %s4795_s19 = sld [smem:[#allocation24_spill]]  ;;  %v248_v19 = vand.u32 127, %v247_v18  ;;  %v3195_v30 = vld [vmem:[%s4760_s10 + $0x2] ss:$0 sm:$0xff] }
  0x38   :  { %s4796_s8 = sld [smem:[#allocation26_spill]] }
  0x39   :  { %s4797_s9 = sld [smem:[#allocation30_spill]]  ;;  %vm261_vm1 = vcmp.ge.s32.totalorder %v248_v19, 24  ;;  %vm262_vm2 = vcmp.lt.s32.totalorder %v248_v19, 32  ;;  %vm253_vm4 = vcmp.ge.s32.totalorder %v248_v19, 8  ;;  %vm254_vm5 = vcmp.lt.s32.totalorder %v248_v19, 16 }
  0x3a   :  { %vm263_vm3 = vmand %vm261_vm1, %vm262_vm2  ;;  %vm250_vm6 = vcmp.lt.s32.totalorder %v248_v19, 8  ;;  %vm257_vm8 = vcmp.ge.s32.totalorder %v248_v19, 16  ;;  %vm258_vm9 = vcmp.lt.s32.totalorder %v248_v19, 24  ;;  %s4798_s21 = sld [smem:[#allocation28_spill]] }
  0x3b   :  { %v279_v0 = vld [vmem:[%s4793_s13 + $0x18] sm:$0xff]  ;;  %v278_v2 = vld [vmem:[%s4793_s13 + $0x10] sm:$0xff]  ;;  %v277_v4 = vld [vmem:[%s4793_s13 + $0x8] sm:$0xff]  ;;  %v3914_v21 = vsel %vm263_vm3, 1.0, %v3662_v20  ;;  %v3929_v31 = vsel %vm250_vm6, 1.0, %v3662_v20  ;;  %s4799_s12 = sld [smem:[#allocation25_spill]] }
  0x3c   :  { %v285_v1 = vld [vmem:[%s4794_s1 + $0x18] sm:$0xff]  ;;  %342 = vmatpush.msra.mxu1 %v279_v0  ;;  %v284_v3 = vld [vmem:[%s4794_s1 + $0x10] sm:$0xff]  ;;  %v283_v5 = vld [vmem:[%s4794_s1 + $0x8] sm:$0xff]  ;;  %s4800_s16 = sld [smem:[#allocation27_spill]] }
  0x3d   :  { %374 = vmatpush.msra.mxu2 %v285_v1  ;;  %v3867_v6 = vld [vmem:[%s4795_s19] sm:$0xff]  ;;  %v3897_v15 = vld [vmem:[%s4795_s19 + $0x8] sm:$0xff]  ;;  %vm255_vm7 = vmand %vm253_vm4, %vm254_vm5  ;;  %s4801_s29 = sld [smem:[#allocation29_spill]] }
  0x3e   :  { %343 = vmatpush.msra.mxu1 %v278_v2  ;;  %v3872_v7 = vld [vmem:[%s4796_s8] sm:$0xff]  ;;  %v3902_v16 = vld [vmem:[%s4796_s8 + $0x8] sm:$0xff]  ;;  %v3931_v32 = vsel %vm255_vm7, 1.0, %v3662_v20  ;;  %vm259_vm10 = vmand %vm257_vm8, %vm258_vm9 }
  0x3f   :  { %375 = vmatpush.msra.mxu2 %v284_v3  ;;  %v274_v8 = vld [vmem:[%s4797_s9 + $0x18] sm:$0xff]  ;;  %v273_v9 = vld [vmem:[%s4797_s9 + $0x10] sm:$0xff]  ;;  %v276_v10 = vld [vmem:[%s4793_s13] sm:$0xff]  ;;  %v269_v12 = vadd.f32 %v3872_v7, %v3867_v6  ;;  %v270_v17 = vadd.f32 %v3902_v16, %v3897_v15  ;;  %v3958_v45 = vsel %vm259_vm10, 1.0, %v3662_v20  ;;  %vm1509_vm10 = vcmask 523264  }
  0x40   :  { %v282_v11 = vld [vmem:[%s4794_s1] sm:$0xff]  ;;  %316 = vmatpush.msra.mxu0 %v274_v8  ;;  %344 = vmatpush.msra.mxu1 %v277_v4  ;;  %v272_v13 = vld [vmem:[%s4797_s9 + $0x8] sm:$0xff] }
  0x41   :  { %376 = vmatpush.msra.mxu2 %v283_v5  ;;  %v271_v14 = vld [vmem:[%s4797_s9] sm:$0xff]  ;;  %v3976_v56 = vld [vmem:[%s4798_s21 + $0x8] sm:$0xff] }
  0x42   :  { %317 = vmatpush.msra.mxu0 %v273_v9  ;;  %345 = vmatpush.msra.mxu1 %v276_v10  ;;  %v3969_v49 = vld [vmem:[%s4798_s21] sm:$0xff] }
  0x43   :  { %377 = vmatpush.msra.mxu2 %v282_v11  ;;  %2984 = vmatmul.msk.f32.vlgmr.msra.gmra.mxu1 %vm297_vm0, %v269_v12 }
  0x44   :  { %2986 = vmatmul.msk.f32.vlgmr.msra.gmra.mxu2 %vm297_vm0, %v3867_v6  ;;  %318 = vmatpush.msra.mxu0 %v272_v13 }
  0x46   :  { %319 = vmatpush.msra.mxu0 %v271_v14 }
  0x47   :  { %2982 = vmatmul.msk.f32.vlgmr.msra.gmra.mxu0 %vm297_vm0, %v269_v12 }
  0x4b   :  { %2985 = vmatmul.msk.f32.gmra.mxu1 %vm297_vm0, %v270_v17 }
  0x4c   :  { %2987 = vmatmul.msk.f32.gmra.mxu2 %vm297_vm0, %v3897_v15 }
  0x4f   :  { %2983 = vmatmul.msk.f32.gmra.mxu0 %vm297_vm0, %v270_v17 }
  0xc0   :  { %v347_v22 = vpop.f32.mrf.mxu1 }
  0xc1   :  { %v348_v33 = vadd.f32 %v3194_v26, %v347_v22 }
  0xc4   :  { %v321_v23 = vpop.f32.mrf.mxu0 }
  0xc5   :  { %v3922_v29 = vadd.f32 %v3196_v25, %v321_v23 }
  0xc7   :  { %v379_v24 = vpop.f32.mrf.mxu2  ;;  %v385_v36 = vmul.f32 %v3922_v29, %v3929_v31  ;;  %v451_v37 = vmul.f32 %v3922_v29, %v3931_v32  ;;  %v568_v46 = vmul.f32 %v3922_v29, %v3958_v45 }
  0xc8   :  { %v350_v27 = vpop.f32.mrf.mxu1  ;;  %v3933_v34 = vadd.f32 %v3195_v30, %v379_v24 }
  0xc9   :  { %v351_v28 = vadd.f32 %v3194_v26, %v350_v27 }
  0xca   :  { %v508_v41 = vmul.f32 %v3933_v34, %v3931_v32  ;;  %v449_v8 = vmul.f32 %v3933_v34, %v3929_v31  ;;  %v625_v11 = vmul.f32 %v3933_v34, %v3958_v45  ;;  %v715_v13 = vmul.f32 %v3933_v34, %v3914_v21 }
  0xcb   :  { %2988 = vmatpush.xpose.msk.msra.mxu3 %vm297_vm0, %v351_v28  ;;  %2992 = vmatpush.xpose.msk.msrb.mxu0 %vm297_vm0, %v351_v28 }
  0xcc   :  { %v324_v39 = vpop.f32.mrf.mxu0 }
  0xcd   :  { %v3947_v42 = vadd.f32 %v3196_v25, %v324_v39 }
  0xcf   :  { %v382_v35 = vpop.f32.mrf.mxu2  ;;  %2989 = vmatpush.xpose.msk.msra.mxu3 %vm297_vm0, %v348_v33  ;;  %2993 = vmatpush.xpose.msk.msrb.mxu0 %vm297_vm0, %v348_v33  ;;  %v386_v43 = vmul.f32 %v3947_v42, %v3929_v31  ;;  %v452_v44 = vmul.f32 %v3947_v42, %v3931_v32  ;;  %v569_v47 = vmul.f32 %v3947_v42, %v3958_v45 }
  0xd0   :  { %v383_v38 = vadd.f32 %v3195_v30, %v382_v35 }
  0xd2   :  { %v509_v40 = vmul.f32 %v383_v38, %v3931_v32  ;;  %2990 = vmatmul.msk.f32.vlgmr.msra.gmra.mxu3 %vm297_vm0, %v385_v36  ;;  %2994 = vmatmul.msk.f32.vlgmr.msrb.gmra.mxu0 %vm297_vm0, %v451_v37  ;;  %v450_v5 = vmul.f32 %v383_v38, %v3929_v31  ;;  %v626_v9 = vmul.f32 %v383_v38, %v3958_v45 }
  0xd3   :  { %3000 = vmatpush.xpose.msk.msrb.mxu3 %vm297_vm0, %v351_v28  ;;  %v716_v10 = vmul.f32 %v383_v38, %v3914_v21 }
  0xd4   :  { %530 = vmatpush.msrb.mxu1 %v509_v40  ;;  %559 = vmatpush.msrb.mxu2 %v450_v5 }
  0xd5   :  { %647 = vmatpush.msra.mxu0 %v626_v9 }
  0xd6   :  { %531 = vmatpush.msrb.mxu1 %v508_v41  ;;  %560 = vmatpush.msrb.mxu2 %v449_v8 }
  0xd7   :  { %3001 = vmatpush.xpose.msk.msrb.mxu3 %vm297_vm0, %v348_v33  ;;  %648 = vmatpush.msra.mxu0 %v625_v11 }
  0xd8   :  { %3006 = vmatpush.xpose.msk.msra.mxu1 %vm297_vm0, %v351_v28  ;;  %737 = vmatpush.msra.mxu2 %v716_v10 }
  0xda   :  { %2991 = vmatmul.msk.f32.gmra.mxu3 %vm297_vm0, %v386_v43  ;;  %2995 = vmatmul.msk.f32.gmra.mxu0 %vm297_vm0, %v452_v44 }
  0xdb   :  { %738 = vmatpush.msra.mxu2 %v715_v13 }
  0xdc   :  { %3007 = vmatpush.xpose.msk.msra.mxu1 %vm297_vm0, %v348_v33 }
  0xe2   :  { %3002 = vmatmul.msk.f32.vlgmr.msrb.gmra.mxu3 %vm297_vm0, %v568_v46  ;;  %v658_v46 = vmul.f32 %v3922_v29, %v3914_v21 }
  0xea   :  { %3003 = vmatmul.msk.f32.gmra.mxu3 %vm297_vm0, %v569_v47 }
 0x14f   :  { %v476_v48 = vpop.f32.mrf.mxu0 }
 0x150   :  { %v482_v50 = vmul.f32 0.35355338, %v476_v48 }
 0x152   :  { %v484_v51 = vadd.f32 %v482_v50, %v3969_v49 }
 0x154   :  { %v486_v52 = vsel %vm426_vm11, %v484_v51, -inf }
 0x155   :  { %487 = vmax.xlane.f32.xlu0 %v486_v52  ;;  %v416_v53 = vpop.f32.mrf.mxu3 }
 0x156   :  { %v422_v54 = vmul.f32 0.35355338, %v416_v53  ;;  %v659_v53 = vmul.f32 %v3947_v42, %v3914_v21 }
 0x157   :  { %v479_v55 = vpop.f32.mrf.mxu0 }
 0x158   :  { %v483_v57 = vmul.f32 0.35355338, %v479_v55  ;;  %v424_v58 = vadd.f32 %v422_v54, %v3969_v49 }
 0x15a   :  { %v427_v59 = vsel %vm426_vm11, %v424_v58, -inf  ;;  %v485_v60 = vadd.f32 %v483_v57, %v3976_v56 }
 0x15b   :  { %428 = vmax.xlane.f32.xlu2 %v427_v59 }
 0x15c   :  { %v489_v61 = vsel %vm426_vm11, %v485_v60, -inf }
 0x15d   :  { %490 = vmax.xlane.f32.xlu0 %v489_v61  ;;  %v419_v62 = vpop.f32.mrf.mxu3 }
 0x15e   :  { %v423_v63 = vmul.f32 0.35355338, %v419_v62 }
 0x160   :  { %v3983_v0 = vadd.f32 %v423_v63, %v3976_v56 }
 0x162   :  { %v430_v1 = vsel %vm426_vm11, %v3983_v0, -inf }
 0x163   :  { %431 = vmax.xlane.f32.xlu2 %v430_v1 }
 0x165   :  { %v593_v22 = vpop.f32.mrf.mxu3 }
 0x166   :  { %v599_v25 = vmul.f32 0.35355338, %v593_v22 }
 0x168   :  { %v601_v28 = vadd.f32 %v599_v25, %v3969_v49 }
 0x16a   :  { %v603_v30 = vsel %vm426_vm11, %v601_v28, -inf }
 0x16d   :  { %v596_v62 = vpop.f32.mrf.mxu3 }
 0x16e   :  { %v600_v1 = vmul.f32 0.35355338, %v596_v62 }
 0x170   :  { %v602_v8 = vadd.f32 %v600_v1, %v3976_v56  ;;  %v3197_v1 = vld [vmem:[%s4760_s10 + $0x3] ss:$0 sm:$0xff] }
 0x172   :  { %v606_v10 = vsel %vm426_vm11, %v602_v8, -inf }
 0x1c8   :  { %v488_v2 = vpop.xlane.xlu0 %487 }
 0x1c9   :  { %v492_v3 = vsub.f32 %v484_v51, %v488_v2 }
 0x1cb   :  { %v494_v4 = vmul.f32 1.442695, %v492_v3 }
 0x1cd   :  { %3228 = vpow2.f32 %v494_v4 }
 0x1ce   :  { %v429_v20 = vpop.xlane.xlu2 %428 }
 0x1cf   :  { %v433_v24 = vsub.f32 %v424_v58, %v429_v20 }
 0x1d0   :  { %v491_v12 = vpop.xlane.xlu0 %490 }
 0x1d1   :  { %v493_v14 = vsub.f32 %v485_v60, %v491_v12  ;;  %v435_v27 = vmul.f32 1.442695, %v433_v24 }
 0x1d3   :  { %v3229_v17 = vpop.eup %3228  ;;  %v496_v18 = vmul.f32 1.442695, %v493_v14 }
 0x1d4   :  { %v498_v19 = vsel %vm426_vm11, %v3229_v17, 0.0 }
 0x1d5   :  { %3230 = vpow2.f32 %v496_v18  ;;  %499 = vadd.xlane.f32.xlu1 %v498_v19 }
 0x1d6   :  { %3232 = vpow2.f32 %v435_v27  ;;  %v432_v59 = vpop.xlane.xlu2 %431 }
 0x1d7   :  { %v434_v63 = vsub.f32 %v3983_v0, %v432_v59 }
 0x1d9   :  { %v437_v3 = vmul.f32 1.442695, %v434_v63 }
 0x1db   :  { %v3231_v23 = vpop.eup %3230 }
 0x1dc   :  { %v501_v26 = vsel %vm426_vm11, %v3231_v23, 0.0  ;;  %v3233_v33 = vpop.eup %3232 }
 0x1dd   :  { %502 = vadd.xlane.f32.xlu1 %v501_v26  ;;  %v439_v34 = vsel %vm426_vm11, %v3233_v33, 0.0 }
 0x1e5   :  { %604 = vmax.xlane.f32.xlu1 %v603_v30 }
 0x1ed   :  { %440 = vadd.xlane.f32.xlu1 %v439_v34 }
 0x248   :  { %v500_v35 = vpop.xlane.xlu1 %499 }
 0x249   :  { %3234 = vrcp.f32 %v500_v35  ;;  %v291_v35 = vld [vmem:[#allocation2 + $0x18] sm:$0xff] }
 0x24a   :  { %769 = vmatpush.msra.mxu3 %v291_v35  ;;  %v241_v35 = vld [vmem:[%s4800_s16 + $0x10] sm:$0xff] }
 0x24f   :  { %v3235_v36 = vpop.eup %3234 }
 0x250   :  { %v503_v37 = vpop.xlane.xlu1 %502  ;;  %v506_v38 = vmul.f32 %v3235_v36, %v3229_v17  ;;  %v290_v36 = vld [vmem:[#allocation2 + $0x10] sm:$0xff] }
 0x251   :  { %3236 = vrcp.f32 %v503_v37  ;;  %770 = vmatpush.msra.mxu3 %v290_v36 }
 0x252   :  { %2996 = vmatmul.msk.f32.vlgmr.msrb.gmra.mxu1 %vm426_vm11, %v506_v38 }
 0x257   :  { %v3237_v39 = vpop.eup %3236 }
 0x258   :  { %v605_v40 = vpop.xlane.xlu1 %604  ;;  %v507_v41 = vmul.f32 %v3237_v39, %v3231_v23 }
 0x259   :  { %v609_v43 = vsub.f32 %v601_v28, %v605_v40 }
 0x25a   :  { %2997 = vmatmul.msk.f32.gmra.mxu1 %vm426_vm11, %v507_v41 }
 0x25b   :  { %v611_v44 = vmul.f32 1.442695, %v609_v43 }
 0x25d   :  { %3238 = vpow2.f32 %v611_v44 }
 0x260   :  { %v441_v47 = vpop.xlane.xlu1 %440 }
 0x261   :  { %3240 = vrcp.f32 %v441_v47 }
 0x262   :  { %3008 = vmatmul.msk.f32.vlgmr.msra.gmra.mxu1 %vm297_vm0, %v658_v46 }
 0x263   :  { %v3239_v48 = vpop.eup %3238 }
 0x264   :  { %v615_v50 = vsel %vm426_vm11, %v3239_v48, 0.0 }
 0x265   :  { %616 = vadd.xlane.f32.xlu1 %v615_v50  ;;  %v288_v50 = vld [vmem:[#allocation2] sm:$0xff] }
 0x267   :  { %v3241_v51 = vpop.eup %3240 }
 0x268   :  { %v447_v52 = vmul.f32 %v3241_v51, %v3233_v33 }
 0x26a   :  { %2998 = vmatmul.msk.f32.vlgmr.msrb.gmra.mxu2 %vm426_vm11, %v447_v52  ;;  %3009 = vmatmul.msk.f32.gmra.mxu1 %vm297_vm0, %v659_v53 }
 0x2cf   :  { %v4011_v54 = vpop.f32.mrf.mxu1 }
 0x2d7   :  { %v4013_v29 = vpop.f32.mrf.mxu1 }
 0x2d8   :  { %v617_v55 = vpop.xlane.xlu1 %616 }
 0x2d9   :  { %3242 = vrcp.f32 %v617_v55 }
 0x2da   :  { %3244 = vpow2.f32 %v437_v3 }
 0x2df   :  { %v3243_v57 = vpop.eup %3242  ;;  %v683_v58 = vpop.f32.mrf.mxu1 }
 0x2e0   :  { %v623_v60 = vmul.f32 %v3243_v57, %v3239_v48  ;;  %v689_v61 = vmul.f32 0.35355338, %v683_v58  ;;  %v289_v48 = vld [vmem:[#allocation2 + $0x8] sm:$0xff] }
 0x2e1   :  { %771 = vmatpush.msra.mxu3 %v289_v48 }
 0x2e2   :  { %3004 = vmatmul.msk.f32.vlgmr.msra.gmra.mxu0 %vm426_vm11, %v623_v60  ;;  %v691_v42 = vadd.f32 %v689_v61, %v3969_v49  ;;  %v3245_v49 = vpop.eup %3244 }
 0x2e3   :  { %v442_v0 = vsel %vm426_vm11, %v3245_v49, 0.0  ;;  %772 = vmatpush.msra.mxu3 %v288_v50 }
 0x2e4   :  { %v693_v2 = vsel %vm426_vm11, %v691_v42, -inf }
 0x2e5   :  { %694 = vmax.xlane.f32.xlu0 %v693_v2 }
 0x2e7   :  { %v686_v4 = vpop.f32.mrf.mxu1 }
 0x2e8   :  { %v690_v5 = vmul.f32 0.35355338, %v686_v4 }
 0x2ea   :  { %v692_v9 = vadd.f32 %v690_v5, %v3976_v56 }
 0x2ec   :  { %v696_v11 = vsel %vm426_vm11, %v692_v9, -inf }
 0x2ed   :  { %607 = vmax.xlane.f32.xlu0 %v606_v10  ;;  %697 = vmax.xlane.f32.xlu2 %v696_v11  ;;  %v562_v51 = vpop.f32.mrf.mxu2  ;;  %v3663_v10 = vmov 32.0  }
 0x2ee   :  { %v563_v55 = vadd.f32 %v562_v51, %v4011_v54  ;;  %v850_v51 = vld [vmem:[#allocation4 + $0x18] sm:$0xff] }
 0x2ef   :  { %891 = vmatpush.msrb.mxu0 %v850_v51 }
 0x2f5   :  { %443 = vadd.xlane.f32.xlu2 %v442_v0  ;;  %v855_v0 = vld [vmem:[#allocation6 + $0x18] sm:$0xff] }
 0x2f6   :  { %929 = vmatpush.msrb.mxu1 %v855_v0 }
 0x358   :  { %v695_v12 = vpop.xlane.xlu0 %694 }
 0x359   :  { %v699_v13 = vsub.f32 %v691_v42, %v695_v12  ;;  %v854_v12 = vld [vmem:[#allocation6 + $0x10] sm:$0xff] }
 0x35a   :  { %930 = vmatpush.msrb.mxu1 %v854_v12  ;;  %v3199_v12 = vld [vmem:[#allocation15] ss:$0 sm:$0xff] }
 0x35b   :  { %v701_v14 = vmul.f32 1.442695, %v699_v13 }
 0x35d   :  { %3246 = vpow2.f32 %v701_v14  ;;  %v239_v14 = vld [vmem:[%s4800_s16] sm:$0xff] }
 0x35f   :  { %v650_v53 = vpop.f32.mrf.mxu0 }
 0x360   :  { %v608_v17 = vpop.xlane.xlu0 %607  ;;  %v698_v18 = vpop.xlane.xlu2 %697  ;;  %v656_v57 = vadd.f32 %v650_v53, %v563_v55  ;;  %v848_v53 = vld [vmem:[#allocation4 + $0x8] sm:$0xff]  ;;  %v847_v55 = vld [vmem:[#allocation4] sm:$0xff] }
 0x361   :  { %v610_v19 = vsub.f32 %v602_v8, %v608_v17  ;;  %v700_v20 = vsub.f32 %v692_v9, %v698_v18  ;;  %v852_v17 = vld [vmem:[#allocation6] sm:$0xff] }
 0x363   :  { %v3247_v56 = vpop.eup %3246  ;;  %v613_v22 = vmul.f32 1.442695, %v610_v19  ;;  %v703_v23 = vmul.f32 1.442695, %v700_v20  ;;  %v861_v19 = vld [vmem:[#allocation7 + $0x18] sm:$0xff]  ;;  %v860_v20 = vld [vmem:[#allocation7 + $0x10] sm:$0xff] }
 0x364   :  { %v705_v24 = vsel %vm426_vm11, %v3247_v56, 0.0  ;;  %973 = vmatpush.msrb.mxu2 %v861_v19 }
 0x365   :  { %3248 = vpow2.f32 %v613_v22  ;;  %706 = vadd.xlane.f32.xlu0 %v705_v24  ;;  %v859_v22 = vld [vmem:[#allocation7 + $0x8] sm:$0xff] }
 0x366   :  { %3250 = vpow2.f32 %v703_v23  ;;  %974 = vmatpush.msrb.mxu2 %v860_v20  ;;  %v858_v23 = vld [vmem:[#allocation7] sm:$0xff] }
 0x368   :  { %v444_v25 = vpop.xlane.xlu2 %443  ;;  %975 = vmatpush.msrb.mxu2 %v859_v22 }
 0x369   :  { %3252 = vrcp.f32 %v444_v25  ;;  %v236_v25 = vld [vmem:[%s4799_s12 + $0x8] sm:$0xff] }
 0x36a   :  { %976 = vmatpush.msrb.mxu2 %v858_v23 }
 0x36b   :  { %v3249_v26 = vpop.eup %3248 }
 0x36c   :  { %v3251_v27 = vpop.eup %3250  ;;  %v618_v28 = vsel %vm426_vm11, %v3249_v26, 0.0 }
 0x36d   :  { %619 = vadd.xlane.f32.xlu0 %v618_v28  ;;  %v708_v30 = vsel %vm426_vm11, %v3251_v27, 0.0 }
 0x36e   :  { %709 = vadd.xlane.f32.xlu2 %v708_v30 }
 0x36f   :  { %v3253_v33 = vpop.eup %3252 }
 0x370   :  { %v448_v34 = vmul.f32 %v3253_v33, %v3245_v49 }
 0x372   :  { %2999 = vmatmul.msk.f32.gmra.mxu2 %vm426_vm11, %v448_v34  ;;  %v237_v34 = vld [vmem:[%s4799_s12 + $0x10] sm:$0xff] }
 0x3d8   :  { %v707_v37 = vpop.xlane.xlu0 %706 }
 0x3d9   :  { %3254 = vrcp.f32 %v707_v37 }
 0x3df   :  { %v3255_v38 = vpop.eup %3254 }
 0x3e0   :  { %v713_v39 = vmul.f32 %v3255_v38, %v3247_v56  ;;  %v620_v40 = vpop.xlane.xlu0 %619  ;;  %v4072_v38 = vadd.f32 %v241_v35, %v237_v34 }
 0x3e1   :  { %3256 = vrcp.f32 %v620_v40  ;;  %v710_v41 = vpop.xlane.xlu2 %709 }
 0x3e2   :  { %3258 = vrcp.f32 %v710_v41  ;;  %3010 = vmatmul.msk.f32.vlgmr.msra.gmra.mxu2 %vm426_vm11, %v713_v39 }
 0x3e3   :  { %3260 = vrcp.f32 %v3663_v10 }
 0x3e7   :  { %v3257_v43 = vpop.eup %3256 }
 0x3e8   :  { %v3259_v44 = vpop.eup %3258  ;;  %v624_v46 = vmul.f32 %v3257_v43, %v3249_v26  ;;  %v240_v26 = vld [vmem:[%s4800_s16 + $0x8] sm:$0xff]  ;;  %v238_v43 = vld [vmem:[%s4799_s12 + $0x18] sm:$0xff] }
 0x3e9   :  { %v714_v47 = vmul.f32 %v3259_v44, %v3251_v27  ;;  %v3261_v11 = vpop.eup %3260  ;;  %v4058_v27 = vadd.f32 %v240_v26, %v236_v25  ;;  %v242_v44 = vld [vmem:[%s4800_s16 + $0x18] sm:$0xff] }
 0x3ea   :  { %3005 = vmatmul.msk.f32.gmra.mxu0 %vm426_vm11, %v624_v46  ;;  %v791_v49 = vmul.f32 32.0, %v3261_v11  ;;  %vm795_vm12 = vweird.f32 %v3261_v11 }
 0x3eb   :  { %3011 = vmatmul.msk.f32.gmra.mxu2 %vm426_vm11, %v714_v47  ;;  %v4085_v47 = vadd.f32 %v242_v44, %v238_v43 }
 0x3ec   :  { %v792_v13 = vsub.f32 1.0, %v791_v49 }
 0x3ee   :  { %v793_v56 = vmul.f32 %v3261_v11, %v792_v13 }
 0x3f0   :  { %v794_v24 = vadd.f32 %v3261_v11, %v793_v56 }
 0x3f2   :  { %v4061_v28 = vsel %vm795_vm12, %v3261_v11, %v794_v24  ;;  %v3198_v11 = vld [vmem:[%s4770_s20] ss:$0 sm:$0xff] }
 0x3f5   :  { %v565_v52 = vpop.f32.mrf.mxu2 }
 0x3f6   :  { %v566_v61 = vadd.f32 %v565_v52, %v4013_v29  ;;  %v849_v52 = vld [vmem:[#allocation4 + $0x10] sm:$0xff] }
 0x3f7   :  { %892 = vmatpush.msrb.mxu0 %v849_v52  ;;  %v3202_v52 = vld [vmem:[%s4765_s15] ss:$0 sm:$0xff] }
 0x3f9   :  { %893 = vmatpush.msrb.mxu0 %v848_v53 }
 0x3fb   :  { %894 = vmatpush.msrb.mxu0 %v847_v55 }
 0x465   :  { %v740_v58 = vpop.f32.mrf.mxu2 }
 0x466   :  { %v746_v59 = vadd.f32 %v740_v58, %v656_v57 }
 0x467   :  { %v653_v60 = vpop.f32.mrf.mxu0 }
 0x468   :  { %3012 = vmatmul.msk.f32.vlgmr.msra.gmra.mxu3 %vm297_vm0, %v746_v59  ;;  %v657_v62 = vadd.f32 %v653_v60, %v566_v61 }
 0x46e   :  { %v743_v42 = vpop.f32.mrf.mxu2 }
 0x46f   :  { %v747_v63 = vadd.f32 %v743_v42, %v657_v62 }
 0x471   :  { %3013 = vmatmul.msk.f32.gmra.mxu3 %vm297_vm0, %v747_v63 }
 0x4eb   :  { %v774_v2 = vpop.f32.mrf.mxu3 }
 0x4ec   :  { %v775_v3 = vadd.f32 %v3197_v1, %v774_v2 }
 0x4ee   :  { %v780_v54 = vadd.f32 %v775_v3, %v3867_v6  ;;  %v235_v6 = vld [vmem:[%s4799_s12] sm:$0xff] }
 0x4ef   :  { %v4048_v18 = vadd.f32 %v239_v14, %v235_v6  ;;  %3023 = vmatmul.msk.f32.vlgmr.msrb.gmra.mxu2 %vm297_vm0, %v235_v6 }
 0x4f0   :  { %v784_v4 = vsel %vm297_vm0, %v780_v54, 0.0 }
 0x4f1   :  { %785 = vadd.xlane.f32.xlu1 %v784_v4  ;;  %v3201_v4 = vld [vmem:[%s4765_s15 + $0x2] ss:$0 sm:$0xff] }
 0x4f4   :  { %v777_v5 = vpop.f32.mrf.mxu3 }
 0x4f5   :  { %v778_v8 = vadd.f32 %v3197_v1, %v777_v5 }
 0x4f7   :  { %v781_v29 = vadd.f32 %v778_v8, %v3897_v15  ;;  %v853_v15 = vld [vmem:[#allocation6 + $0x8] sm:$0xff]  ;;  %3024 = vmatmul.msk.f32.gmra.mxu2 %vm297_vm0, %v236_v25  ;;  %v3200_v25 = vld [vmem:[%s4765_s15 + $0x1] ss:$0 sm:$0xff] }
 0x4f8   :  { %931 = vmatpush.msrb.mxu1 %v853_v15 }
 0x4f9   :  { %v787_v9 = vsel %vm297_vm0, %v781_v29, 0.0 }
 0x4fa   :  { %788 = vadd.xlane.f32.xlu2 %v787_v9  ;;  %932 = vmatpush.msrb.mxu1 %v852_v17 }
 0x4fb   :  { %3019 = vmatmul.msk.f32.vlgmr.msrb.gmra.mxu1 %vm297_vm0, %v4048_v18 }
 0x4ff   :  { %3025 = vmatmul.msk.f32.gmra.mxu2 %vm297_vm0, %v237_v34 }
 0x503   :  { %3020 = vmatmul.msk.f32.gmra.mxu1 %vm297_vm0, %v4058_v27 }
 0x507   :  { %3026 = vmatmul.msk.f32.gmra.mxu2 %vm297_vm0, %v238_v43 }
 0x50b   :  { %3021 = vmatmul.msk.f32.gmra.mxu1 %vm297_vm0, %v4072_v38 }
 0x513   :  { %3022 = vmatmul.msk.f32.gmra.mxu1 %vm297_vm0, %v4085_v47 }
 0x564   :  { %v786_v30 = vpop.xlane.xlu1 %785 }
 0x565   :  { %v797_v33 = vmul.f32 %v4061_v28, %v786_v30 }
 0x567   :  { %v799_v36 = vsub.f32 %v780_v54, %v797_v33 }
 0x569   :  { %v801_v37 = vmul.f32 %v799_v36, %v799_v36 }
 0x56b   :  { %v803_v39 = vsel %vm297_vm0, %v801_v37, 0.0 }
 0x56c   :  { %804 = vadd.xlane.f32.xlu0 %v803_v39 }
 0x56d   :  { %v789_v40 = vpop.xlane.xlu2 %788 }
 0x56e   :  { %v798_v41 = vmul.f32 %v4061_v28, %v789_v40 }
 0x570   :  { %v800_v46 = vsub.f32 %v781_v29, %v798_v41 }
 0x572   :  { %v802_v48 = vmul.f32 %v800_v46, %v800_v46  ;;  %v978_v5 = vpop.f32.mrf.mxu2 }
 0x573   :  { %v4097_v29 = vadd.f32 %v3201_v4, %v978_v5 }
 0x574   :  { %v806_v50 = vsel %vm297_vm0, %v802_v48, 0.0 }
 0x575   :  { %807 = vadd.xlane.f32.xlu1 %v806_v50  ;;  %v1120_v51 = vmul.f32 %v4097_v29, %v3931_v32 }
 0x578   :  { %v934_v60 = vpop.f32.mrf.mxu1 }
 0x57a   :  { %v981_v15 = vpop.f32.mrf.mxu2 }
 0x57b   :  { %v4102_v20 = vadd.f32 %v3201_v4, %v981_v15 }
 0x57d   :  { %v1121_v50 = vmul.f32 %v4102_v20, %v3931_v32 }
 0x580   :  { %v937_v54 = vpop.f32.mrf.mxu1 }
 0x581   :  { %v938_v41 = vadd.f32 %v3200_v25, %v937_v54 }
 0x582   :  { %v984_v34 = vpop.f32.mrf.mxu2 }
 0x588   :  { %v940_v14 = vpop.f32.mrf.mxu1 }
 0x589   :  { %v941_v39 = vadd.f32 %v3200_v25, %v940_v14 }
 0x58a   :  { %v987_v43 = vpop.f32.mrf.mxu2 }
 0x58b   :  { %v4125_v44 = vadd.f32 %v3201_v4, %v987_v43 }
 0x590   :  { %v943_v33 = vpop.f32.mrf.mxu1 }
 0x591   :  { %v944_v35 = vadd.f32 %v3200_v25, %v943_v33 }
 0x593   :  { %3027 = vmatpush.xpose.msk.msrb.mxu3 %vm297_vm0, %v944_v35  ;;  %3033 = vmatpush.xpose.msk.msra.mxu0 %vm297_vm0, %v944_v35 }
 0x594   :  { %3043 = vmatpush.xpose.msk.msra.mxu1 %vm297_vm0, %v944_v35 }
 0x597   :  { %3028 = vmatpush.xpose.msk.msrb.mxu3 %vm297_vm0, %v941_v39  ;;  %3034 = vmatpush.xpose.msk.msra.mxu0 %vm297_vm0, %v941_v39 }
 0x598   :  { %3044 = vmatpush.xpose.msk.msra.mxu1 %vm297_vm0, %v941_v39 }
 0x59b   :  { %3029 = vmatpush.xpose.msk.msrb.mxu3 %vm297_vm0, %v938_v41  ;;  %3035 = vmatpush.xpose.msk.msra.mxu0 %vm297_vm0, %v938_v41 }
 0x59c   :  { %3045 = vmatpush.xpose.msk.msra.mxu1 %vm297_vm0, %v938_v41 }
 0x5df   :  { %v805_v57 = vpop.xlane.xlu0 %804 }
 0x5e0   :  { %v809_v58 = vmul.f32 %v805_v57, %v4061_v28 }
 0x5e2   :  { %v811_v59 = vadd.f32 1e-05, %v809_v58 }
 0x5e4   :  { %3262 = vrsqrt.f32 %v811_v59  ;;  %vm819_vm14 = vweird.f32 %v811_v59 }
 0x5e8   :  { %v808_v61 = vpop.xlane.xlu1 %807 }
 0x5e9   :  { %v810_v62 = vmul.f32 %v808_v61, %v4061_v28 }
 0x5ea   :  { %v3263_v42 = vpop.eup %3262 }
 0x5eb   :  { %v814_v63 = vmul.f32 %v3263_v42, %v811_v59  ;;  %v812_v1 = vadd.f32 1e-05, %v810_v62  ;;  %vm820_vm13 = vweird.f32 %v3263_v42 }
 0x5ec   :  { %vm821_vm15 = vmor %vm819_vm14, %vm820_vm13 }
 0x5ed   :  { %v815_v2 = vmul.f32 %v3263_v42, %v814_v63  ;;  %3264 = vrsqrt.f32 %v812_v1  ;;  %vm829_vm2 = vweird.f32 %v812_v1 }
 0x5ef   :  { %v816_v3 = vmul.f32 0.5, %v815_v2  ;;  %v4173_v2 = vld [vmem:[%s4801_s29] sm:$0xff] }
 0x5f1   :  { %v817_v8 = vsub.f32 1.5, %v816_v3 }
 0x5f3   :  { %v3265_v9 = vpop.eup %3264  ;;  %v818_v10 = vmul.f32 %v3263_v42, %v817_v8 }
 0x5f4   :  { %v824_v49 = vmul.f32 %v3265_v9, %v812_v1  ;;  %vm830_vm1 = vweird.f32 %v3265_v9 }
 0x5f5   :  { %v822_v0 = vsel %vm821_vm15, %v3263_v42, %v818_v10  ;;  %vm831_vm3 = vmor %vm829_vm2, %vm830_vm1 }
 0x5f6   :  { %v833_v13 = vmul.f32 %v822_v0, %v799_v36  ;;  %v825_v6 = vmul.f32 %v3265_v9, %v824_v49  ;;  %v4112_v36 = vadd.f32 %v3201_v4, %v984_v34  ;;  %v1060_v34 = vmul.f32 %v4102_v20, %v3929_v31 }
 0x5f8   :  { %v838_v17 = vmul.f32 %v3198_v11, %v833_v13  ;;  %v826_v19 = vmul.f32 0.5, %v825_v6  ;;  %v1122_v48 = vmul.f32 %v4112_v36, %v3931_v32  ;;  %v1241_v33 = vmul.f32 %v4112_v36, %v3958_v45 }
 0x5fa   :  { %v4104_v56 = vadd.f32 %v3199_v12, %v838_v17  ;;  %v827_v22 = vsub.f32 1.5, %v826_v19 }
 0x5fc   :  { %v828_v23 = vmul.f32 %v3265_v9, %v827_v22  ;;  %v845_v24 = vadd.f32 %v4104_v56, %v3872_v7 }
 0x5fe   :  { %v832_v26 = vsel %vm831_vm3, %v3265_v9, %v828_v23  ;;  %3017 = vmatmul.msk.f32.vlgmr.msrb.gmra.mxu0 %vm297_vm0, %v845_v24  ;;  %v4180_v9 = vld [vmem:[%s4801_s29 + $0x8] sm:$0xff] }
 0x5ff   :  { %v834_v30 = vmul.f32 %v832_v26, %v800_v46  ;;  %v935_v46 = vadd.f32 %v3200_v25, %v934_v60  ;;  %v1062_v25 = vmul.f32 %v4125_v44, %v3929_v31  ;;  %v1061_v26 = vmul.f32 %v4112_v36, %v3929_v31 }
 0x601   :  { %v839_v37 = vmul.f32 %v3198_v11, %v834_v30  ;;  %3030 = vmatpush.xpose.msk.msrb.mxu3 %vm297_vm0, %v935_v46  ;;  %3036 = vmatpush.xpose.msk.msra.mxu0 %vm297_vm0, %v935_v46  ;;  %v1242_v30 = vmul.f32 %v4125_v44, %v3958_v45 }
 0x602   :  { %3046 = vmatpush.xpose.msk.msra.mxu1 %vm297_vm0, %v935_v46 }
 0x603   :  { %v4116_v7 = vadd.f32 %v3199_v12, %v839_v37  ;;  %1261 = vmatpush.msra.mxu2 %v1242_v30 }
 0x605   :  { %v846_v40 = vadd.f32 %v4116_v7, %v3902_v16  ;;  %v1123_v16 = vmul.f32 %v4125_v44, %v3931_v32  ;;  %1171 = vmatpush.msrb.mxu0 %v1062_v25  ;;  %1262 = vmatpush.msra.mxu2 %v1241_v33 }
 0x607   :  { %3018 = vmatmul.msk.f32.gmra.mxu0 %vm297_vm0, %v846_v40  ;;  %1142 = vmatpush.msra.mxu3 %v1123_v16  ;;  %v1239_v16 = vmul.f32 %v4097_v29, %v3958_v45 }
 0x608   :  { %1172 = vmatpush.msrb.mxu0 %v1061_v26 }
 0x609   :  { %1143 = vmatpush.msra.mxu3 %v1122_v48 }
 0x60a   :  { %1173 = vmatpush.msrb.mxu0 %v1060_v34 }
 0x60b   :  { %1144 = vmatpush.msra.mxu3 %v1121_v50 }
 0x60d   :  { %1145 = vmatpush.msra.mxu3 %v1120_v51 }
 0x67b   :  { %v896_v53 = vpop.f32.mrf.mxu0 }
 0x67c   :  { %v4144_v55 = vadd.f32 %v3202_v52, %v896_v53 }
 0x67e   :  { %v990_v57 = vmul.f32 %v4144_v55, %v3929_v31  ;;  %v1063_v58 = vmul.f32 %v4144_v55, %v3931_v32  ;;  %v1182_v59 = vmul.f32 %v4144_v55, %v3958_v45 }
 0x680   :  { %3031 = vmatmul.msk.f32.vlgmr.msrb.gmra.mxu3 %vm297_vm0, %v990_v57  ;;  %3037 = vmatmul.msk.f32.vlgmr.msra.gmra.mxu0 %vm297_vm0, %v1063_v58  ;;  %v1331_v58 = vmul.f32 %v4097_v29, %v3914_v21 }
 0x681   :  { %3047 = vmatmul.msk.f32.vlgmr.msra.gmra.mxu1 %vm297_vm0, %v1182_v59  ;;  %3051 = vmatpush.xpose.msk.msrb.mxu3 %vm297_vm0, %v944_v35 }
 0x684   :  { %v899_v60 = vpop.f32.mrf.mxu0 }
 0x685   :  { %v4156_v61 = vadd.f32 %v3202_v52, %v899_v60  ;;  %3052 = vmatpush.xpose.msk.msrb.mxu3 %vm297_vm0, %v941_v39  ;;  %v1240_v39 = vmul.f32 %v4102_v20, %v3958_v45  ;;  %v1333_v52 = vmul.f32 %v4112_v36, %v3914_v21 }
 0x687   :  { %v991_v62 = vmul.f32 %v4156_v61, %v3929_v31  ;;  %v1064_v42 = vmul.f32 %v4156_v61, %v3931_v32  ;;  %v1183_v63 = vmul.f32 %v4156_v61, %v3958_v45  ;;  %1263 = vmatpush.msra.mxu2 %v1240_v39 }
 0x689   :  { %3032 = vmatmul.msk.f32.gmra.mxu3 %vm297_vm0, %v991_v62  ;;  %3038 = vmatmul.msk.f32.gmra.mxu0 %vm297_vm0, %v1064_v42 }
 0x68a   :  { %3048 = vmatmul.msk.f32.gmra.mxu1 %vm297_vm0, %v1183_v63  ;;  %3053 = vmatpush.xpose.msk.msrb.mxu3 %vm297_vm0, %v938_v41  ;;  %v1059_v41 = vmul.f32 %v4097_v29, %v3929_v31 }
 0x68b   :  { %1264 = vmatpush.msra.mxu2 %v1239_v16 }
 0x68c   :  { %1174 = vmatpush.msrb.mxu0 %v1059_v41 }
 0x68e   :  { %3054 = vmatpush.xpose.msk.msrb.mxu3 %vm297_vm0, %v935_v46  ;;  %v1334_v46 = vmul.f32 %v4125_v44, %v3914_v21  ;;  %v1332_v44 = vmul.f32 %v4102_v20, %v3914_v21 }
 0x690   :  { %1353 = vmatpush.msra.mxu0 %v1334_v46 }
 0x692   :  { %1354 = vmatpush.msra.mxu0 %v1333_v52 }
 0x694   :  { %1355 = vmatpush.msra.mxu0 %v1332_v44 }
 0x696   :  { %1356 = vmatpush.msra.mxu0 %v1331_v58 }
 0x6fd   :  { %v1088_v1 = vpop.f32.mrf.mxu0 }
 0x6fe   :  { %v1094_v3 = vmul.f32 0.35355338, %v1088_v1  ;;  %v1207_v5 = vpop.f32.mrf.mxu1 }
 0x6ff   :  { %v1213_v42 = vmul.f32 0.35355338, %v1207_v5 }
 0x700   :  { %v1096_v54 = vadd.f32 %v1094_v3, %v4173_v2 }
 0x701   :  { %v1215_v1 = vadd.f32 %v1213_v42, %v4173_v2 }
 0x702   :  { %v1098_v4 = vsel %vm297_vm0, %v1096_v54, -inf }
 0x703   :  { %1099 = vmax.xlane.f32.xlu2 %v1098_v4  ;;  %v1027_v11 = vpop.f32.mrf.mxu3  ;;  %v1217_v29 = vsel %vm297_vm0, %v1215_v1, -inf }
 0x704   :  { %v1033_v0 = vmul.f32 0.35355338, %v1027_v11 }
 0x706   :  { %v1091_v8 = vpop.f32.mrf.mxu0  ;;  %v1035_v13 = vadd.f32 %v1033_v0, %v4173_v2 }
 0x707   :  { %v1095_v10 = vmul.f32 0.35355338, %v1091_v8  ;;  %v1210_v6 = vpop.f32.mrf.mxu1 }
 0x708   :  { %v1214_v14 = vmul.f32 0.35355338, %v1210_v6  ;;  %v1037_v15 = vsel %vm297_vm0, %v1035_v13, -inf }
 0x709   :  { %v1097_v49 = vadd.f32 %v1095_v10, %v4180_v9 }
 0x70a   :  { %v1216_v17 = vadd.f32 %v1214_v14, %v4180_v9 }
 0x70b   :  { %v1101_v12 = vsel %vm297_vm0, %v1097_v49, -inf }
 0x70c   :  { %1102 = vmax.xlane.f32.xlu0 %v1101_v12  ;;  %v1220_v19 = vsel %vm297_vm0, %v1216_v17, -inf  ;;  %v1030_v35 = vpop.f32.mrf.mxu3 }
 0x70d   :  { %v1034_v48 = vmul.f32 0.35355338, %v1030_v35 }
 0x70f   :  { %v1036_v53 = vadd.f32 %v1034_v48, %v4180_v9 }
 0x711   :  { %v1040_v36 = vsel %vm297_vm0, %v1036_v53, -inf }
 0x714   :  { %1038 = vmax.xlane.f32.xlu0 %v1037_v15 }
 0x71c   :  { %1221 = vmax.xlane.f32.xlu0 %v1220_v19 }
 0x776   :  { %v1100_v22 = vpop.xlane.xlu2 %1099 }
 0x777   :  { %v1104_v23 = vsub.f32 %v1096_v54, %v1100_v22  ;;  %v1275_v22 = vmul.f32 %v4156_v61, %v3914_v21 }
 0x779   :  { %v1106_v24 = vmul.f32 1.442695, %v1104_v23 }
 0x77b   :  { %3266 = vpow2.f32 %v1106_v24 }
 0x77f   :  { %v1103_v37 = vpop.xlane.xlu0 %1102 }
 0x780   :  { %v1105_v40 = vsub.f32 %v1097_v49, %v1103_v37 }
 0x781   :  { %v3267_v43 = vpop.eup %3266 }
 0x782   :  { %v1108_v50 = vmul.f32 1.442695, %v1105_v40  ;;  %v1110_v51 = vsel %vm297_vm0, %v3267_v43, 0.0 }
 0x783   :  { %1111 = vadd.xlane.f32.xlu1 %v1110_v51 }
 0x784   :  { %3268 = vpow2.f32 %v1108_v50 }
 0x787   :  { %v1039_v57 = vpop.xlane.xlu0 %1038 }
 0x788   :  { %v1043_v59 = vsub.f32 %v1035_v13, %v1039_v57 }
 0x78a   :  { %v3269_v60 = vpop.eup %3268  ;;  %v1045_v62 = vmul.f32 1.442695, %v1043_v59 }
 0x78b   :  { %v1113_v63 = vsel %vm297_vm0, %v3269_v60, 0.0  ;;  %1041 = vmax.xlane.f32.xlu1 %v1040_v36 }
 0x78c   :  { %3270 = vpow2.f32 %v1045_v62  ;;  %1114 = vadd.xlane.f32.xlu2 %v1113_v63 }
 0x78f   :  { %v1222_v20 = vpop.xlane.xlu0 %1221 }
 0x790   :  { %v1224_v3 = vsub.f32 %v1216_v17, %v1222_v20  ;;  %v1274_v17 = vmul.f32 %v4144_v55, %v3914_v21 }
 0x792   :  { %v3271_v54 = vpop.eup %3270  ;;  %v1227_v4 = vmul.f32 1.442695, %v1224_v3 }
 0x793   :  { %v1049_v8 = vsel %vm297_vm0, %v3271_v54, 0.0 }
 0x794   :  { %3272 = vpow2.f32 %v1227_v4  ;;  %1218 = vmax.xlane.f32.xlu2 %v1217_v29  ;;  %1050 = vadd.xlane.f32.xlu0 %v1049_v8 }
 0x79a   :  { %v4219_v5 = vpop.eup %3272 }
 0x79b   :  { %v1232_v10 = vsel %vm297_vm0, %v4219_v5, 0.0 }
 0x79c   :  { %1233 = vadd.xlane.f32.xlu0 %v1232_v10  ;;  %v867_v10 = vld [vmem:[#allocation9 + $0x18] sm:$0xff] }
 0x79d   :  { %1387 = vmatpush.msrb.mxu1 %v867_v10  ;;  %v1500_v10 = vld [vmem:[%s4768_s18 + $0x18] sm:$0xff] }
 0x7f6   :  { %v1112_v11 = vpop.xlane.xlu1 %1111 }
 0x7f7   :  { %3274 = vrcp.f32 %v1112_v11  ;;  %v866_v11 = vld [vmem:[#allocation9 + $0x10] sm:$0xff] }
 0x7f8   :  { %1388 = vmatpush.msrb.mxu1 %v866_v11 }
 0x7fd   :  { %v3275_v49 = vpop.eup %3274 }
 0x7fe   :  { %v1118_v0 = vmul.f32 %v3275_v49, %v3267_v43  ;;  %v1042_v25 = vpop.xlane.xlu1 %1041 }
 0x7ff   :  { %v1115_v12 = vpop.xlane.xlu2 %1114  ;;  %v1044_v26 = vsub.f32 %v1036_v53, %v1042_v25 }
 0x800   :  { %3276 = vrcp.f32 %v1115_v12  ;;  %3039 = vmatmul.msk.f32.vlgmr.msra.gmra.mxu3 %vm297_vm0, %v1118_v0 }
 0x801   :  { %v1047_v30 = vmul.f32 1.442695, %v1044_v26 }
 0x806   :  { %v3277_v13 = vpop.eup %3276 }
 0x807   :  { %v1051_v6 = vpop.xlane.xlu0 %1050  ;;  %v1119_v14 = vmul.f32 %v3277_v13, %v3269_v60  ;;  %v1219_v34 = vpop.xlane.xlu2 %1218 }
 0x808   :  { %3278 = vrcp.f32 %v1051_v6  ;;  %v1223_v37 = vsub.f32 %v1215_v1, %v1219_v34 }
 0x809   :  { %3040 = vmatmul.msk.f32.gmra.mxu3 %vm297_vm0, %v1119_v14  ;;  %3280 = vpow2.f32 %v1047_v30  ;;  %v865_v14 = vld [vmem:[#allocation9 + $0x8] sm:$0xff] }
 0x80a   :  { %v1225_v61 = vmul.f32 1.442695, %v1223_v37  ;;  %1389 = vmatpush.msrb.mxu1 %v865_v14 }
 0x80c   :  { %3282 = vpow2.f32 %v1225_v61 }
 0x80e   :  { %v3279_v15 = vpop.eup %3278 }
 0x80f   :  { %v1057_v19 = vmul.f32 %v3279_v15, %v3271_v54  ;;  %v3281_v43 = vpop.eup %3280  ;;  %v1234_v20 = vpop.xlane.xlu0 %1233 }
 0x810   :  { %v1052_v48 = vsel %vm297_vm0, %v3281_v43, 0.0 }
 0x811   :  { %3041 = vmatmul.msk.f32.vlgmr.msrb.gmra.mxu0 %vm297_vm0, %v1057_v19  ;;  %3055 = vmatmul.msk.f32.vlgmr.msrb.gmra.mxu3 %vm297_vm0, %v1274_v17 }
 0x812   :  { %v3283_v50 = vpop.eup %3282 }
 0x819   :  { %3056 = vmatmul.msk.f32.gmra.mxu3 %vm297_vm0, %v1275_v22 }
 0x883   :  { %v4232_v23 = vpop.f32.mrf.mxu3 }
 0x88c   :  { %v4234_v24 = vpop.f32.mrf.mxu3 }
 0x88e   :  { %v1176_v15 = vpop.f32.mrf.mxu0 }
 0x88f   :  { %v1177_v22 = vadd.f32 %v1176_v15, %v4232_v23 }
 0x894   :  { %v1299_v33 = vpop.f32.mrf.mxu3 }
 0x895   :  { %v1305_v55 = vmul.f32 0.35355338, %v1299_v33 }
 0x897   :  { %v1307_v35 = vadd.f32 %v1305_v55, %v4173_v2  ;;  %v1229_v2 = vsel %vm297_vm0, %v3283_v50, 0.0 }
 0x899   :  { %v1309_v39 = vsel %vm297_vm0, %v1307_v35, -inf }
 0x89a   :  { %1310 = vmax.xlane.f32.xlu1 %v1309_v39  ;;  %v3203_v39 = vld [vmem:[%s4765_s15 + $0x3] ss:$0 sm:$0xff] }
 0x89c   :  { %v1302_v40 = vpop.f32.mrf.mxu3 }
 0x89d   :  { %v1306_v41 = vmul.f32 0.35355338, %v1302_v40 }
 0x89f   :  { %v1308_v46 = vadd.f32 %v1306_v41, %v4180_v9 }
 0x8a1   :  { %v1312_v16 = vsel %vm297_vm0, %v1308_v46, -inf }
 0x8a2   :  { %1313 = vmax.xlane.f32.xlu2 %v1312_v16  ;;  %1053 = vadd.xlane.f32.xlu1 %v1052_v48 }
 0x8aa   :  { %1230 = vadd.xlane.f32.xlu2 %v1229_v2 }
 0x90d   :  { %v1311_v51 = vpop.xlane.xlu1 %1310 }
 0x90e   :  { %v1315_v52 = vsub.f32 %v1307_v35, %v1311_v51 }
 0x910   :  { %v1317_v44 = vmul.f32 1.442695, %v1315_v52 }
 0x912   :  { %3284 = vpow2.f32 %v1317_v44 }
 0x915   :  { %v1314_v53 = vpop.xlane.xlu2 %1313  ;;  %v1054_v57 = vpop.xlane.xlu1 %1053 }
 0x916   :  { %v1316_v58 = vsub.f32 %v1308_v46, %v1314_v53  ;;  %3286 = vrcp.f32 %v1054_v57 }
 0x918   :  { %v3285_v9 = vpop.eup %3284  ;;  %v1319_v59 = vmul.f32 1.442695, %v1316_v58 }
 0x919   :  { %v1321_v60 = vsel %vm297_vm0, %v3285_v9, 0.0 }
 0x91a   :  { %3288 = vpow2.f32 %v1319_v59  ;;  %1322 = vadd.xlane.f32.xlu1 %v1321_v60  ;;  %v1459_v59 = vld [vmem:[#allocation10 + $0x8] sm:$0xff]  ;;  %v1458_v60 = vld [vmem:[#allocation10] sm:$0xff] }
 0x91c   :  { %v3287_v62 = vpop.eup %3286 }
 0x91d   :  { %v1231_v36 = vpop.xlane.xlu2 %1230  ;;  %v1058_v42 = vmul.f32 %v3287_v62, %v3281_v43 }
 0x91e   :  { %3290 = vrcp.f32 %v1231_v36 }
 0x91f   :  { %3042 = vmatmul.msk.f32.gmra.mxu0 %vm297_vm0, %v1058_v42  ;;  %3292 = vrcp.f32 %v1234_v20  ;;  %v1503_v20 = vld [vmem:[%s4768_s18 + $0x30] sm:$0xff] }
 0x920   :  { %v3289_v63 = vpop.eup %3288 }
 0x921   :  { %v1324_v1 = vsel %vm297_vm0, %v3289_v63, 0.0 }
 0x922   :  { %1325 = vadd.xlane.f32.xlu2 %v1324_v1  ;;  %v1502_v1 = vld [vmem:[%s4768_s18 + $0x28] sm:$0xff] }
 0x924   :  { %v3291_v3 = vpop.eup %3290 }
 0x925   :  { %v1237_v54 = vmul.f32 %v3291_v3, %v3283_v50  ;;  %v3293_v4 = vpop.eup %3292 }
 0x926   :  { %v1238_v29 = vmul.f32 %v3293_v4, %v4219_v5  ;;  %v864_v5 = vld [vmem:[#allocation9] sm:$0xff] }
 0x927   :  { %3049 = vmatmul.msk.f32.vlgmr.msra.gmra.mxu2 %vm297_vm0, %v1237_v54  ;;  %1390 = vmatpush.msrb.mxu1 %v864_v5  ;;  %v1501_v4 = vld [vmem:[%s4768_s18 + $0x20] sm:$0xff] }
 0x928   :  { %v3204_v5 = vld [vmem:[%s4770_s20 + $0x1] ss:$0 sm:$0xff] }
 0x92f   :  { %3050 = vmatmul.msk.f32.gmra.mxu2 %vm297_vm0, %v1238_v29 }
 0x98d   :  { %v1323_v8 = vpop.xlane.xlu1 %1322 }
 0x98e   :  { %3294 = vrcp.f32 %v1323_v8 }
 0x994   :  { %v3295_v49 = vpop.eup %3294 }
 0x995   :  { %v1329_v0 = vmul.f32 %v3295_v49, %v3285_v9  ;;  %v1326_v12 = vpop.xlane.xlu2 %1325  ;;  %v1460_v9 = vld [vmem:[#allocation10 + $0x10] sm:$0xff] }
 0x996   :  { %3296 = vrcp.f32 %v1326_v12 }
 0x997   :  { %3057 = vmatmul.msk.f32.vlgmr.msra.gmra.mxu0 %vm297_vm0, %v1329_v0 }
 0x99c   :  { %v3297_v13 = vpop.eup %3296  ;;  %v1179_v17 = vpop.f32.mrf.mxu0 }
 0x99d   :  { %v1330_v6 = vmul.f32 %v3297_v13, %v3289_v63  ;;  %v1180_v34 = vadd.f32 %v1179_v17, %v4234_v24  ;;  %v1504_v63 = vld [vmem:[%s4768_s18 + $0x38] sm:$0xff] }
 0x99e   :  { %1524 = vmatpush.msra.mxu3 %v1504_v63 }
 0x99f   :  { %3058 = vmatmul.msk.f32.gmra.mxu0 %vm297_vm0, %v1330_v6 }
 0x9a0   :  { %1525 = vmatpush.msra.mxu3 %v1503_v20 }
 0x9a2   :  { %1526 = vmatpush.msra.mxu3 %v1502_v1 }
 0x9a4   :  { %1527 = vmatpush.msra.mxu3 %v1501_v4  ;;  %v3070_v4 = vld [vmem:[%s4797_s9 + $0x38] sm:$0xff] }
 0x9a5   :  { %1650 = vmatpush.msrb.mxu0 %v3070_v4 }
 0x9a6   :  { %1528 = vmatpush.msra.mxu3 %v1500_v10  ;;  %v3069_v10 = vld [vmem:[%s4797_s9 + $0x30] sm:$0xff] }
 0x9a7   :  { %1651 = vmatpush.msrb.mxu0 %v3069_v10 }
 0x9aa   :  { %v1266_v19 = vpop.f32.mrf.mxu2 }
 0x9ab   :  { %v1272_v25 = vadd.f32 %v1266_v19, %v1177_v22  ;;  %v3205_v22 = vld [vmem:[#allocation15 + $0x1] ss:$0 sm:$0xff] }
 0x9b2   :  { %v1269_v33 = vpop.f32.mrf.mxu2 }
 0x9b3   :  { %v1273_v55 = vadd.f32 %v1269_v33, %v1180_v34 }
 0xa14   :  { %v1358_v26 = vpop.f32.mrf.mxu0 }
 0xa15   :  { %v1364_v30 = vadd.f32 %v1358_v26, %v1272_v25 }
 0xa17   :  { %3059 = vmatmul.msk.f32.vlgmr.msrb.gmra.mxu1 %vm297_vm0, %v1364_v30 }
 0xa1c   :  { %v1361_v35 = vpop.f32.mrf.mxu0 }
 0xa1d   :  { %v1365_v37 = vadd.f32 %v1361_v35, %v1273_v55 }
 0xa1f   :  { %3060 = vmatmul.msk.f32.gmra.mxu1 %vm297_vm0, %v1365_v37 }
 0xa94   :  { %v1392_v61 = vpop.f32.mrf.mxu1 }
 0xa95   :  { %v1393_v40 = vadd.f32 %v3203_v39, %v1392_v61  ;;  %v1499_v61 = vld [vmem:[%s4768_s18 + $0x10] sm:$0xff] }
 0xa96   :  { %1529 = vmatpush.msra.mxu3 %v1499_v61  ;;  %v3208_v61 = vld [vmem:[%s4770_s20 + $0x2] ss:$0 sm:$0xff] }
 0xa97   :  { %v1398_v23 = vadd.f32 %v1393_v40, %v4104_v56  ;;  %v1498_v40 = vld [vmem:[%s4768_s18 + $0x8] sm:$0xff] }
 0xa98   :  { %1530 = vmatpush.msra.mxu3 %v1498_v40 }
 0xa99   :  { %v1404_v41 = vsel %vm297_vm0, %v1398_v23, 0.0 }
 0xa9a   :  { %1405 = vadd.xlane.f32.xlu0 %v1404_v41  ;;  %v3206_v41 = vld [vmem:[#allocation12] ss:$0 sm:$0xff] }
 0xa9c   :  { %v1395_v43 = vpop.f32.mrf.mxu1 }
 0xa9d   :  { %v1396_v46 = vadd.f32 %v3203_v39, %v1395_v43 }
 0xa9f   :  { %v1399_v24 = vadd.f32 %v1396_v46, %v4116_v7  ;;  %v1461_v7 = vld [vmem:[#allocation10 + $0x18] sm:$0xff] }
 0xaa0   :  { %1484 = vmatpush.msrb.mxu2 %v1461_v7 }
 0xaa1   :  { %v1407_v16 = vsel %vm297_vm0, %v1399_v24, 0.0 }
 0xaa2   :  { %1408 = vadd.xlane.f32.xlu1 %v1407_v16  ;;  %1485 = vmatpush.msrb.mxu2 %v1460_v9 }
 0xaa4   :  { %1486 = vmatpush.msrb.mxu2 %v1459_v59 }
 0xaa6   :  { %1487 = vmatpush.msrb.mxu2 %v1458_v60 }
 0xb0d   :  { %v1406_v48 = vpop.xlane.xlu0 %1405 }
 0xb0e   :  { %v1410_v50 = vmul.f32 %v1406_v48, %v4061_v28 }
 0xb10   :  { %v1412_v2 = vsub.f32 %v1398_v23, %v1410_v50  ;;  %v1497_v23 = vld [vmem:[%s4768_s18] sm:$0xff] }
 0xb11   :  { %1531 = vmatpush.msra.mxu3 %v1497_v23 }
 0xb12   :  { %v1414_v51 = vmul.f32 %v1412_v2, %v1412_v2 }
 0xb14   :  { %v1416_v52 = vsel %vm297_vm0, %v1414_v51, 0.0 }
 0xb15   :  { %1417 = vadd.xlane.f32.xlu2 %v1416_v52  ;;  %v1409_v44 = vpop.xlane.xlu1 %1408 }
 0xb16   :  { %v1411_v56 = vmul.f32 %v1409_v44, %v4061_v28 }
 0xb18   :  { %v1413_v53 = vsub.f32 %v1399_v24, %v1411_v56 }
 0xb1a   :  { %v1415_v57 = vmul.f32 %v1413_v53, %v1413_v53 }
 0xb1c   :  { %v1419_v58 = vsel %vm297_vm0, %v1415_v57, 0.0 }
 0xb1d   :  { %1420 = vadd.xlane.f32.xlu0 %v1419_v58 }
 0xb88   :  { %v1418_v62 = vpop.xlane.xlu2 %1417 }
 0xb89   :  { %v1422_v36 = vmul.f32 %v1418_v62, %v4061_v28 }
 0xb8b   :  { %v1424_v42 = vadd.f32 1e-05, %v1422_v36 }
 0xb8d   :  { %3298 = vrsqrt.f32 %v1424_v42  ;;  %vm1432_vm5 = vweird.f32 %v1424_v42 }
 0xb90   :  { %v1421_v3 = vpop.xlane.xlu0 %1420 }
 0xb91   :  { %v1423_v54 = vmul.f32 %v1421_v3, %v4061_v28 }
 0xb93   :  { %v3299_v29 = vpop.eup %3298  ;;  %v1425_v8 = vadd.f32 1e-05, %v1423_v54  ;;  %v3080_v54 = vld [vmem:[%s4794_s1 + $0x38] sm:$0xff] }
 0xb94   :  { %v1427_v11 = vmul.f32 %v3299_v29, %v1424_v42  ;;  %vm1433_vm4 = vweird.f32 %v3299_v29  ;;  %1708 = vmatpush.msra.mxu2 %v3080_v54 }
 0xb95   :  { %3300 = vrsqrt.f32 %v1425_v8  ;;  %vm1434_vm6 = vmor %vm1432_vm5, %vm1433_vm4  ;;  %vm1442_vm8 = vweird.f32 %v1425_v8 }
 0xb96   :  { %v1428_v49 = vmul.f32 %v3299_v29, %v1427_v11  ;;  %v3074_v11 = vld [vmem:[%s4793_s13 + $0x30] sm:$0xff] }
 0xb98   :  { %v1429_v0 = vmul.f32 0.5, %v1428_v49  ;;  %v3078_v49 = vld [vmem:[%s4794_s1 + $0x28] sm:$0xff] }
 0xb9a   :  { %v1430_v12 = vsub.f32 1.5, %v1429_v0  ;;  %v3068_v0 = vld [vmem:[%s4797_s9 + $0x28] sm:$0xff] }
 0xb9b   :  { %v3301_v13 = vpop.eup %3300  ;;  %1652 = vmatpush.msrb.mxu0 %v3068_v0 }
 0xb9c   :  { %v1431_v6 = vmul.f32 %v3299_v29, %v1430_v12  ;;  %v1437_v14 = vmul.f32 %v3301_v13, %v1425_v8  ;;  %vm1443_vm7 = vweird.f32 %v3301_v13  ;;  %v3079_v8 = vld [vmem:[%s4794_s1 + $0x30] sm:$0xff]  ;;  %v3073_v12 = vld [vmem:[%s4793_s13 + $0x28] sm:$0xff] }
 0xb9d   :  { %vm1444_vm9 = vmor %vm1442_vm8, %vm1443_vm7  ;;  %1709 = vmatpush.msra.mxu2 %v3079_v8 }
 0xb9e   :  { %v1435_v15 = vsel %vm1434_vm6, %v3299_v29, %v1431_v6  ;;  %v1438_v17 = vmul.f32 %v3301_v13, %v1437_v14  ;;  %v3075_v29 = vld [vmem:[%s4793_s13 + $0x38] sm:$0xff]  ;;  %v3067_v6 = vld [vmem:[%s4797_s9 + $0x20] sm:$0xff] }
 0xb9f   :  { %v1446_v19 = vmul.f32 %v1435_v15, %v1412_v2  ;;  %v3207_v2 = vld [vmem:[#allocation13] ss:$0 sm:$0xff]  ;;  %1676 = vmatpush.msra.mxu1 %v3075_v29  ;;  %1710 = vmatpush.msra.mxu2 %v3078_v49 }
 0xba0   :  { %v1439_v25 = vmul.f32 0.5, %v1438_v17  ;;  %v3072_v14 = vld [vmem:[%s4793_s13 + $0x20] sm:$0xff]  ;;  %1653 = vmatpush.msrb.mxu0 %v3067_v6 }
 0xba1   :  { %v1451_v26 = vmul.f32 %v3204_v5, %v1446_v19  ;;  %1677 = vmatpush.msra.mxu1 %v3074_v11 }
 0xba2   :  { %v1440_v30 = vsub.f32 1.5, %v1439_v25 }
 0xba3   :  { %v1456_v33 = vadd.f32 %v3205_v22, %v1451_v26  ;;  %1678 = vmatpush.msra.mxu1 %v3073_v12 }
 0xba4   :  { %v1441_v34 = vmul.f32 %v3301_v13, %v1440_v30 }
 0xba5   :  { %3062 = vmatmul.msk.f32.vlgmr.msrb.gmra.mxu2 %vm297_vm0, %v1456_v33  ;;  %1679 = vmatpush.msra.mxu1 %v3072_v14 }
 0xba6   :  { %v1445_v55 = vsel %vm1444_vm9, %v3301_v13, %v1441_v34  ;;  %v3077_v13 = vld [vmem:[%s4794_s1 + $0x20] sm:$0xff] }
 0xba7   :  { %v1447_v35 = vmul.f32 %v1445_v55, %v1413_v53  ;;  %1711 = vmatpush.msra.mxu2 %v3077_v13 }
 0xba9   :  { %v1452_v37 = vmul.f32 %v3204_v5, %v1447_v35 }
 0xbab   :  { %v1457_v39 = vadd.f32 %v3205_v22, %v1452_v37 }
 0xbad   :  { %3063 = vmatmul.msk.f32.gmra.mxu2 %vm297_vm0, %v1457_v39 }
 0xc28   :  { %v1489_v43 = vpop.f32.mrf.mxu2 }
 0xc29   :  { %v1490_v46 = vadd.f32 %v3206_v41, %v1489_v43  ;;  %v3209_v43 = vld [vmem:[#allocation15 + $0x2] ss:$0 sm:$0xff] }
 0xc2b   :  { %v1495_v24 = vmax.f32 %v1490_v46, 0.0 }
 0xc2d   :  { %3064 = vmatmul.msk.f32.vlgmr.msra.gmra.mxu3 %vm1509_vm10, %v1495_v24 }
 0xc30   :  { %v1492_v16 = vpop.f32.mrf.mxu2 }
 0xc31   :  { %v1493_v48 = vadd.f32 %v3206_v41, %v1492_v16 }
 0xc33   :  { %v1496_v50 = vmax.f32 %v1493_v48, 0.0 }
 0xc35   :  { %3065 = vmatmul.msk.f32.gmra.mxu3 %vm1509_vm10, %v1496_v50 }
 0xcb0   :  { %v1533_v51 = vpop.f32.mrf.mxu3 }
 0xcb1   :  { %v1534_v52 = vadd.f32 %v3207_v2, %v1533_v51 }
 0xcb3   :  { %v1539_v44 = vadd.f32 %v1534_v52, %v1456_v33 }
 0xcb5   :  { %v1545_v56 = vsel %vm297_vm0, %v1539_v44, 0.0 }
 0xcb6   :  { %1546 = vadd.xlane.f32.xlu1 %v1545_v56 }
 0xcb8   :  { %v1536_v53 = vpop.f32.mrf.mxu3 }
 0xcb9   :  { %v1537_v57 = vadd.f32 %v3207_v2, %v1536_v53  ;;  %v4356_v2 = vld [vmem:[%s4796_s8] sm:$0xff] }
 0xcbb   :  { %v1540_v58 = vadd.f32 %v1537_v57, %v1457_v39  ;;  %v4370_v57 = vld [vmem:[%s4796_s8 + $0x8] sm:$0xff] }
 0xcbd   :  { %v1548_v7 = vsel %vm297_vm0, %v1540_v58, 0.0 }
 0xcbe   :  { %1549 = vadd.xlane.f32.xlu2 %v1548_v7 }
 0xd29   :  { %v1547_v9 = vpop.xlane.xlu1 %1546 }
 0xd2a   :  { %v1551_v59 = vmul.f32 %v1547_v9, %v4061_v28 }
 0xd2c   :  { %v1553_v60 = vsub.f32 %v1539_v44, %v1551_v59 }
 0xd2e   :  { %v1555_v62 = vmul.f32 %v1553_v60, %v1553_v60 }
 0xd30   :  { %v1557_v36 = vsel %vm297_vm0, %v1555_v62, 0.0  ;;  %v3210_v62 = vld [vmem:[%s4760_s10 + $0x4] ss:$0 sm:$0xff] }
 0xd31   :  { %v1550_v42 = vpop.xlane.xlu2 %1549  ;;  %1558 = vadd.xlane.f32.xlu0 %v1557_v36 }
 0xd32   :  { %v1552_v63 = vmul.f32 %v1550_v42, %v4061_v28  ;;  %v3212_v42 = vld [vmem:[%s4760_s10 + $0x6] ss:$0 sm:$0xff] }
 0xd34   :  { %v4303_v20 = vsub.f32 %v1540_v58, %v1552_v63 }
 0xd36   :  { %v1556_v1 = vmul.f32 %v4303_v20, %v4303_v20 }
 0xd38   :  { %v1560_v3 = vsel %vm297_vm0, %v1556_v1, 0.0 }
 0xd39   :  { %1561 = vadd.xlane.f32.xlu1 %v1560_v3 }
 0xda4   :  { %v1559_v5 = vpop.xlane.xlu0 %1558 }
 0xda5   :  { %v1563_v15 = vmul.f32 %v1559_v5, %v4061_v28 }
 0xda7   :  { %v1565_v17 = vadd.f32 1e-05, %v1563_v15 }
 0xda9   :  { %3302 = vrsqrt.f32 %v1565_v17  ;;  %vm1573_vm13 = vweird.f32 %v1565_v17 }
 0xdac   :  { %v1562_v19 = vpop.xlane.xlu1 %1561 }
 0xdad   :  { %v1564_v22 = vmul.f32 %v1562_v19, %v4061_v28 }
 0xdaf   :  { %v3303_v25 = vpop.eup %3302  ;;  %v1566_v26 = vadd.f32 1e-05, %v1564_v22 }
 0xdb0   :  { %v1568_v30 = vmul.f32 %v3303_v25, %v1565_v17  ;;  %vm1574_vm12 = vweird.f32 %v3303_v25 }
 0xdb1   :  { %3304 = vrsqrt.f32 %v1566_v26  ;;  %vm1575_vm14 = vmor %vm1573_vm13, %vm1574_vm12  ;;  %vm1583_vm1 = vweird.f32 %v1566_v26 }
 0xdb2   :  { %v1569_v33 = vmul.f32 %v3303_v25, %v1568_v30 }
 0xdb4   :  { %v1570_v34 = vmul.f32 0.5, %v1569_v33  ;;  %v4426_v33 = vld [vmem:[%s4798_s21] sm:$0xff] }
 0xdb6   :  { %v1571_v55 = vsub.f32 1.5, %v1570_v34 }
 0xdb7   :  { %v3305_v35 = vpop.eup %3304 }
 0xdb8   :  { %v1572_v37 = vmul.f32 %v3303_v25, %v1571_v55  ;;  %v1578_v39 = vmul.f32 %v3305_v35, %v1566_v26  ;;  %vm1584_vm15 = vweird.f32 %v3305_v35 }
 0xdb9   :  { %vm1585_vm2 = vmor %vm1583_vm1, %vm1584_vm15 }
 0xdba   :  { %v1576_v40 = vsel %vm1575_vm14, %v3303_v25, %v1572_v37  ;;  %v1579_v23 = vmul.f32 %v3305_v35, %v1578_v39 }
 0xdbb   :  { %v1587_v41 = vmul.f32 %v1576_v40, %v1553_v60  ;;  %v3211_v60 = vld [vmem:[%s4760_s10 + $0x5] ss:$0 sm:$0xff] }
 0xdbc   :  { %v1580_v46 = vmul.f32 0.5, %v1579_v23 }
 0xdbd   :  { %v1592_v24 = vmul.f32 %v3208_v61, %v1587_v41 }
 0xdbe   :  { %v1581_v16 = vsub.f32 1.5, %v1580_v46 }
 0xdbf   :  { %v4349_v48 = vadd.f32 %v3209_v43, %v1592_v24 }
 0xdc0   :  { %v1582_v50 = vmul.f32 %v3305_v35, %v1581_v16 }
 0xdc1   :  { %3087 = vmatmul.msk.f32.vlgmr.msra.gmra.mxu2 %vm297_vm0, %v4349_v48  ;;  %v1599_v51 = vadd.f32 %v4356_v2, %v4349_v48 }
 0xdc2   :  { %v1586_v52 = vsel %vm1585_vm2, %v3305_v35, %v1582_v50 }
 0xdc3   :  { %3083 = vmatmul.msk.f32.vlgmr.msrb.gmra.mxu0 %vm297_vm0, %v1599_v51  ;;  %3085 = vmatmul.msk.f32.vlgmr.msra.gmra.mxu1 %vm297_vm0, %v1599_v51  ;;  %v1588_v44 = vmul.f32 %v1586_v52, %v4303_v20 }
 0xdc5   :  { %v1593_v56 = vmul.f32 %v3208_v61, %v1588_v44  ;;  %v4433_v61 = vld [vmem:[%s4798_s21 + $0x8] sm:$0xff] }
 0xdc7   :  { %v4363_v53 = vadd.f32 %v3209_v43, %v1593_v56 }
 0xdc9   :  { %3088 = vmatmul.msk.f32.gmra.mxu2 %vm297_vm0, %v4363_v53  ;;  %v1600_v58 = vadd.f32 %v4370_v57, %v4363_v53 }
 0xdcb   :  { %3084 = vmatmul.msk.f32.gmra.mxu0 %vm297_vm0, %v1600_v58  ;;  %3086 = vmatmul.msk.f32.gmra.mxu1 %vm297_vm0, %v1600_v58 }
 0xe40   :  { %v1681_v7 = vpop.f32.mrf.mxu1  ;;  %v1655_v59 = vpop.f32.mrf.mxu0 }
 0xe41   :  { %v4387_v20 = vadd.f32 %v3210_v62, %v1655_v59  ;;  %v1682_v3 = vadd.f32 %v3211_v60, %v1681_v7 }
 0xe43   :  { %v1719_v11 = vmul.f32 %v4387_v20, %v3929_v31  ;;  %v1784_v49 = vmul.f32 %v4387_v20, %v3931_v32  ;;  %v1901_v22 = vmul.f32 %v4387_v20, %v3958_v45 }
 0xe44   :  { %v1713_v9 = vpop.f32.mrf.mxu2 }
 0xe45   :  { %v1714_v54 = vadd.f32 %v3212_v42, %v1713_v9 }
 0xe47   :  { %v1841_v12 = vmul.f32 %v1714_v54, %v3931_v32  ;;  %v1782_v13 = vmul.f32 %v1714_v54, %v3929_v31  ;;  %v1958_v6 = vmul.f32 %v1714_v54, %v3958_v45  ;;  %v2048_v15 = vmul.f32 %v1714_v54, %v3914_v21 }
 0xe48   :  { %v1684_v36 = vpop.f32.mrf.mxu1  ;;  %v1658_v0 = vpop.f32.mrf.mxu0 }
 0xe49   :  { %v1685_v63 = vadd.f32 %v3211_v60, %v1684_v36  ;;  %v4404_v14 = vadd.f32 %v3210_v62, %v1658_v0 }
 0xe4b   :  { %3089 = vmatpush.xpose.msk.msrb.mxu3 %vm297_vm0, %v1685_v63  ;;  %3093 = vmatpush.xpose.msk.msra.mxu0 %vm297_vm0, %v1685_v63  ;;  %v1720_v17 = vmul.f32 %v4404_v14, %v3929_v31  ;;  %v1785_v19 = vmul.f32 %v4404_v14, %v3931_v32  ;;  %v1902_v25 = vmul.f32 %v4404_v14, %v3958_v45 }
 0xe4c   :  { %v1716_v1 = vpop.f32.mrf.mxu2 }
 0xe4d   :  { %v1717_v4 = vadd.f32 %v3212_v42, %v1716_v1 }
 0xe4f   :  { %3090 = vmatpush.xpose.msk.msrb.mxu3 %vm297_vm0, %v1682_v3  ;;  %3094 = vmatpush.xpose.msk.msra.mxu0 %vm297_vm0, %v1682_v3  ;;  %v1842_v29 = vmul.f32 %v1717_v4, %v3931_v32  ;;  %v1783_v8 = vmul.f32 %v1717_v4, %v3929_v31  ;;  %v1959_v10 = vmul.f32 %v1717_v4, %v3958_v45 }
 0xe50   :  { %v2049_v5 = vmul.f32 %v1717_v4, %v3914_v21 }
 0xe51   :  { %1863 = vmatpush.msrb.mxu1 %v1842_v29  ;;  %1892 = vmatpush.msrb.mxu2 %v1783_v8 }
 0xe52   :  { %3091 = vmatmul.msk.f32.vlgmr.msrb.gmra.mxu3 %vm297_vm0, %v1719_v11  ;;  %3095 = vmatmul.msk.f32.vlgmr.msra.gmra.mxu0 %vm297_vm0, %v1784_v49 }
 0xe53   :  { %3101 = vmatpush.xpose.msk.msra.mxu3 %vm297_vm0, %v1685_v63  ;;  %1980 = vmatpush.msrb.mxu0 %v1959_v10 }
 0xe54   :  { %1864 = vmatpush.msrb.mxu1 %v1841_v12  ;;  %1893 = vmatpush.msrb.mxu2 %v1782_v13 }
 0xe55   :  { %1981 = vmatpush.msrb.mxu0 %v1958_v6 }
 0xe56   :  { %3107 = vmatpush.xpose.msk.msra.mxu1 %vm297_vm0, %v1685_v63  ;;  %2070 = vmatpush.msra.mxu2 %v2049_v5 }
 0xe57   :  { %3102 = vmatpush.xpose.msk.msra.mxu3 %vm297_vm0, %v1682_v3 }
 0xe58   :  { %2071 = vmatpush.msra.mxu2 %v2048_v15 }
 0xe5a   :  { %3108 = vmatpush.xpose.msk.msra.mxu1 %vm297_vm0, %v1682_v3  ;;  %3092 = vmatmul.msk.f32.gmra.mxu3 %vm297_vm0, %v1720_v17 }
 0xe5b   :  { %3096 = vmatmul.msk.f32.gmra.mxu0 %vm297_vm0, %v1785_v19 }
 0xe62   :  { %3103 = vmatmul.msk.f32.vlgmr.msra.gmra.mxu3 %vm297_vm0, %v1901_v22 }
 0xe6a   :  { %3104 = vmatmul.msk.f32.gmra.mxu3 %vm297_vm0, %v1902_v25 }
 0xecf   :  { %v1809_v26 = vpop.f32.mrf.mxu0 }
 0xed0   :  { %v1815_v30 = vmul.f32 0.35355338, %v1809_v26 }
 0xed2   :  { %v1817_v34 = vadd.f32 %v4426_v33, %v1815_v30  ;;  %v1991_v30 = vmul.f32 %v4387_v20, %v3914_v21 }
 0xed4   :  { %v1819_v35 = vsel %vm426_vm11, %v1817_v34, -inf }
 0xed5   :  { %v1750_v55 = vpop.f32.mrf.mxu3  ;;  %1820 = vmax.xlane.f32.xlu2 %v1819_v35 }
 0xed6   :  { %v1756_v23 = vmul.f32 0.35355338, %v1750_v55 }
 0xed8   :  { %v1812_v37 = vpop.f32.mrf.mxu0  ;;  %v1758_v46 = vadd.f32 %v4426_v33, %v1756_v23 }
 0xed9   :  { %v1816_v39 = vmul.f32 0.35355338, %v1812_v37 }
 0xeda   :  { %v1760_v24 = vsel %vm426_vm11, %v1758_v46, -inf }
 0xedb   :  { %v1818_v40 = vadd.f32 %v4433_v61, %v1816_v39  ;;  %v1992_v39 = vmul.f32 %v4404_v14, %v3914_v21 }
 0xedd   :  { %v1822_v41 = vsel %vm426_vm11, %v1818_v40, -inf  ;;  %v1753_v43 = vpop.f32.mrf.mxu3 }
 0xede   :  { %1823 = vmax.xlane.f32.xlu0 %v1822_v41  ;;  %v1757_v62 = vmul.f32 0.35355338, %v1753_v43 }
 0xee0   :  { %v1759_v63 = vadd.f32 %v4433_v61, %v1757_v62 }
 0xee2   :  { %v1763_v29 = vsel %vm426_vm11, %v1759_v63, -inf }
 0xee5   :  { %v1926_v16 = vpop.f32.mrf.mxu3 }
 0xee6   :  { %1761 = vmax.xlane.f32.xlu0 %v1760_v24  ;;  %v1932_v50 = vmul.f32 0.35355338, %v1926_v16 }
 0xee8   :  { %v1934_v51 = vadd.f32 %v4426_v33, %v1932_v50 }
 0xeea   :  { %v1936_v52 = vsel %vm426_vm11, %v1934_v51, -inf }
 0xeee   :  { %1937 = vmax.xlane.f32.xlu0 %v1936_v52 }
 0xf48   :  { %v1821_v44 = vpop.xlane.xlu2 %1820 }
 0xf49   :  { %v1825_v56 = vsub.f32 %v1817_v34, %v1821_v44 }
 0xf4b   :  { %v1827_v58 = vmul.f32 1.442695, %v1825_v56 }
 0xf4d   :  { %3306 = vpow2.f32 %v1827_v58 }
 0xf51   :  { %v1824_v7 = vpop.xlane.xlu0 %1823 }
 0xf52   :  { %v1826_v9 = vsub.f32 %v1818_v40, %v1824_v7 }
 0xf53   :  { %v3307_v59 = vpop.eup %3306 }
 0xf54   :  { %v1829_v60 = vmul.f32 1.442695, %v1826_v9  ;;  %v1831_v36 = vsel %vm426_vm11, %v3307_v59, 0.0 }
 0xf55   :  { %1832 = vadd.xlane.f32.xlu1 %v1831_v36 }
 0xf56   :  { %3308 = vpow2.f32 %v1829_v60 }
 0xf59   :  { %v1762_v42 = vpop.xlane.xlu0 %1761 }
 0xf5a   :  { %v1766_v1 = vsub.f32 %v1758_v46, %v1762_v42  ;;  %v1929_v46 = vpop.f32.mrf.mxu3 }
 0xf5b   :  { %v1933_v50 = vmul.f32 0.35355338, %v1929_v46 }
 0xf5c   :  { %v3309_v3 = vpop.eup %3308  ;;  %v1768_v54 = vmul.f32 1.442695, %v1766_v1 }
 0xf5d   :  { %v1834_v4 = vsel %vm426_vm11, %v3309_v3, 0.0  ;;  %1764 = vmax.xlane.f32.xlu1 %v1763_v29  ;;  %v1935_v56 = vadd.f32 %v4433_v61, %v1933_v50 }
 0xf5e   :  { %3310 = vpow2.f32 %v1768_v54  ;;  %1835 = vadd.xlane.f32.xlu2 %v1834_v4 }
 0xf5f   :  { %v1939_v7 = vsel %vm426_vm11, %v1935_v56, -inf }
 0xf61   :  { %v1938_v8 = vpop.xlane.xlu0 %1937 }
 0xf62   :  { %v1942_v10 = vsub.f32 %v1934_v51, %v1938_v8 }
 0xf64   :  { %v3311_v11 = vpop.eup %3310  ;;  %v1944_v49 = vmul.f32 1.442695, %v1942_v10 }
 0xf65   :  { %v1772_v0 = vsel %vm426_vm11, %v3311_v11, 0.0 }
 0xf66   :  { %3312 = vpow2.f32 %v1944_v49  ;;  %1773 = vadd.xlane.f32.xlu0 %v1772_v0 }
 0xf6c   :  { %v3313_v12 = vpop.eup %3312 }
 0xf6d   :  { %v1948_v13 = vsel %vm426_vm11, %v3313_v12, 0.0 }
 0xf6e   :  { %1949 = vadd.xlane.f32.xlu0 %v1948_v13 }
 0xfc8   :  { %v1833_v6 = vpop.xlane.xlu1 %1832 }
 0xfc9   :  { %3314 = vrcp.f32 %v1833_v6  ;;  %v1626_v6 = vld [vmem:[#allocation2 + $0x38] sm:$0xff] }
 0xfca   :  { %2102 = vmatpush.msrb.mxu3 %v1626_v6  ;;  %v2179_v6 = vld [vmem:[#allocation4 + $0x38] sm:$0xff] }
 0xfcb   :  { %2224 = vmatpush.msra.mxu0 %v2179_v6 }
 0xfcf   :  { %v3315_v5 = vpop.eup %3314 }
 0xfd0   :  { %v1839_v15 = vmul.f32 %v3315_v5, %v3307_v59  ;;  %v1765_v41 = vpop.xlane.xlu1 %1764  ;;  %v1625_v5 = vld [vmem:[#allocation2 + $0x30] sm:$0xff] }
 0xfd1   :  { %v1836_v17 = vpop.xlane.xlu2 %1835  ;;  %v1767_v16 = vsub.f32 %v1759_v63, %v1765_v41  ;;  %2103 = vmatpush.msrb.mxu3 %v1625_v5  ;;  %v2178_v5 = vld [vmem:[#allocation4 + $0x30] sm:$0xff] }
 0xfd2   :  { %3316 = vrcp.f32 %v1836_v17  ;;  %3097 = vmatmul.msk.f32.vlgmr.msrb.gmra.mxu1 %vm426_vm11, %v1839_v15  ;;  %2225 = vmatpush.msra.mxu0 %v2178_v5 }
 0xfd3   :  { %v1770_v14 = vmul.f32 1.442695, %v1767_v16 }
 0xfd8   :  { %v3317_v19 = vpop.eup %3316 }
 0xfd9   :  { %v1774_v22 = vpop.xlane.xlu0 %1773  ;;  %v1840_v25 = vmul.f32 %v3317_v19, %v3309_v3 }
 0xfda   :  { %3318 = vrcp.f32 %v1774_v22 }
 0xfdb   :  { %3098 = vmatmul.msk.f32.gmra.mxu1 %vm426_vm11, %v1840_v25 }
 0xfe0   :  { %v3319_v26 = vpop.eup %3318 }
 0xfe1   :  { %v1780_v34 = vmul.f32 %v3319_v26, %v3311_v11  ;;  %v1950_v55 = vpop.xlane.xlu0 %1949 }
 0xfe2   :  { %3320 = vrcp.f32 %v1950_v55 }
 0xfe3   :  { %3099 = vmatmul.msk.f32.vlgmr.msrb.gmra.mxu2 %vm426_vm11, %v1780_v34  ;;  %3109 = vmatmul.msk.f32.vlgmr.msra.gmra.mxu1 %vm297_vm0, %v1991_v30  ;;  %3322 = vpow2.f32 %v1770_v14 }
 0xfe8   :  { %v3321_v35 = vpop.eup %3320 }
 0xfe9   :  { %v1956_v37 = vmul.f32 %v3321_v35, %v3313_v12  ;;  %v1624_v35 = vld [vmem:[#allocation2 + $0x28] sm:$0xff] }
 0xfea   :  { %2104 = vmatpush.msrb.mxu3 %v1624_v35 }
 0xfeb   :  { %3105 = vmatmul.msk.f32.vlgmr.msrb.gmra.mxu0 %vm426_vm11, %v1956_v37  ;;  %3110 = vmatmul.msk.f32.gmra.mxu1 %vm297_vm0, %v1992_v39  ;;  %v1623_v37 = vld [vmem:[#allocation2 + $0x20] sm:$0xff] }
 0xfec   :  { %2105 = vmatpush.msrb.mxu3 %v1623_v37 }
0x104f   :  { %v4457_v40 = vpop.f32.mrf.mxu1 }
0x1058   :  { %v4459_v23 = vpop.f32.mrf.mxu1 }
0x1060   :  { %v2016_v20 = vpop.f32.mrf.mxu1 }
0x1061   :  { %v2022_v43 = vmul.f32 0.35355338, %v2016_v20 }
0x1063   :  { %v2024_v24 = vadd.f32 %v4426_v33, %v2022_v43  ;;  %v3323_v33 = vpop.eup %3322 }
0x1064   :  { %v1775_v59 = vsel %vm426_vm11, %v3323_v33, 0.0 }
0x1065   :  { %v2026_v51 = vsel %vm426_vm11, %v2024_v24, -inf }
0x1066   :  { %2027 = vmax.xlane.f32.xlu2 %v2026_v51  ;;  %v1895_v39 = vpop.f32.mrf.mxu2 }
0x1067   :  { %v1896_v41 = vadd.f32 %v1895_v39, %v4457_v40 }
0x1068   :  { %v2019_v52 = vpop.f32.mrf.mxu1  ;;  %v1983_v43 = vpop.f32.mrf.mxu0 }
0x1069   :  { %v2023_v44 = vmul.f32 0.35355338, %v2019_v52  ;;  %v1989_v46 = vadd.f32 %v1983_v43, %v1896_v41 }
0x106b   :  { %v2025_v58 = vadd.f32 %v4433_v61, %v2023_v44 }
0x106d   :  { %v2029_v9 = vsel %vm426_vm11, %v2025_v58, -inf }
0x106e   :  { %1940 = vmax.xlane.f32.xlu2 %v1939_v7  ;;  %2030 = vmax.xlane.f32.xlu1 %v2029_v9 }
0x1076   :  { %1776 = vadd.xlane.f32.xlu1 %v1775_v59 }
0x10d9   :  { %v2028_v60 = vpop.xlane.xlu2 %2027 }
0x10da   :  { %v2032_v62 = vsub.f32 %v2024_v24, %v2028_v60 }
0x10dc   :  { %v2034_v36 = vmul.f32 1.442695, %v2032_v62  ;;  %v2186_v62 = vld [vmem:[#allocation6 + $0x38] sm:$0xff] }
0x10dd   :  { %2250 = vmatpush.msrb.mxu1 %v2186_v62 }
0x10de   :  { %3324 = vpow2.f32 %v2034_v36  ;;  %v2185_v36 = vld [vmem:[#allocation6 + $0x30] sm:$0xff] }
0x10df   :  { %2251 = vmatpush.msrb.mxu1 %v2185_v36 }
0x10e1   :  { %v1941_v42 = vpop.xlane.xlu2 %1940  ;;  %v2031_v63 = vpop.xlane.xlu1 %2030 }
0x10e2   :  { %v1943_v1 = vsub.f32 %v1935_v56, %v1941_v42  ;;  %v2033_v3 = vsub.f32 %v2025_v58, %v2031_v63  ;;  %v3213_v56 = vld [vmem:[%s4760_s10 + $0x7] ss:$0 sm:$0xff]  ;;  %v2193_v42 = vld [vmem:[#allocation7 + $0x38] sm:$0xff]  ;;  %v2192_v63 = vld [vmem:[#allocation7 + $0x30] sm:$0xff] }
0x10e3   :  { %2282 = vmatpush.msrb.mxu2 %v2193_v42 }
0x10e4   :  { %v3325_v61 = vpop.eup %3324  ;;  %v1946_v54 = vmul.f32 1.442695, %v1943_v1  ;;  %v2036_v4 = vmul.f32 1.442695, %v2033_v3  ;;  %v2184_v1 = vld [vmem:[#allocation6 + $0x28] sm:$0xff] }
0x10e5   :  { %v2038_v29 = vsel %vm426_vm11, %v3325_v61, 0.0  ;;  %v2191_v3 = vld [vmem:[#allocation7 + $0x28] sm:$0xff]  ;;  %2283 = vmatpush.msrb.mxu2 %v2192_v63  ;;  %2252 = vmatpush.msrb.mxu1 %v2184_v1  ;;  %v3216_v1 = vld [vmem:[%s4765_s15 + $0x5] ss:$0 sm:$0xff] }
0x10e6   :  { %3326 = vpow2.f32 %v1946_v54  ;;  %2039 = vadd.xlane.f32.xlu2 %v2038_v29  ;;  %v3391_v29 = vld [vmem:[%s4799_s12 + $0x8] sm:$0xff] }
0x10e7   :  { %3328 = vpow2.f32 %v2036_v4  ;;  %2284 = vmatpush.msrb.mxu2 %v2191_v3 }
0x10e9   :  { %v1777_v8 = vpop.xlane.xlu1 %1776 }
0x10ea   :  { %3330 = vrcp.f32 %v1777_v8 }
0x10ec   :  { %v3327_v10 = vpop.eup %3326 }
0x10ed   :  { %v3329_v11 = vpop.eup %3328  ;;  %v1951_v49 = vsel %vm426_vm11, %v3327_v10, 0.0 }
0x10ee   :  { %1952 = vadd.xlane.f32.xlu2 %v1951_v49  ;;  %v2041_v0 = vsel %vm426_vm11, %v3329_v11, 0.0 }
0x10ef   :  { %2042 = vadd.xlane.f32.xlu1 %v2041_v0 }
0x10f0   :  { %v3331_v12 = vpop.eup %3330 }
0x10f1   :  { %v1781_v13 = vmul.f32 %v3331_v12, %v3323_v33 }
0x10f3   :  { %3100 = vmatmul.msk.f32.gmra.mxu2 %vm426_vm11, %v1781_v13 }
0x1159   :  { %v2040_v15 = vpop.xlane.xlu2 %2039 }
0x115a   :  { %3332 = vrcp.f32 %v2040_v15  ;;  %v2177_v15 = vld [vmem:[#allocation4 + $0x28] sm:$0xff] }
0x115b   :  { %2226 = vmatpush.msra.mxu0 %v2177_v15 }
0x1160   :  { %v3333_v17 = vpop.eup %3332 }
0x1161   :  { %v2046_v19 = vmul.f32 %v3333_v17, %v3325_v61  ;;  %v1953_v22 = vpop.xlane.xlu2 %1952  ;;  %v2190_v61 = vld [vmem:[#allocation7 + $0x20] sm:$0xff] }
0x1162   :  { %3334 = vrcp.f32 %v1953_v22  ;;  %v2043_v25 = vpop.xlane.xlu1 %2042  ;;  %2285 = vmatpush.msrb.mxu2 %v2190_v61  ;;  %v2176_v17 = vld [vmem:[#allocation4 + $0x20] sm:$0xff] }
0x1163   :  { %3336 = vrcp.f32 %v2043_v25  ;;  %3111 = vmatmul.msk.f32.vlgmr.msra.gmra.mxu2 %vm426_vm11, %v2046_v19  ;;  %2227 = vmatpush.msra.mxu0 %v2176_v17 }
0x1168   :  { %v3335_v26 = vpop.eup %3334 }
0x1169   :  { %v3337_v30 = vpop.eup %3336  ;;  %v1957_v34 = vmul.f32 %v3335_v26, %v3327_v10  ;;  %v3217_v26 = vld [vmem:[%s4765_s15 + $0x6] ss:$0 sm:$0xff] }
0x116a   :  { %v2047_v55 = vmul.f32 %v3337_v30, %v3329_v11 }
0x116b   :  { %3106 = vmatmul.msk.f32.gmra.mxu0 %vm426_vm11, %v1957_v34 }
0x116c   :  { %3112 = vmatmul.msk.f32.gmra.mxu2 %vm426_vm11, %v2047_v55 }
0x1176   :  { %v1898_v20 = vpop.f32.mrf.mxu2 }
0x1177   :  { %v1899_v51 = vadd.f32 %v1898_v20, %v4459_v23 }
0x11e6   :  { %v2073_v24 = vpop.f32.mrf.mxu2 }
0x11e7   :  { %v2079_v16 = vadd.f32 %v2073_v24, %v1989_v46 }
0x11e8   :  { %v1986_v50 = vpop.f32.mrf.mxu0 }
0x11e9   :  { %3113 = vmatmul.msk.f32.vlgmr.msrb.gmra.mxu3 %vm297_vm0, %v2079_v16  ;;  %v1990_v14 = vadd.f32 %v1986_v50, %v1899_v51 }
0x11ef   :  { %v2076_v52 = vpop.f32.mrf.mxu2 }
0x11f0   :  { %v2080_v44 = vadd.f32 %v2076_v52, %v1990_v14  ;;  %v3214_v52 = vld [vmem:[%s4770_s20 + $0x3] ss:$0 sm:$0xff] }
0x11f2   :  { %3114 = vmatmul.msk.f32.gmra.mxu3 %vm297_vm0, %v2080_v44 }
0x126c   :  { %v2107_v58 = vpop.f32.mrf.mxu3 }
0x126d   :  { %v2108_v40 = vadd.f32 %v3213_v56, %v2107_v58  ;;  %v3215_v58 = vld [vmem:[#allocation15 + $0x3] ss:$0 sm:$0xff] }
0x126f   :  { %v2113_v7 = vadd.f32 %v2108_v40, %v4349_v48  ;;  %v2183_v48 = vld [vmem:[#allocation6 + $0x20] sm:$0xff] }
0x1270   :  { %2253 = vmatpush.msrb.mxu1 %v2183_v48 }
0x1271   :  { %v2119_v9 = vsel %vm297_vm0, %v2113_v7, 0.0  ;;  %3122 = vmatmul.msk.f32.vlgmr.msrb.gmra.mxu1 %vm297_vm0, %v4048_v18 }
0x1272   :  { %2120 = vadd.xlane.f32.xlu0 %v2119_v9 }
0x1275   :  { %v2110_v33 = vpop.f32.mrf.mxu3 }
0x1276   :  { %v2111_v59 = vadd.f32 %v3213_v56, %v2110_v33 }
0x1278   :  { %v2114_v23 = vadd.f32 %v2111_v59, %v4363_v53  ;;  %v3390_v53 = vld [vmem:[%s4799_s12] sm:$0xff] }
0x1279   :  { %3126 = vmatmul.msk.f32.vlgmr.msrb.gmra.mxu2 %vm297_vm0, %v3390_v53  ;;  %3123 = vmatmul.msk.f32.gmra.mxu1 %vm297_vm0, %v4058_v27  ;;  %v3392_v27 = vld [vmem:[%s4799_s12 + $0x10] sm:$0xff] }
0x127a   :  { %v2122_v60 = vsel %vm297_vm0, %v2114_v23, 0.0 }
0x127b   :  { %2123 = vadd.xlane.f32.xlu1 %v2122_v60 }
0x1281   :  { %3127 = vmatmul.msk.f32.gmra.mxu2 %vm297_vm0, %v3391_v29  ;;  %3124 = vmatmul.msk.f32.gmra.mxu1 %vm297_vm0, %v4072_v38  ;;  %v3393_v38 = vld [vmem:[%s4799_s12 + $0x18] sm:$0xff] }
0x1289   :  { %3128 = vmatmul.msk.f32.gmra.mxu2 %vm297_vm0, %v3392_v27  ;;  %3125 = vmatmul.msk.f32.gmra.mxu1 %vm297_vm0, %v4085_v47 }
0x1291   :  { %3129 = vmatmul.msk.f32.gmra.mxu2 %vm297_vm0, %v3393_v38 }
0x12e5   :  { %v2121_v54 = vpop.xlane.xlu0 %2120 }
0x12e6   :  { %v2125_v4 = vmul.f32 %v2121_v54, %v4061_v28 }
0x12e8   :  { %v2127_v18 = vsub.f32 %v2113_v7, %v2125_v4 }
0x12ea   :  { %v2129_v8 = vmul.f32 %v2127_v18, %v2127_v18 }
0x12ec   :  { %v2131_v10 = vsel %vm297_vm0, %v2129_v8, 0.0 }
0x12ed   :  { %2132 = vadd.xlane.f32.xlu2 %v2131_v10 }
0x12ee   :  { %v2124_v11 = vpop.xlane.xlu1 %2123  ;;  %v2255_v47 = vpop.f32.mrf.mxu1 }
0x12ef   :  { %v2126_v49 = vmul.f32 %v2124_v11, %v4061_v28  ;;  %v2256_v11 = vadd.f32 %v3216_v1, %v2255_v47 }
0x12f1   :  { %v2128_v0 = vsub.f32 %v2114_v23, %v2126_v49 }
0x12f3   :  { %v2130_v12 = vmul.f32 %v2128_v0, %v2128_v0 }
0x12f5   :  { %v2134_v13 = vsel %vm297_vm0, %v2130_v12, 0.0  ;;  %v3218_v12 = vld [vmem:[%s4765_s15 + $0x4] ss:$0 sm:$0xff] }
0x12f6   :  { %2135 = vadd.xlane.f32.xlu0 %v2134_v13  ;;  %v2258_v46 = vpop.f32.mrf.mxu1 }
0x12f7   :  { %v2259_v8 = vadd.f32 %v3216_v1, %v2258_v46 }
0x12fc   :  { %v2287_v30 = vpop.f32.mrf.mxu2 }
0x12fd   :  { %v4519_v35 = vadd.f32 %v3217_v26, %v2287_v30 }
0x12fe   :  { %v2261_v9 = vpop.f32.mrf.mxu1 }
0x12ff   :  { %v2262_v4 = vadd.f32 %v3216_v1, %v2261_v9 }
0x1304   :  { %v2290_v24 = vpop.f32.mrf.mxu2 }
0x1305   :  { %v4521_v16 = vadd.f32 %v3217_v26, %v2290_v24 }
0x1306   :  { %v2264_v61 = vpop.f32.mrf.mxu1 }
0x1307   :  { %v2265_v53 = vadd.f32 %v3216_v1, %v2264_v61  ;;  %v2430_v27 = vmul.f32 %v4521_v16, %v3931_v32  ;;  %v2368_v61 = vmul.f32 %v4519_v35, %v3929_v31 }
0x1309   :  { %3130 = vmatpush.xpose.msk.msra.mxu3 %vm297_vm0, %v2265_v53  ;;  %3136 = vmatpush.xpose.msk.msrb.mxu0 %vm297_vm0, %v2265_v53 }
0x130a   :  { %3146 = vmatpush.xpose.msk.msra.mxu1 %vm297_vm0, %v2265_v53 }
0x130c   :  { %v2293_v33 = vpop.f32.mrf.mxu2 }
0x130d   :  { %v4526_v60 = vadd.f32 %v3217_v26, %v2293_v33  ;;  %3131 = vmatpush.xpose.msk.msra.mxu3 %vm297_vm0, %v2262_v4  ;;  %3137 = vmatpush.xpose.msk.msrb.mxu0 %vm297_vm0, %v2262_v4 }
0x130e   :  { %3147 = vmatpush.xpose.msk.msra.mxu1 %vm297_vm0, %v2262_v4 }
0x130f   :  { %v2431_v49 = vmul.f32 %v4526_v60, %v3931_v32 }
0x1311   :  { %3132 = vmatpush.xpose.msk.msra.mxu3 %vm297_vm0, %v2259_v8  ;;  %3138 = vmatpush.xpose.msk.msrb.mxu0 %vm297_vm0, %v2259_v8 }
0x1312   :  { %3148 = vmatpush.xpose.msk.msra.mxu1 %vm297_vm0, %v2259_v8 }
0x1315   :  { %3133 = vmatpush.xpose.msk.msra.mxu3 %vm297_vm0, %v2256_v11  ;;  %3139 = vmatpush.xpose.msk.msrb.mxu0 %vm297_vm0, %v2256_v11 }
0x1316   :  { %3149 = vmatpush.xpose.msk.msra.mxu1 %vm297_vm0, %v2256_v11 }
0x1360   :  { %v2133_v19 = vpop.xlane.xlu2 %2132 }
0x1361   :  { %v2137_v22 = vmul.f32 %v2133_v19, %v4061_v28 }
0x1363   :  { %v2139_v25 = vadd.f32 1e-05, %v2137_v22 }
0x1365   :  { %3338 = vrsqrt.f32 %v2139_v25  ;;  %vm2147_vm3 = vweird.f32 %v2139_v25 }
0x1369   :  { %v2136_v34 = vpop.xlane.xlu0 %2135 }
0x136a   :  { %v2138_v55 = vmul.f32 %v2136_v34, %v4061_v28  ;;  %v4595_v34 = vld [vmem:[%s4801_s29] sm:$0xff] }
0x136b   :  { %v3339_v37 = vpop.eup %3338 }
0x136c   :  { %v2142_v39 = vmul.f32 %v3339_v37, %v2139_v25  ;;  %v2140_v20 = vadd.f32 1e-05, %v2138_v55  ;;  %vm2148_vm11 = vweird.f32 %v3339_v37 }
0x136d   :  { %vm2149_vm4 = vmor %vm2147_vm3, %vm2148_vm11 }
0x136e   :  { %v2143_v41 = vmul.f32 %v3339_v37, %v2142_v39  ;;  %3340 = vrsqrt.f32 %v2140_v20  ;;  %vm2157_vm6 = vweird.f32 %v2140_v20 }
0x1370   :  { %v2144_v43 = vmul.f32 0.5, %v2143_v41 }
0x1372   :  { %v2145_v50 = vsub.f32 1.5, %v2144_v43  ;;  %v4602_v43 = vld [vmem:[%s4801_s29 + $0x8] sm:$0xff] }
0x1374   :  { %v3341_v51 = vpop.eup %3340  ;;  %v2146_v14 = vmul.f32 %v3339_v37, %v2145_v50 }
0x1375   :  { %v2152_v44 = vmul.f32 %v3341_v51, %v2140_v20  ;;  %vm2158_vm5 = vweird.f32 %v3341_v51 }
0x1376   :  { %v2150_v56 = vsel %vm2149_vm4, %v3339_v37, %v2146_v14  ;;  %vm2159_vm7 = vmor %vm2157_vm6, %vm2158_vm5 }
0x1377   :  { %v2161_v40 = vmul.f32 %v2150_v56, %v2127_v18  ;;  %v2153_v7 = vmul.f32 %v3341_v51, %v2152_v44 }
0x1379   :  { %v2166_v59 = vmul.f32 %v3214_v52, %v2161_v40  ;;  %v2154_v23 = vmul.f32 0.5, %v2153_v7 }
0x137b   :  { %v4528_v62 = vadd.f32 %v3215_v58, %v2166_v59  ;;  %v2155_v36 = vsub.f32 1.5, %v2154_v23  ;;  %v2370_v59 = vmul.f32 %v4526_v60, %v3929_v31 }
0x137d   :  { %v2156_v42 = vmul.f32 %v3341_v51, %v2155_v36  ;;  %v2173_v63 = vadd.f32 %v4356_v2, %v4528_v62  ;;  %v2296_v2 = vpop.f32.mrf.mxu2  ;;  %v2550_v36 = vmul.f32 %v4526_v60, %v3958_v45 }
0x137e   :  { %v4547_v10 = vadd.f32 %v3217_v26, %v2296_v2 }
0x137f   :  { %v2160_v3 = vsel %vm2159_vm7, %v3341_v51, %v2156_v42  ;;  %3120 = vmatmul.msk.f32.vlgmr.msra.gmra.mxu0 %vm297_vm0, %v2173_v63  ;;  %v2369_v42 = vmul.f32 %v4521_v16, %v3929_v31 }
0x1380   :  { %v2162_v48 = vmul.f32 %v2160_v3, %v2128_v0  ;;  %v2429_v0 = vmul.f32 %v4519_v35, %v3931_v32  ;;  %v2371_v33 = vmul.f32 %v4547_v10, %v3929_v31  ;;  %v2551_v23 = vmul.f32 %v4547_v10, %v3958_v45 }
0x1381   :  { %v2549_v3 = vmul.f32 %v4521_v16, %v3958_v45 }
0x1382   :  { %v2167_v54 = vmul.f32 %v3214_v52, %v2162_v48  ;;  %2480 = vmatpush.msra.mxu0 %v2371_v33  ;;  %2570 = vmatpush.msra.mxu2 %v2551_v23 }
0x1384   :  { %v4538_v29 = vadd.f32 %v3215_v58, %v2167_v54  ;;  %2481 = vmatpush.msra.mxu0 %v2370_v59  ;;  %v2643_v54 = vmul.f32 %v4547_v10, %v3914_v21  ;;  %2571 = vmatpush.msra.mxu2 %v2550_v36 }
0x1386   :  { %v2174_v18 = vadd.f32 %v4370_v57, %v4538_v29  ;;  %v2432_v57 = vmul.f32 %v4547_v10, %v3931_v32  ;;  %2482 = vmatpush.msra.mxu0 %v2369_v42  ;;  %2572 = vmatpush.msra.mxu2 %v2549_v3 }
0x1388   :  { %3121 = vmatmul.msk.f32.gmra.mxu0 %vm297_vm0, %v2174_v18  ;;  %2451 = vmatpush.msrb.mxu3 %v2432_v57  ;;  %v2640_v57 = vmul.f32 %v4519_v35, %v3914_v21 }
0x1389   :  { %2483 = vmatpush.msra.mxu0 %v2368_v61 }
0x138a   :  { %2452 = vmatpush.msrb.mxu3 %v2431_v49 }
0x138c   :  { %2453 = vmatpush.msrb.mxu3 %v2430_v27 }
0x138e   :  { %2454 = vmatpush.msrb.mxu3 %v2429_v0 }
0x13fc   :  { %v2229_v13 = vpop.f32.mrf.mxu0 }
0x13fd   :  { %v4566_v38 = vadd.f32 %v3218_v12, %v2229_v13 }
0x13ff   :  { %v2299_v6 = vmul.f32 %v4566_v38, %v3929_v31  ;;  %v2372_v5 = vmul.f32 %v4566_v38, %v3931_v32  ;;  %v2491_v15 = vmul.f32 %v4566_v38, %v3958_v45 }
0x1401   :  { %3134 = vmatmul.msk.f32.vlgmr.msra.gmra.mxu3 %vm297_vm0, %v2299_v6  ;;  %3140 = vmatmul.msk.f32.vlgmr.msrb.gmra.mxu0 %vm297_vm0, %v2372_v5 }
0x1402   :  { %3150 = vmatmul.msk.f32.vlgmr.msra.gmra.mxu1 %vm297_vm0, %v2491_v15  ;;  %3154 = vmatpush.xpose.msk.msra.mxu3 %vm297_vm0, %v2265_v53 }
0x1403   :  { %2662 = vmatpush.msrb.mxu0 %v2643_v54 }
0x1405   :  { %v2232_v17 = vpop.f32.mrf.mxu0 }
0x1406   :  { %v4578_v19 = vadd.f32 %v3218_v12, %v2232_v17  ;;  %3155 = vmatpush.xpose.msk.msra.mxu3 %vm297_vm0, %v2262_v4  ;;  %v2548_v4 = vmul.f32 %v4519_v35, %v3958_v45 }
0x1408   :  { %v2300_v22 = vmul.f32 %v4578_v19, %v3929_v31  ;;  %v2373_v25 = vmul.f32 %v4578_v19, %v3931_v32  ;;  %v2492_v47 = vmul.f32 %v4578_v19, %v3958_v45  ;;  %v2641_v31 = vmul.f32 %v4521_v16, %v3914_v21  ;;  %2573 = vmatpush.msra.mxu2 %v2548_v4 }
0x140a   :  { %3135 = vmatmul.msk.f32.gmra.mxu3 %vm297_vm0, %v2300_v22  ;;  %3141 = vmatmul.msk.f32.gmra.mxu0 %vm297_vm0, %v2373_v25 }
0x140b   :  { %3151 = vmatmul.msk.f32.gmra.mxu1 %vm297_vm0, %v2492_v47  ;;  %3156 = vmatpush.xpose.msk.msra.mxu3 %vm297_vm0, %v2259_v8 }
0x140f   :  { %3157 = vmatpush.xpose.msk.msra.mxu3 %vm297_vm0, %v2256_v11  ;;  %v2642_v11 = vmul.f32 %v4526_v60, %v3914_v21 }
0x1411   :  { %2663 = vmatpush.msrb.mxu0 %v2642_v11 }
0x1413   :  { %2664 = vmatpush.msrb.mxu0 %v2641_v31 }
0x1415   :  { %2665 = vmatpush.msrb.mxu0 %v2640_v57 }
0x147e   :  { %v2397_v26 = vpop.f32.mrf.mxu0 }
0x147f   :  { %v2403_v30 = vmul.f32 0.35355338, %v2397_v26  ;;  %v2516_v37 = vpop.f32.mrf.mxu1 }
0x1480   :  { %v2522_v12 = vmul.f32 0.35355338, %v2516_v37 }
0x1481   :  { %v2405_v32 = vadd.f32 %v4595_v34, %v2403_v30 }
0x1482   :  { %v2524_v6 = vadd.f32 %v4595_v34, %v2522_v12 }
0x1483   :  { %v2407_v55 = vsel %vm297_vm0, %v2405_v32, -inf }
0x1484   :  { %2408 = vmax.xlane.f32.xlu1 %v2407_v55  ;;  %v2336_v41 = vpop.f32.mrf.mxu3  ;;  %v2526_v35 = vsel %vm297_vm0, %v2524_v6, -inf }
0x1485   :  { %v2342_v24 = vmul.f32 0.35355338, %v2336_v41 }
0x1487   :  { %v2400_v39 = vpop.f32.mrf.mxu0  ;;  %v2344_v51 = vadd.f32 %v4595_v34, %v2342_v24 }
0x1488   :  { %v2404_v20 = vmul.f32 0.35355338, %v2400_v39  ;;  %v2519_v14 = vpop.f32.mrf.mxu1 }
0x1489   :  { %v2523_v52 = vmul.f32 0.35355338, %v2519_v14  ;;  %v2346_v44 = vsel %vm297_vm0, %v2344_v51, -inf }
0x148a   :  { %v2406_v46 = vadd.f32 %v4602_v43, %v2404_v20 }
0x148b   :  { %v2525_v56 = vadd.f32 %v4602_v43, %v2523_v52 }
0x148c   :  { %v2410_v50 = vsel %vm297_vm0, %v2406_v46, -inf }
0x148d   :  { %2411 = vmax.xlane.f32.xlu2 %v2410_v50  ;;  %v2529_v58 = vsel %vm297_vm0, %v2525_v56, -inf  ;;  %v2339_v63 = vpop.f32.mrf.mxu3  ;;  %v2584_v50 = vmul.f32 %v4578_v19, %v3914_v21 }
0x148e   :  { %v2343_v2 = vmul.f32 0.35355338, %v2339_v63 }
0x1490   :  { %v2345_v10 = vadd.f32 %v4602_v43, %v2343_v2 }
0x1492   :  { %v2349_v60 = vsel %vm297_vm0, %v2345_v10, -inf }
0x1495   :  { %2347 = vmax.xlane.f32.xlu2 %v2346_v44 }
0x149d   :  { %2530 = vmax.xlane.f32.xlu2 %v2529_v58 }
0x14f7   :  { %v2409_v40 = vpop.xlane.xlu1 %2408 }
0x14f8   :  { %v2413_v7 = vsub.f32 %v2405_v32, %v2409_v40 }
0x14fa   :  { %v2415_v9 = vmul.f32 1.442695, %v2413_v7 }
0x14fc   :  { %3342 = vpow2.f32 %v2415_v9 }
0x1500   :  { %v2412_v1 = vpop.xlane.xlu2 %2411 }
0x1501   :  { %v2414_v48 = vsub.f32 %v2406_v46, %v2412_v1  ;;  %v2583_v46 = vmul.f32 %v4566_v38, %v3914_v21 }
0x1502   :  { %v3343_v53 = vpop.eup %3342 }
0x1503   :  { %v2417_v18 = vmul.f32 1.442695, %v2414_v48  ;;  %v2419_v8 = vsel %vm297_vm0, %v3343_v53, 0.0 }
0x1504   :  { %2420 = vadd.xlane.f32.xlu0 %v2419_v8 }
0x1505   :  { %3344 = vpow2.f32 %v2417_v18 }
0x1508   :  { %v2348_v45 = vpop.xlane.xlu2 %2347 }
0x1509   :  { %v2352_v49 = vsub.f32 %v2344_v51, %v2348_v45 }
0x150b   :  { %v3345_v27 = vpop.eup %3344  ;;  %v2354_v0 = vmul.f32 1.442695, %v2352_v49 }
0x150c   :  { %v2422_v13 = vsel %vm297_vm0, %v3345_v27, 0.0  ;;  %2350 = vmax.xlane.f32.xlu0 %v2349_v60 }
0x150d   :  { %3346 = vpow2.f32 %v2354_v0  ;;  %2423 = vadd.xlane.f32.xlu1 %v2422_v13  ;;  %v2200_v13 = vld [vmem:[#allocation9 + $0x38] sm:$0xff] }
0x150e   :  { %2696 = vmatpush.msrb.mxu1 %v2200_v13  ;;  %v3220_v13 = vld [vmem:[%s4770_s20 + $0x4] ss:$0 sm:$0xff] }
0x1510   :  { %v2531_v16 = vpop.xlane.xlu2 %2530 }
0x1511   :  { %v2533_v5 = vsub.f32 %v2525_v56, %v2531_v16  ;;  %v2199_v16 = vld [vmem:[#allocation9 + $0x30] sm:$0xff] }
0x1512   :  { %2697 = vmatpush.msrb.mxu1 %v2199_v16 }
0x1513   :  { %v3347_v15 = vpop.eup %3346  ;;  %v2536_v17 = vmul.f32 1.442695, %v2533_v5 }
0x1514   :  { %v2358_v22 = vsel %vm297_vm0, %v3347_v15, 0.0 }
0x1515   :  { %3348 = vpow2.f32 %v2536_v17  ;;  %2527 = vmax.xlane.f32.xlu1 %v2526_v35  ;;  %2359 = vadd.xlane.f32.xlu2 %v2358_v22  ;;  %v2198_v22 = vld [vmem:[#allocation9 + $0x28] sm:$0xff] }
0x1516   :  { %2698 = vmatpush.msrb.mxu1 %v2198_v22 }
0x151b   :  { %v4641_v25 = vpop.eup %3348 }
0x151c   :  { %v2541_v47 = vsel %vm297_vm0, %v4641_v25, 0.0 }
0x151d   :  { %2542 = vadd.xlane.f32.xlu2 %v2541_v47 }
0x1577   :  { %v2421_v26 = vpop.xlane.xlu0 %2420 }
0x1578   :  { %3350 = vrcp.f32 %v2421_v26 }
0x157e   :  { %v3351_v30 = vpop.eup %3350 }
0x157f   :  { %v2427_v32 = vmul.f32 %v3351_v30, %v3343_v53  ;;  %v2351_v52 = vpop.xlane.xlu0 %2350 }
0x1580   :  { %v2424_v55 = vpop.xlane.xlu1 %2423  ;;  %v2353_v44 = vsub.f32 %v2345_v10, %v2351_v52  ;;  %v3219_v52 = vld [vmem:[%s4765_s15 + $0x7] ss:$0 sm:$0xff] }
0x1581   :  { %3352 = vrcp.f32 %v2424_v55  ;;  %3142 = vmatmul.msk.f32.vlgmr.msrb.gmra.mxu3 %vm297_vm0, %v2427_v32 }
0x1582   :  { %v2356_v56 = vmul.f32 1.442695, %v2353_v44 }
0x1587   :  { %v3353_v37 = vpop.eup %3352 }
0x1588   :  { %v2360_v39 = vpop.xlane.xlu2 %2359  ;;  %v2428_v20 = vmul.f32 %v3353_v37, %v3345_v27  ;;  %v2528_v40 = vpop.xlane.xlu1 %2527 }
0x1589   :  { %3354 = vrcp.f32 %v2360_v39  ;;  %v2532_v9 = vsub.f32 %v2524_v6, %v2528_v40 }
0x158a   :  { %3143 = vmatmul.msk.f32.gmra.mxu3 %vm297_vm0, %v2428_v20  ;;  %3356 = vpow2.f32 %v2356_v56 }
0x158b   :  { %v2534_v21 = vmul.f32 1.442695, %v2532_v9 }
0x158d   :  { %3358 = vpow2.f32 %v2534_v21 }
0x158f   :  { %v3355_v41 = vpop.eup %3354 }
0x1590   :  { %v2366_v24 = vmul.f32 %v3355_v41, %v3347_v15  ;;  %v3357_v23 = vpop.eup %3356  ;;  %v2543_v45 = vpop.xlane.xlu2 %2542 }
0x1591   :  { %v2361_v63 = vsel %vm297_vm0, %v3357_v23, 0.0 }
0x1592   :  { %3144 = vmatmul.msk.f32.vlgmr.msra.gmra.mxu0 %vm297_vm0, %v2366_v24  ;;  %3158 = vmatmul.msk.f32.vlgmr.msra.gmra.mxu3 %vm297_vm0, %v2583_v46 }
0x1593   :  { %v3359_v1 = vpop.eup %3358 }
0x159a   :  { %3159 = vmatmul.msk.f32.gmra.mxu3 %vm297_vm0, %v2584_v50 }
0x1604   :  { %v4654_v51 = vpop.f32.mrf.mxu3 }
0x160d   :  { %v4656_v14 = vpop.f32.mrf.mxu3 }
0x160f   :  { %v2485_v47 = vpop.f32.mrf.mxu0 }
0x1610   :  { %v2486_v32 = vadd.f32 %v2485_v47, %v4654_v51 }
0x1615   :  { %v2608_v58 = vpop.f32.mrf.mxu3 }
0x1616   :  { %v2614_v38 = vmul.f32 0.35355338, %v2608_v58 }
0x1618   :  { %v2616_v7 = vadd.f32 %v4595_v34, %v2614_v38  ;;  %v2538_v34 = vsel %vm297_vm0, %v3359_v1, 0.0 }
0x161a   :  { %v2618_v33 = vsel %vm297_vm0, %v2616_v7, -inf }
0x161b   :  { %2619 = vmax.xlane.f32.xlu0 %v2618_v33 }
0x161d   :  { %v2611_v19 = vpop.f32.mrf.mxu3 }
0x161e   :  { %v2615_v59 = vmul.f32 0.35355338, %v2611_v19 }
0x1620   :  { %v2617_v36 = vadd.f32 %v4602_v43, %v2615_v59 }
0x1622   :  { %v2621_v42 = vsel %vm297_vm0, %v2617_v36, -inf }
0x1623   :  { %2622 = vmax.xlane.f32.xlu1 %v2621_v42  ;;  %2362 = vadd.xlane.f32.xlu0 %v2361_v63 }
0x162b   :  { %2539 = vadd.xlane.f32.xlu1 %v2538_v34  ;;  %v2769_v34 = vld [vmem:[#allocation10 + $0x28] sm:$0xff] }
0x168e   :  { %v2620_v3 = vpop.xlane.xlu0 %2619 }
0x168f   :  { %v2624_v48 = vsub.f32 %v2616_v7, %v2620_v3  ;;  %v2768_v3 = vld [vmem:[#allocation10 + $0x20] sm:$0xff] }
0x1691   :  { %v2626_v61 = vmul.f32 1.442695, %v2624_v48 }
0x1693   :  { %3360 = vpow2.f32 %v2626_v61 }
0x1696   :  { %v2623_v53 = vpop.xlane.xlu1 %2622  ;;  %v2363_v54 = vpop.xlane.xlu0 %2362 }
0x1697   :  { %v2625_v4 = vsub.f32 %v2617_v36, %v2623_v53  ;;  %3362 = vrcp.f32 %v2363_v54  ;;  %v3174_v54 = vld [vmem:[%s4768_s18 + $0x78] sm:$0xff] }
0x1698   :  { %2836 = vmatpush.msrb.mxu3 %v3174_v54 }
0x1699   :  { %v3361_v43 = vpop.eup %3360  ;;  %v2628_v2 = vmul.f32 1.442695, %v2625_v4  ;;  %v3173_v4 = vld [vmem:[%s4768_s18 + $0x70] sm:$0xff] }
0x169a   :  { %v2630_v18 = vsel %vm297_vm0, %v3361_v43, 0.0  ;;  %2837 = vmatpush.msrb.mxu3 %v3173_v4 }
0x169b   :  { %3364 = vpow2.f32 %v2628_v2  ;;  %2631 = vadd.xlane.f32.xlu0 %v2630_v18 }
0x169d   :  { %v3363_v8 = vpop.eup %3362 }
0x169e   :  { %v2540_v11 = vpop.xlane.xlu1 %2539  ;;  %v2367_v31 = vmul.f32 %v3363_v8, %v3357_v23  ;;  %v3171_v8 = vld [vmem:[%s4768_s18 + $0x60] sm:$0xff] }
0x169f   :  { %3366 = vrcp.f32 %v2540_v11 }
0x16a0   :  { %3145 = vmatmul.msk.f32.gmra.mxu0 %vm297_vm0, %v2367_v31  ;;  %3368 = vrcp.f32 %v2543_v45 }
0x16a1   :  { %v3365_v10 = vpop.eup %3364 }
0x16a2   :  { %v2633_v57 = vsel %vm297_vm0, %v3365_v10, 0.0 }
0x16a3   :  { %2634 = vadd.xlane.f32.xlu1 %v2633_v57 }
0x16a5   :  { %v3367_v49 = vpop.eup %3366 }
0x16a6   :  { %v2546_v27 = vmul.f32 %v3367_v49, %v3359_v1  ;;  %v3369_v0 = vpop.eup %3368  ;;  %v2770_v1 = vld [vmem:[#allocation10 + $0x30] sm:$0xff] }
0x16a7   :  { %v2547_v60 = vmul.f32 %v3369_v0, %v4641_v25  ;;  %v2197_v25 = vld [vmem:[#allocation9 + $0x20] sm:$0xff] }
0x16a8   :  { %3152 = vmatmul.msk.f32.vlgmr.msra.gmra.mxu2 %vm297_vm0, %v2546_v27  ;;  %2699 = vmatpush.msrb.mxu1 %v2197_v25 }
0x16b0   :  { %3153 = vmatmul.msk.f32.gmra.mxu2 %vm297_vm0, %v2547_v60 }
0x170e   :  { %v2632_v12 = vpop.xlane.xlu0 %2631 }
0x170f   :  { %3370 = vrcp.f32 %v2632_v12 }
0x1715   :  { %v3371_v6 = vpop.eup %3370 }
0x1716   :  { %v2638_v5 = vmul.f32 %v3371_v6, %v3361_v43  ;;  %v2635_v15 = vpop.xlane.xlu1 %2634  ;;  %v3172_v43 = vld [vmem:[%s4768_s18 + $0x68] sm:$0xff] }
0x1717   :  { %3372 = vrcp.f32 %v2635_v15  ;;  %2838 = vmatpush.msrb.mxu3 %v3172_v43 }
0x1718   :  { %3160 = vmatmul.msk.f32.vlgmr.msrb.gmra.mxu0 %vm297_vm0, %v2638_v5  ;;  %v3221_v5 = vld [vmem:[#allocation15 + $0x4] ss:$0 sm:$0xff] }
0x1719   :  { %2839 = vmatpush.msrb.mxu3 %v3171_v8 }
0x171d   :  { %v3373_v17 = vpop.eup %3372  ;;  %v2488_v26 = vpop.f32.mrf.mxu0 }
0x171e   :  { %v2639_v35 = vmul.f32 %v3373_v17, %v3365_v10  ;;  %v2489_v41 = vadd.f32 %v2488_v26, %v4656_v14  ;;  %v3170_v10 = vld [vmem:[%s4768_s18 + $0x58] sm:$0xff] }
0x171f   :  { %2840 = vmatpush.msrb.mxu3 %v3170_v10 }
0x1720   :  { %3161 = vmatmul.msk.f32.gmra.mxu0 %vm297_vm0, %v2639_v35 }
0x172b   :  { %v2575_v30 = vpop.f32.mrf.mxu2 }
0x172c   :  { %v2581_v55 = vadd.f32 %v2575_v30, %v2486_v32 }
0x1733   :  { %v2578_v20 = vpop.f32.mrf.mxu2 }
0x1734   :  { %v2582_v46 = vadd.f32 %v2578_v20, %v2489_v41  ;;  %v3167_v20 = vld [vmem:[%s4768_s18 + $0x40] sm:$0xff] }
0x1735   :  { %v3222_v41 = vld [vmem:[#allocation12 + $0x1] ss:$0 sm:$0xff] }
0x1795   :  { %v2667_v37 = vpop.f32.mrf.mxu0 }
0x1796   :  { %v2673_v39 = vadd.f32 %v2667_v37, %v2581_v55  ;;  %v3169_v37 = vld [vmem:[%s4768_s18 + $0x50] sm:$0xff] }
0x1797   :  { %2841 = vmatpush.msrb.mxu3 %v3169_v37 }
0x1798   :  { %3162 = vmatmul.msk.f32.vlgmr.msrb.gmra.mxu1 %vm297_vm0, %v2673_v39  ;;  %v3168_v39 = vld [vmem:[%s4768_s18 + $0x48] sm:$0xff] }
0x1799   :  { %2842 = vmatpush.msrb.mxu3 %v3168_v39 }
0x179b   :  { %2843 = vmatpush.msrb.mxu3 %v3167_v20 }
0x179d   :  { %v2670_v24 = vpop.f32.mrf.mxu0 }
0x179e   :  { %v2674_v50 = vadd.f32 %v2670_v24, %v2582_v46 }
0x17a0   :  { %3163 = vmatmul.msk.f32.gmra.mxu1 %vm297_vm0, %v2674_v50 }
0x1815   :  { %v2701_v44 = vpop.f32.mrf.mxu1 }
0x1816   :  { %v2702_v56 = vadd.f32 %v3219_v52, %v2701_v44 }
0x1818   :  { %v2707_v51 = vadd.f32 %v2702_v56, %v4528_v62 }
0x181a   :  { %v2713_v58 = vsel %vm297_vm0, %v2707_v51, 0.0 }
0x181b   :  { %2714 = vadd.xlane.f32.xlu2 %v2713_v58 }
0x181d   :  { %v2704_v40 = vpop.f32.mrf.mxu1 }
0x181e   :  { %v2705_v38 = vadd.f32 %v3219_v52, %v2704_v40 }
0x1820   :  { %v2708_v14 = vadd.f32 %v2705_v38, %v4538_v29  ;;  %v2771_v29 = vld [vmem:[#allocation10 + $0x38] sm:$0xff] }
0x1821   :  { %2795 = vmatpush.msrb.mxu2 %v2771_v29 }
0x1822   :  { %v2716_v7 = vsel %vm297_vm0, %v2708_v14, 0.0 }
0x1823   :  { %2717 = vadd.xlane.f32.xlu0 %v2716_v7  ;;  %2796 = vmatpush.msrb.mxu2 %v2770_v1 }
0x1825   :  { %2797 = vmatpush.msrb.mxu2 %v2769_v34 }
0x1827   :  { %2798 = vmatpush.msrb.mxu2 %v2768_v3 }
0x188e   :  { %v2715_v9 = vpop.xlane.xlu2 %2714 }
0x188f   :  { %v2719_v33 = vmul.f32 %v2715_v9, %v4061_v28 }
0x1891   :  { %v2721_v21 = vsub.f32 %v2707_v51, %v2719_v33  ;;  %v3223_v51 = vld [vmem:[#allocation13 + $0x1] ss:$0 sm:$0xff] }
0x1893   :  { %v2723_v19 = vmul.f32 %v2721_v21, %v2721_v21 }
0x1895   :  { %v2725_v59 = vsel %vm297_vm0, %v2723_v19, 0.0 }
0x1896   :  { %2726 = vadd.xlane.f32.xlu1 %v2725_v59  ;;  %v2718_v23 = vpop.xlane.xlu0 %2717 }
0x1897   :  { %v2720_v62 = vmul.f32 %v2718_v23, %v4061_v28 }
0x1899   :  { %v2722_v36 = vsub.f32 %v2708_v14, %v2720_v62 }
0x189b   :  { %v2724_v42 = vmul.f32 %v2722_v36, %v2722_v36 }
0x189d   :  { %v2728_v63 = vsel %vm297_vm0, %v2724_v42, 0.0 }
0x189e   :  { %2729 = vadd.xlane.f32.xlu2 %v2728_v63 }
0x1909   :  { %v2727_v48 = vpop.xlane.xlu1 %2726 }
0x190a   :  { %v2731_v61 = vmul.f32 %v2727_v48, %v4061_v28 }
0x190c   :  { %v2733_v53 = vadd.f32 1e-05, %v2731_v61 }
0x190e   :  { %3374 = vrsqrt.f32 %v2733_v53  ;;  %vm2741_vm9 = vweird.f32 %v2733_v53 }
0x1911   :  { %v2730_v2 = vpop.xlane.xlu2 %2729 }
0x1912   :  { %v2732_v18 = vmul.f32 %v2730_v2, %v4061_v28 }
0x1914   :  { %v3375_v11 = vpop.eup %3374  ;;  %v2734_v31 = vadd.f32 1e-05, %v2732_v18 }
0x1915   :  { %v2736_v45 = vmul.f32 %v3375_v11, %v2733_v53  ;;  %vm2742_vm8 = vweird.f32 %v3375_v11 }
0x1916   :  { %3376 = vrsqrt.f32 %v2734_v31  ;;  %vm2743_vm12 = vmor %vm2741_vm9, %vm2742_vm8  ;;  %vm2751_vm14 = vweird.f32 %v2734_v31 }
0x1917   :  { %v2737_v57 = vmul.f32 %v3375_v11, %v2736_v45 }
0x1919   :  { %v2738_v49 = vmul.f32 0.5, %v2737_v57  ;;  %v3224_v57 = vld [vmem:[%s4770_s20 + $0x5] ss:$0 sm:$0xff] }
0x191b   :  { %v2739_v27 = vsub.f32 1.5, %v2738_v49 }
0x191c   :  { %v3377_v0 = vpop.eup %3376 }
0x191d   :  { %v2740_v60 = vmul.f32 %v3375_v11, %v2739_v27  ;;  %v2746_v12 = vmul.f32 %v3377_v0, %v2734_v31  ;;  %vm2752_vm13 = vweird.f32 %v3377_v0 }
0x191e   :  { %vm2753_vm15 = vmor %vm2751_vm14, %vm2752_vm13 }
0x191f   :  { %v2744_v16 = vsel %vm2743_vm12, %v3375_v11, %v2740_v60  ;;  %v2747_v6 = vmul.f32 %v3377_v0, %v2746_v12  ;;  %v3225_v60 = vld [vmem:[#allocation15 + $0x5] ss:$0 sm:$0xff] }
0x1920   :  { %v2755_v15 = vmul.f32 %v2744_v16, %v2721_v21 }
0x1921   :  { %v2748_v17 = vmul.f32 0.5, %v2747_v6 }
0x1922   :  { %v2760_v35 = vmul.f32 %v3220_v13, %v2755_v15 }
0x1923   :  { %v2749_v22 = vsub.f32 1.5, %v2748_v17 }
0x1924   :  { %v2765_v25 = vadd.f32 %v3221_v5, %v2760_v35 }
0x1925   :  { %v2750_v47 = vmul.f32 %v3377_v0, %v2749_v22 }
0x1926   :  { %3165 = vmatmul.msk.f32.vlgmr.msrb.gmra.mxu2 %vm297_vm0, %v2765_v25 }
0x1927   :  { %v2754_v26 = vsel %vm2753_vm15, %v3377_v0, %v2750_v47 }
0x1928   :  { %v2756_v30 = vmul.f32 %v2754_v26, %v2722_v36 }
0x192a   :  { %v2761_v32 = vmul.f32 %v3220_v13, %v2756_v30 }
0x192c   :  { %v2766_v55 = vadd.f32 %v3221_v5, %v2761_v32 }
0x192e   :  { %3166 = vmatmul.msk.f32.gmra.mxu2 %vm297_vm0, %v2766_v55 }
0x19a9   :  { %v2800_v46 = vpop.f32.mrf.mxu2 }
0x19aa   :  { %v2801_v24 = vadd.f32 %v3222_v41, %v2800_v46 }
0x19ac   :  { %v2806_v50 = vmax.f32 %v2801_v24, 0.0 }
0x19ae   :  { %3175 = vmatmul.msk.f32.vlgmr.msrb.gmra.mxu3 %vm1509_vm10, %v2806_v50 }
0x19b1   :  { %v2803_v52 = vpop.f32.mrf.mxu2 }
0x19b2   :  { %v2804_v44 = vadd.f32 %v3222_v41, %v2803_v52 }
0x19b4   :  { %v2807_v56 = vmax.f32 %v2804_v44, 0.0 }
0x19b6   :  { %3176 = vmatmul.msk.f32.gmra.mxu3 %vm1509_vm10, %v2807_v56 }
0x1a31   :  { %v2845_v58 = vpop.f32.mrf.mxu3 }
0x1a32   :  { %v2846_v40 = vadd.f32 %v3223_v51, %v2845_v58 }
0x1a34   :  { %v2851_v38 = vadd.f32 %v2846_v40, %v2765_v25 }
0x1a36   :  { %v2857_v14 = vsel %vm297_vm0, %v2851_v38, 0.0 }
0x1a37   :  { %2858 = vadd.xlane.f32.xlu0 %v2857_v14 }
0x1a39   :  { %v2848_v7 = vpop.f32.mrf.mxu3 }
0x1a3a   :  { %v2849_v9 = vadd.f32 %v3223_v51, %v2848_v7 }
0x1a3c   :  { %v2852_v33 = vadd.f32 %v2849_v9, %v2766_v55 }
0x1a3e   :  { %v2860_v21 = vsel %vm297_vm0, %v2852_v33, 0.0 }
0x1a3f   :  { %2861 = vadd.xlane.f32.xlu1 %v2860_v21 }
0x1aaa   :  { %v2859_v19 = vpop.xlane.xlu0 %2858 }
0x1aab   :  { %v2863_v59 = vmul.f32 %v2859_v19, %v4061_v28 }
0x1aad   :  { %v2865_v23 = vsub.f32 %v2851_v38, %v2863_v59  ;;  %v3226_v59 = vld [vmem:[%s4772_s22] ss:$0 sm:$0xff] }
0x1aaf   :  { %v2867_v62 = vmul.f32 %v2865_v23, %v2865_v23 }
0x1ab1   :  { %v2869_v36 = vsel %vm297_vm0, %v2867_v62, 0.0 }
0x1ab2   :  { %v2862_v42 = vpop.xlane.xlu1 %2861  ;;  %2870 = vadd.xlane.f32.xlu2 %v2869_v36 }
0x1ab3   :  { %v2864_v63 = vmul.f32 %v2862_v42, %v4061_v28 }
0x1ab5   :  { %v2866_v29 = vsub.f32 %v2852_v33, %v2864_v63 }
0x1ab7   :  { %v2868_v1 = vmul.f32 %v2866_v29, %v2866_v29 }
0x1ab9   :  { %v2872_v34 = vsel %vm297_vm0, %v2868_v1, 0.0 }
0x1aba   :  { %2873 = vadd.xlane.f32.xlu0 %v2872_v34 }
0x1b25   :  { %v2871_v3 = vpop.xlane.xlu2 %2870 }
0x1b26   :  { %v2875_v48 = vmul.f32 %v2871_v3, %v4061_v28 }
0x1b28   :  { %v2877_v61 = vadd.f32 1e-05, %v2875_v48 }
0x1b2a   :  { %3378 = vrsqrt.f32 %v2877_v61  ;;  %vm2885_vm1 = vweird.f32 %v2877_v61 }
0x1b2d   :  { %v2874_v53 = vpop.xlane.xlu0 %2873 }
0x1b2e   :  { %v2876_v54 = vmul.f32 %v2874_v53, %v4061_v28 }
0x1b30   :  { %v3379_v4 = vpop.eup %3378  ;;  %v2878_v43 = vadd.f32 1e-05, %v2876_v54 }
0x1b31   :  { %v2880_v2 = vmul.f32 %v3379_v4, %v2877_v61  ;;  %vm2886_vm10 = vweird.f32 %v3379_v4 }
0x1b32   :  { %3380 = vrsqrt.f32 %v2878_v43  ;;  %vm2887_vm2 = vmor %vm2885_vm1, %vm2886_vm10  ;;  %vm2895_vm3 = vweird.f32 %v2878_v43 }
0x1b33   :  { %v2881_v18 = vmul.f32 %v3379_v4, %v2880_v2 }
0x1b35   :  { %v2882_v8 = vmul.f32 0.5, %v2881_v18 }
0x1b37   :  { %v2883_v11 = vsub.f32 1.5, %v2882_v8 }
0x1b38   :  { %v3381_v31 = vpop.eup %3380 }
0x1b39   :  { %v2884_v10 = vmul.f32 %v3379_v4, %v2883_v11  ;;  %v2890_v45 = vmul.f32 %v3381_v31, %v2878_v43  ;;  %vm2896_vm11 = vweird.f32 %v3381_v31 }
0x1b3a   :  { %vm2897_vm4 = vmor %vm2895_vm3, %vm2896_vm11 }
0x1b3b   :  { %v2891_v49 = vmul.f32 %v3381_v31, %v2890_v45  ;;  %v2888_v27 = vsel %vm2887_vm2, %v3379_v4, %v2884_v10 }
0x1b3c   :  { %v2899_v0 = vmul.f32 %v2888_v27, %v2865_v23 }
0x1b3d   :  { %v2892_v12 = vmul.f32 0.5, %v2891_v49 }
0x1b3e   :  { %v2904_v13 = vmul.f32 %v3224_v57, %v2899_v0 }
0x1b3f   :  { %v2893_v16 = vsub.f32 1.5, %v2892_v12 }
0x1b40   :  { %v2909_v6 = vadd.f32 %v3225_v60, %v2904_v13 }
0x1b41   :  { %v2894_v5 = vmul.f32 %v3381_v31, %v2893_v16 }
0x1b42   :  { %v2913_v15 = vsel %vm297_vm0, %v2909_v6, 0.0 }
0x1b43   :  { %2914 = vadd.xlane.f32.xlu1 %v2913_v15  ;;  %v2898_v17 = vsel %vm2897_vm4, %v3381_v31, %v2894_v5 }
0x1b44   :  { %v2900_v35 = vmul.f32 %v2898_v17, %v2866_v29 }
0x1b46   :  { %v2905_v22 = vmul.f32 %v3224_v57, %v2900_v35 }
0x1b48   :  { %v2910_v25 = vadd.f32 %v3225_v60, %v2905_v22 }
0x1b4a   :  { %v2916_v47 = vsel %vm297_vm0, %v2910_v25, 0.0 }
0x1b4b   :  { %2917 = vadd.xlane.f32.xlu2 %v2916_v47 }
0x1bb6   :  { %v2915_v26 = vpop.xlane.xlu1 %2914 }
0x1bb7   :  { %v2919_v30 = vmul.f32 %v2915_v26, %v4061_v28 }
0x1bb9   :  { %v2921_v32 = vsub.f32 %v2909_v6, %v2919_v30 }
0x1bbb   :  { %v2923_v55 = vmul.f32 %v2921_v32, %v2921_v32 }
0x1bbd   :  { %v2925_v37 = vsel %vm297_vm0, %v2923_v55, 0.0 }
0x1bbe   :  { %2926 = vadd.xlane.f32.xlu0 %v2925_v37  ;;  %v2918_v39 = vpop.xlane.xlu2 %2917 }
0x1bbf   :  { %v2920_v20 = vmul.f32 %v2918_v39, %v4061_v28 }
0x1bc1   :  { %v2922_v41 = vsub.f32 %v2910_v25, %v2920_v20 }
0x1bc3   :  { %v2924_v46 = vmul.f32 %v2922_v41, %v2922_v41 }
0x1bc5   :  { %v2928_v24 = vsel %vm297_vm0, %v2924_v46, 0.0 }
0x1bc6   :  { %2929 = vadd.xlane.f32.xlu1 %v2928_v24 }
0x1c31   :  { %v2927_v50 = vpop.xlane.xlu0 %2926 }
0x1c32   :  { %v2931_v52 = vmul.f32 %v2927_v50, %v4061_v28 }
0x1c34   :  { %v2933_v44 = vadd.f32 1e-05, %v2931_v52 }
0x1c36   :  { %3382 = vrsqrt.f32 %v2933_v44  ;;  %vm2941_vm6 = vweird.f32 %v2933_v44 }
0x1c39   :  { %v2930_v56 = vpop.xlane.xlu1 %2929 }
0x1c3a   :  { %v2932_v51 = vmul.f32 %v2930_v56, %v4061_v28  ;;  %v3227_v28 = vld [vmem:[#allocation16] ss:$0 sm:$0xff] }
0x1c3c   :  { %v3383_v58 = vpop.eup %3382  ;;  %v2934_v40 = vadd.f32 1e-05, %v2932_v51 }
0x1c3d   :  { %v2936_v38 = vmul.f32 %v3383_v58, %v2933_v44  ;;  %vm2942_vm5 = vweird.f32 %v3383_v58 }
0x1c3e   :  { %3384 = vrsqrt.f32 %v2934_v40  ;;  %vm2943_vm7 = vmor %vm2941_vm6, %vm2942_vm5  ;;  %vm2951_vm9 = vweird.f32 %v2934_v40 }
0x1c3f   :  { %v2937_v14 = vmul.f32 %v3383_v58, %v2936_v38 }
0x1c41   :  { %v2938_v7 = vmul.f32 0.5, %v2937_v14 }
0x1c43   :  { %v2939_v9 = vsub.f32 1.5, %v2938_v7 }
0x1c44   :  { %v3385_v33 = vpop.eup %3384 }
0x1c45   :  { %v2940_v21 = vmul.f32 %v3383_v58, %v2939_v9  ;;  %v2946_v19 = vmul.f32 %v3385_v33, %v2934_v40  ;;  %vm2952_vm8 = vweird.f32 %v3385_v33 }
0x1c46   :  { %vm2953_vm12 = vmor %vm2951_vm9, %vm2952_vm8 }
0x1c47   :  { %v2944_v23 = vsel %vm2943_vm7, %v3383_v58, %v2940_v21  ;;  %v2947_v62 = vmul.f32 %v3385_v33, %v2946_v19 }
0x1c48   :  { %v2955_v36 = vmul.f32 %v2944_v23, %v2921_v32 }
0x1c49   :  { %v2948_v42 = vmul.f32 0.5, %v2947_v62 }
0x1c4a   :  { %v2960_v63 = vmul.f32 %v3226_v59, %v2955_v36 }
0x1c4b   :  { %v2949_v29 = vsub.f32 1.5, %v2948_v42 }
0x1c4c   :  { %v2965_v1 = vadd.f32 %v3227_v28, %v2960_v63 }
0x1c4d   :  { %v2950_v34 = vmul.f32 %v3385_v33, %v2949_v29 }
0x1c4e   :  { %2967 = vst.msk [vmem:[%s4774_s24] sm:$0xff] %vm297_vm0, %v2965_v1 }
0x1c4f   :  { %v2954_v3 = vsel %vm2953_vm12, %v3385_v33, %v2950_v34 }
0x1c50   :  { %v2956_v48 = vmul.f32 %v2954_v3, %v2922_v41 }
0x1c52   :  { %v2961_v61 = vmul.f32 %v3226_v59, %v2956_v48 }
0x1c54   :  { %v2966_v53 = vadd.f32 %v3227_v28, %v2961_v61 }
0x1c56   :  { %2968 = vst.msk [vmem:[%s4774_s24 + $0x8] sm:$0xff] %vm297_vm0, %v2966_v53 }
0x1c57   :  { %2973 = vsyncpa [#allocation3], 1 }
0x1c58   :  { %2974 = vsyncpa [#allocation5], 1 }
0x1c59   :  { %2975 = vsyncpa [#allocation8], 1 }
0x1c5a   :  { %2976 = vsyncpa [#allocation11], 1 }
0x1c5b   :  { %2977 = vsyncpa [#allocation14], 1 }
0x1c5c   :  { %2978 = vsyncpa [#allocation17], 1 }

</bundles_post_ra>
